<compile_context>
chip_gen: v5e
topology: v5e:2x2
jax: 0.10.0
libtpu: 0.0.40
codegen_flags: <defaults>
</compile_context>

<pallas_src>
import functools

import jax
import jax.numpy as jnp
from jax.experimental import pallas as pl
from jax.experimental.pallas import tpu as pltpu

BN_EPS = 1e-5
F32 = jnp.float32
BF16 = jnp.bfloat16
TILE_M = 256                      # row tile for the 1x1-conv matmuls
VMEM_LIMIT = 48 * 1024 * 1024     # explicit scoped-VMEM cap (safe on v5e/v6e/v7x)


def _round_up(x, m):
    return (x + m - 1) // m * m


def _cparams():
    return pltpu.CompilerParams(
        dimension_semantics=("parallel",),
        vmem_limit_bytes=VMEM_LIMIT,
    )


# ----------------------------------------------------------------------------
# Pallas kernels
# ----------------------------------------------------------------------------
def _mm_bias_act_kernel(x_ref, w_ref, b_ref, o_ref, *, relu):
    # y = act( x @ W  + bias )          (BN scale already folded into W)
    y = jnp.dot(x_ref[...], w_ref[...], preferred_element_type=jnp.float32)
    y = y + b_ref[...]
    if relu:
        y = jnp.maximum(y, 0.0)
    o_ref[...] = y.astype(o_ref.dtype)


def _mm_bias_res_relu_kernel(x_ref, w_ref, b_ref, r_ref, o_ref):
    # y = relu( x @ W + bias + residual )
    y = jnp.dot(x_ref[...], w_ref[...], preferred_element_type=jnp.float32)
    y = y + b_ref[...] + r_ref[...].astype(jnp.float32)
    o_ref[...] = jnp.maximum(y, 0.0).astype(o_ref.dtype)


def _conv3x3_kernel(x_ref, w_ref, b_ref, o_ref, *, H, W, C, TH):
    # x_ref : (1, H+2, W+2, C)  padded bf16 image (one batch element)
    # w_ref : (9*C, Cout)       bf16, BN-folded, tap-major [(dh*3+dw)*C + c]
    # b_ref : (1, Cout)         f32
    # o_ref : (1, H, W, Cout)
    # 3x3 conv = sum of 9 shifted matmuls, accumulated in f32.  Output rows
    # are processed in chunks of TH image-rows to bound vreg/VMEM pressure.
    cout = w_ref.shape[1]
    for h0 in range(0, H, TH):
        th = min(TH, H - h0)
        acc = jnp.zeros((th * W, cout), jnp.float32)
        for dh in range(3):
            for dw in range(3):
                xs = x_ref[0, h0 + dh:h0 + dh + th, dw:dw + W, :]
                xs = xs.reshape(th * W, C)
                t = dh * 3 + dw
                wk = w_ref[t * C:(t + 1) * C, :]
                acc = acc + jnp.dot(xs, wk, preferred_element_type=jnp.float32)
        y = jnp.maximum(acc + b_ref[...], 0.0)
        o_ref[0, h0:h0 + th, :, :] = y.reshape(th, W, cout).astype(o_ref.dtype)


# ----------------------------------------------------------------------------
# Pallas wrappers
# ----------------------------------------------------------------------------
def matmul_bias_act(x, w, bias, *, relu, residual=None, out_dtype=BF16):
    """Fused (1x1-conv) matmul: act(x @ w + bias [+ residual]).

    x: (M, K) bf16, w: (K, N) bf16 (BN-folded), bias: (N,) f32,
    residual: optional (M, N) f32.  Tiled over M; weights resident.
    """
    M, K = x.shape
    N = w.shape[1]
    tile_m = min(TILE_M, _round_up(M, 8))
    Mp = _round_up(M, tile_m)
    if Mp != M:
        x = jnp.pad(x, ((0, Mp - M), (0, 0)))
        if residual is not None:
            residual = jnp.pad(residual, ((0, Mp - M), (0, 0)))
    grid = (Mp // tile_m,)
    bias2 = bias.reshape(1, N).astype(F32)

    in_specs = [
        pl.BlockSpec((tile_m, K), lambda i: (i, 0)),   # activation tile (pipelined)
        pl.BlockSpec((K, N), lambda i: (0, 0)),        # resident weight
        pl.BlockSpec((1, N), lambda i: (0, 0)),        # resident bias
    ]
    args = [x, w, bias2]
    if residual is None:
        kernel = functools.partial(_mm_bias_act_kernel, relu=relu)
    else:
        kernel = _mm_bias_res_relu_kernel
        in_specs.append(pl.BlockSpec((tile_m, N), lambda i: (i, 0)))
        args.append(residual)

    out_itemsize = jnp.dtype(out_dtype).itemsize
    bytes_accessed = sum(int(a.size) * a.dtype.itemsize for a in args) + Mp * N * out_itemsize
    out = pl.pallas_call(
        kernel,
        grid=grid,
        in_specs=in_specs,
        out_specs=pl.BlockSpec((tile_m, N), lambda i: (i, 0)),
        out_shape=jax.ShapeDtypeStruct((Mp, N), out_dtype),
        compiler_params=_cparams(),
        cost_estimate=pl.CostEstimate(
            flops=2 * Mp * K * N, transcendentals=0, bytes_accessed=bytes_accessed),
    )(*args)
    return out[:M] if Mp != M else out


def conv3x3_bn_relu(x_nhwc, w_flat, bias, *, out_dtype=BF16):
    """3x3 / stride-1 / pad-1 conv + folded-BN + ReLU, no HBM im2col.

    x_nhwc: (N, H, W, C) bf16;  w_flat: (9*C, Cout) bf16;  bias: (Cout,) f32.
    Grid over batch ("parallel"); the 9 taps are matmul-accumulated in-kernel.
    """
    N, H, W, C = x_nhwc.shape
    Cout = w_flat.shape[1]
    xpad = jnp.pad(x_nhwc, ((0, 0), (1, 1), (1, 1), (0, 0)))
    Hp, Wp = H + 2, W + 2
    TH = min(H, max(8, 512 // max(W, 1)))   # ~512 output rows per in-kernel chunk

    kernel = functools.partial(_conv3x3_kernel, H=H, W=W, C=C, TH=TH)
    bias2 = bias.reshape(1, Cout).astype(F32)
    bytes_accessed = (int(xpad.size) * xpad.dtype.itemsize
                      + int(w_flat.size) * w_flat.dtype.itemsize
                      + int(bias2.size) * 4
                      + N * H * W * Cout * jnp.dtype(out_dtype).itemsize)
    return pl.pallas_call(
        kernel,
        grid=(N,),
        in_specs=[
            pl.BlockSpec((1, Hp, Wp, C), lambda n: (n, 0, 0, 0)),
            pl.BlockSpec((9 * C, Cout), lambda n: (0, 0)),
            pl.BlockSpec((1, Cout), lambda n: (0, 0)),
        ],
        out_specs=pl.BlockSpec((1, H, W, Cout), lambda n: (n, 0, 0, 0)),
        out_shape=jax.ShapeDtypeStruct((N, H, W, Cout), out_dtype),
        compiler_params=_cparams(),
        cost_estimate=pl.CostEstimate(
            flops=2 * N * H * W * 9 * C * Cout, transcendentals=0,
            bytes_accessed=bytes_accessed),
    )(xpad, w_flat, bias2)


# ----------------------------------------------------------------------------
# Parameters: conv weights + eval-mode BN folded into (weight, bias)
# ----------------------------------------------------------------------------
def _fold_bn(w_mat, gamma, beta, mean, var, eps=BN_EPS):
    scale = gamma / jnp.sqrt(var + eps)
    return w_mat * scale[None, :], beta - mean * scale


def _fresh_bn(c):
    return (jnp.ones((c,), F32), jnp.zeros((c,), F32),
            jnp.zeros((c,), F32), jnp.ones((c,), F32))


def _kaiming(key, kh, kw, cin, cout):
    fan_out = cout * kh * kw
    return jax.random.normal(key, (kh, kw, cin, cout), F32) * (2.0 / fan_out) ** 0.5


def make_bottleneck_params(key, inplanes, planes, stride):
    expansion = 4
    cout = planes * expansion
    k1, k2, k3, k4 = jax.random.split(key, 4)
    p = {"stride": stride}

    w1 = _kaiming(k1, 1, 1, inplanes, planes).reshape(inplanes, planes)
    w1, b1 = _fold_bn(w1, *_fresh_bn(planes))
    p["conv1_w"], p["conv1_b"] = w1.astype(BF16), b1

    w2 = _kaiming(k2, 3, 3, planes, planes).reshape(9 * planes, planes)
    w2, b2 = _fold_bn(w2, *_fresh_bn(planes))
    p["conv2_w"], p["conv2_b"] = w2.astype(BF16), b2

    w3 = _kaiming(k3, 1, 1, planes, cout).reshape(planes, cout)
    w3, b3 = _fold_bn(w3, *_fresh_bn(cout))
    p["conv3_w"], p["conv3_b"] = w3.astype(BF16), b3

    if stride != 1 or inplanes != cout:
        wd = _kaiming(k4, 1, 1, inplanes, cout).reshape(inplanes, cout)
        wd, bd = _fold_bn(wd, *_fresh_bn(cout))
        p["down_w"], p["down_b"] = wd.astype(BF16), bd
    return p


# ----------------------------------------------------------------------------
# Bottleneck forward
# ----------------------------------------------------------------------------
def bottleneck_forward(params, x_nchw):
    x = jnp.transpose(x_nchw, (0, 2, 3, 1)).astype(BF16)        # NHWC bf16
    N = x.shape[0]
    s = params["stride"]
    xs = x[:, ::s, ::s, :] if s > 1 else x                      # 1x1-conv stride = subsample
    Ho, Wo = xs.shape[1], xs.shape[2]
    Cin = xs.shape[3]
    M = N * Ho * Wo
    xs2d = xs.reshape(M, Cin)

    planes = params["conv1_w"].shape[1]
    cout = params["conv3_w"].shape[1]

    # conv1 (1x1, stride s) + bn1 + relu
    y1 = matmul_bias_act(xs2d, params["conv1_w"], params["conv1_b"],
                         relu=True, out_dtype=BF16)
    y1 = y1.reshape(N, Ho, Wo, planes)

    # conv2 (3x3, stride 1, pad 1) + bn2 + relu
    y2 = conv3x3_bn_relu(y1, params["conv2_w"], params["conv2_b"], out_dtype=BF16)

    # residual branch
    if "down_w" in params:
        res = matmul_bias_act(xs2d, params["down_w"], params["down_b"],
                              relu=False, out_dtype=F32)
    else:
        res = xs2d.astype(F32)   # identity (valid when stride==1 and Cin==cout)

    # conv3 (1x1) + bn3 + residual add + relu   (fused in one kernel)
    y3 = matmul_bias_act(y2.reshape(M, planes), params["conv3_w"], params["conv3_b"],
                         relu=True, residual=res, out_dtype=F32)
    out = y3.reshape(N, Ho, Wo, cout)
    return jnp.transpose(out, (0, 3, 1, 2))                     # back to NCHW


# ----------------------------------------------------------------------------
# Pure-JAX reference (same folded bf16 weights) for a loose sanity check
# ----------------------------------------------------------------------------
def reference_forward(params, x_nchw):
    def conv(x, w_hwio, stride, pad):
        return jax.lax.conv_general_dilated(
            x, w_hwio.astype(F32), (stride, stride), pad,
            dimension_numbers=("NHWC", "HWIO", "NHWC"))

    x = jnp.transpose(x_nchw, (0, 2, 3, 1)).astype(F32)
    inp = params["conv1_w"].shape[0]
    planes = params["conv1_w"].shape[1]
    cout = params["conv3_w"].shape[1]
    s = params["stride"]
    w1 = params["conv1_w"].astype(F32).reshape(1, 1, inp, planes)
    w2 = params["conv2_w"].astype(F32).reshape(3, 3, planes, planes)
    w3 = params["conv3_w"].astype(F32).reshape(1, 1, planes, cout)
    y = jax.nn.relu(conv(x, w1, s, "VALID") + params["conv1_b"])
    y = jax.nn.relu(conv(y, w2, 1, "SAME") + params["conv2_b"])
    y = conv(y, w3, 1, "VALID") + params["conv3_b"]
    if "down_w" in params:
        wd = params["down_w"].astype(F32).reshape(1, 1, inp, cout)
        r = conv(x, wd, s, "VALID") + params["down_b"]
    else:
        r = x
    return jnp.transpose(jax.nn.relu(y + r), (0, 3, 1, 2))


# ----------------------------------------------------------------------------
if __name__ == "__main__":
    key = jax.random.PRNGKey(0)
    k_param, k_x = jax.random.split(key)

    inplanes, planes, stride = 64, 32, 2          # -> out channels = 128
    params = make_bottleneck_params(k_param, inplanes, planes, stride)
    x = jax.random.normal(k_x, (2, inplanes, 32, 32), F32)   # NCHW like PyTorch

    @jax.jit
    def run(inp):
        return bottleneck_forward(params, inp)

    out = jax.block_until_ready(run(x))
    assert out.shape == (2, planes * 4, 16, 16), out.shape
    assert bool(jnp.all(jnp.isfinite(out)))

    # loose numerical sanity check against a plain-JAX reference (bf16 MXU inputs)
    ref = reference_forward(params, x)
    max_err = float(jnp.max(jnp.abs(out - ref)))
    assert max_err < 0.5, max_err

    print("KERNEL_OK")
</pallas_src>

<mosaic_0001>
module attributes {stable_mosaic.version = 11 : i64} {
  func.func @_mm_bias_act_kernel(%arg0: i32, %arg1: memref<256x64xbf16, #tpu.memory_space<vmem>>, %arg2: memref<64x32xbf16, #tpu.memory_space<vmem>>, %arg3: memref<1x32xf32, #tpu.memory_space<vmem>>, %arg4: memref<256x32xbf16, #tpu.memory_space<vmem>>) attributes {dimension_semantics = [#tpu.dimension_semantics<parallel>], iteration_bounds = array<i64: 2>, scalar_prefetch = 0 : i64, scratch_operands = 0 : i64, tpu.core_type = #tpu.core_type<tc>, window_params = [{transform_indices = @transform_0, window_bounds = array<i64: 256, 64>}, {pipeline_mode = #tpu.pipeline_mode<synchronous>, transform_indices = @transform_1, window_bounds = array<i64: 64, 32>}, {pipeline_mode = #tpu.pipeline_mode<synchronous>, transform_indices = @transform_2, window_bounds = array<i64: 1, 32>}, {transform_indices = @transform_3, window_bounds = array<i64: 256, 32>}]} {
    %c0 = arith.constant 0 : index
    %c0_0 = arith.constant 0 : index
    %0 = vector.load %arg1[%c0, %c0_0] : memref<256x64xbf16, #tpu.memory_space<vmem>>, vector<256x64xbf16>
    %c0_1 = arith.constant 0 : index
    %c0_2 = arith.constant 0 : index
    %1 = vector.load %arg2[%c0_1, %c0_2] : memref<64x32xbf16, #tpu.memory_space<vmem>>, vector<64x32xbf16>
    %cst = arith.constant dense<0.000000e+00> : vector<256x32xf32>
    %2 = tpu.matmul %0, %1, %cst {dimension_numbers = #tpu.dot_dimension_numbers<[1], [0], [0], [1], [0, 0, 1, 1], [], []>} : vector<256x64xbf16>, vector<64x32xbf16>, vector<256x32xf32> -> vector<256x32xf32>
    %c0_3 = arith.constant 0 : index
    %c0_4 = arith.constant 0 : index
    %3 = vector.load %arg3[%c0_3, %c0_4] : memref<1x32xf32, #tpu.memory_space<vmem>>, vector<1x32xf32>
    %4 = vector.broadcast %3 : vector<1x32xf32> to vector<256x32xf32>
    %5 = arith.addf %2, %4 : vector<256x32xf32>
    %cst_5 = arith.constant 0.000000e+00 : f32
    %6 = vector.broadcast %cst_5 : f32 to vector<256x32xf32>
    %7 = arith.maximumf %5, %6 : vector<256x32xf32>
    %8 = arith.truncf %7 : vector<256x32xf32> to vector<256x32xbf16>
    %c0_6 = arith.constant 0 : index
    %c0_7 = arith.constant 0 : index
    %9 = vector.load %arg4[%c0_6, %c0_7] : memref<256x32xbf16, #tpu.memory_space<vmem>>, vector<256x32xbf16>
    tpu.vector_store %arg4[%c0_6, %c0_7], %8 {strides = array<i32>} : memref<256x32xbf16, #tpu.memory_space<vmem>>, vector<256x32xbf16>,
    return
  }
  func.func @transform_0(%arg0: i32) -> (i32, i32) {
    %c0_i32 = arith.constant 0 : i32
    %c0_i32_0 = arith.constant 0 : i32
    return %arg0, %c0_i32 : i32, i32
  }
  func.func @transform_1(%arg0: i32) -> (i32, i32) {
    %c0_i32 = arith.constant 0 : i32
    %c0_i32_0 = arith.constant 0 : i32
    %c0_i32_1 = arith.constant 0 : i32
    return %c0_i32, %c0_i32_0 : i32, i32
  }
  func.func @transform_2(%arg0: i32) -> (i32, i32) {
    %c0_i32 = arith.constant 0 : i32
    %c0_i32_0 = arith.constant 0 : i32
    %c0_i32_1 = arith.constant 0 : i32
    return %c0_i32, %c0_i32_0 : i32, i32
  }
  func.func @transform_3(%arg0: i32) -> (i32, i32) {
    %c0_i32 = arith.constant 0 : i32
    %c0_i32_0 = arith.constant 0 : i32
    return %arg0, %c0_i32 : i32, i32
  }
}

module attributes {stable_mosaic.version = 11 : i64} {
  func.func @_conv3x3_kernel(%arg0: i32, %arg1: memref<1x18x18x32xbf16, #tpu.memory_space<vmem>>, %arg2: memref<288x32xbf16, #tpu.memory_space<vmem>>, %arg3: memref<1x32xf32, #tpu.memory_space<vmem>>, %arg4: memref<1x16x16x32xbf16, #tpu.memory_space<vmem>>) attributes {dimension_semantics = [#tpu.dimension_semantics<parallel>], iteration_bounds = array<i64: 2>, scalar_prefetch = 0 : i64, scratch_operands = 0 : i64, tpu.core_type = #tpu.core_type<tc>, window_params = [{transform_indices = @transform_0, window_bounds = array<i64: 1, 18, 18, 32>}, {pipeline_mode = #tpu.pipeline_mode<synchronous>, transform_indices = @transform_1, window_bounds = array<i64: 288, 32>}, {pipeline_mode = #tpu.pipeline_mode<synchronous>, transform_indices = @transform_2, window_bounds = array<i64: 1, 32>}, {transform_indices = @transform_3, window_bounds = array<i64: 1, 16, 16, 32>}]} {
    %cst = arith.constant 0.000000e+00 : f32
    %0 = vector.broadcast %cst : f32 to vector<256x32xf32>
    %c0 = arith.constant 0 : index
    %c0_0 = arith.constant 0 : index
    %c0_1 = arith.constant 0 : index
    %c0_2 = arith.constant 0 : index
    %1 = vector.load %arg1[%c0, %c0_0, %c0_1, %c0_2] : memref<1x18x18x32xbf16, #tpu.memory_space<vmem>>, vector<1x16x16x32xbf16>
    %2 = vector.shape_cast %1 : vector<1x16x16x32xbf16> to vector<16x16x32xbf16>
    %3 = vector.shape_cast %2 : vector<16x16x32xbf16> to vector<256x32xbf16>
    %c0_3 = arith.constant 0 : index
    %c0_4 = arith.constant 0 : index
    %4 = vector.load %arg2[%c0_3, %c0_4] : memref<288x32xbf16, #tpu.memory_space<vmem>>, vector<32x32xbf16>
    %cst_5 = arith.constant dense<0.000000e+00> : vector<256x32xf32>
    %5 = tpu.matmul %3, %4, %cst_5 {dimension_numbers = #tpu.dot_dimension_numbers<[1], [0], [0], [1], [0, 0, 1, 1], [], []>} : vector<256x32xbf16>, vector<32x32xbf16>, vector<256x32xf32> -> vector<256x32xf32>
    %6 = arith.addf %0, %5 : vector<256x32xf32>
    %c0_6 = arith.constant 0 : index
    %c0_7 = arith.constant 0 : index
    %c1 = arith.constant 1 : index
    %c0_8 = arith.constant 0 : index
    %7 = vector.load %arg1[%c0_6, %c0_7, %c1, %c0_8] : memref<1x18x18x32xbf16, #tpu.memory_space<vmem>>, vector<1x16x16x32xbf16>
    %8 = vector.shape_cast %7 : vector<1x16x16x32xbf16> to vector<16x16x32xbf16>
    %9 = vector.shape_cast %8 : vector<16x16x32xbf16> to vector<256x32xbf16>
    %c32 = arith.constant 32 : index
    %c0_9 = arith.constant 0 : index
    %10 = vector.load %arg2[%c32, %c0_9] : memref<288x32xbf16, #tpu.memory_space<vmem>>, vector<32x32xbf16>
    %cst_10 = arith.constant dense<0.000000e+00> : vector<256x32xf32>
    %11 = tpu.matmul %9, %10, %cst_10 {dimension_numbers = #tpu.dot_dimension_numbers<[1], [0], [0], [1], [0, 0, 1, 1], [], []>} : vector<256x32xbf16>, vector<32x32xbf16>, vector<256x32xf32> -> vector<256x32xf32>
    %12 = arith.addf %6, %11 : vector<256x32xf32>
    %c0_11 = arith.constant 0 : index
    %c0_12 = arith.constant 0 : index
    %c2 = arith.constant 2 : index
    %c0_13 = arith.constant 0 : index
    %13 = vector.load %arg1[%c0_11, %c0_12, %c2, %c0_13] : memref<1x18x18x32xbf16, #tpu.memory_space<vmem>>, vector<1x16x16x32xbf16>
    %14 = vector.shape_cast %13 : vector<1x16x16x32xbf16> to vector<16x16x32xbf16>
    %15 = vector.shape_cast %14 : vector<16x16x32xbf16> to vector<256x32xbf16>
    %c64 = arith.constant 64 : index
    %c0_14 = arith.constant 0 : index
    %16 = vector.load %arg2[%c64, %c0_14] : memref<288x32xbf16, #tpu.memory_space<vmem>>, vector<32x32xbf16>
    %cst_15 = arith.constant dense<0.000000e+00> : vector<256x32xf32>
    %17 = tpu.matmul %15, %16, %cst_15 {dimension_numbers = #tpu.dot_dimension_numbers<[1], [0], [0], [1], [0, 0, 1, 1], [], []>} : vector<256x32xbf16>, vector<32x32xbf16>, vector<256x32xf32> -> vector<256x32xf32>
    %18 = arith.addf %12, %17 : vector<256x32xf32>
    %c0_16 = arith.constant 0 : index
    %c1_17 = arith.constant 1 : index
    %c0_18 = arith.constant 0 : index
    %c0_19 = arith.constant 0 : index
    %19 = vector.load %arg1[%c0_16, %c1_17, %c0_18, %c0_19] : memref<1x18x18x32xbf16, #tpu.memory_space<vmem>>, vector<1x16x16x32xbf16>
    %20 = vector.shape_cast %19 : vector<1x16x16x32xbf16> to vector<16x16x32xbf16>
    %21 = vector.shape_cast %20 : vector<16x16x32xbf16> to vector<256x32xbf16>
    %c96 = arith.constant 96 : index
    %c0_20 = arith.constant 0 : index
    %22 = vector.load %arg2[%c96, %c0_20] : memref<288x32xbf16, #tpu.memory_space<vmem>>, vector<32x32xbf16>
    %cst_21 = arith.constant dense<0.000000e+00> : vector<256x32xf32>
    %23 = tpu.matmul %21, %22, %cst_21 {dimension_numbers = #tpu.dot_dimension_numbers<[1], [0], [0], [1], [0, 0, 1, 1], [], []>} : vector<256x32xbf16>, vector<32x32xbf16>, vector<256x32xf32> -> vector<256x32xf32>
    %24 = arith.addf %18, %23 : vector<256x32xf32>
    %c0_22 = arith.constant 0 : index
    %c1_23 = arith.constant 1 : index
    %c1_24 = arith.constant 1 : index
    %c0_25 = arith.constant 0 : index
    %25 = vector.load %arg1[%c0_22, %c1_23, %c1_24, %c0_25] : memref<1x18x18x32xbf16, #tpu.memory_space<vmem>>, vector<1x16x16x32xbf16>
    %26 = vector.shape_cast %25 : vector<1x16x16x32xbf16> to vector<16x16x32xbf16>
    %27 = vector.shape_cast %26 : vector<16x16x32xbf16> to vector<256x32xbf16>
    %c128 = arith.constant 128 : index
    %c0_26 = arith.constant 0 : index
    %28 = vector.load %arg2[%c128, %c0_26] : memref<288x32xbf16, #tpu.memory_space<vmem>>, vector<32x32xbf16>
    %cst_27 = arith.constant dense<0.000000e+00> : vector<256x32xf32>
    %29 = tpu.matmul %27, %28, %cst_27 {dimension_numbers = #tpu.dot_dimension_numbers<[1], [0], [0], [1], [0, 0, 1, 1], [], []>} : vector<256x32xbf16>, vector<32x32xbf16>, vector<256x32xf32> -> vector<256x32xf32>
    %30 = arith.addf %24, %29 : vector<256x32xf32>
    %c0_28 = arith.constant 0 : index
    %c1_29 = arith.constant 1 : index
    %c2_30 = arith.constant 2 : index
    %c0_31 = arith.constant 0 : index
    %31 = vector.load %arg1[%c0_28, %c1_29, %c2_30, %c0_31] : memref<1x18x18x32xbf16, #tpu.memory_space<vmem>>, vector<1x16x16x32xbf16>
    %32 = vector.shape_cast %31 : vector<1x16x16x32xbf16> to vector<16x16x32xbf16>
    %33 = vector.shape_cast %32 : vector<16x16x32xbf16> to vector<256x32xbf16>
    %c160 = arith.constant 160 : index
    %c0_32 = arith.constant 0 : index
    %34 = vector.load %arg2[%c160, %c0_32] : memref<288x32xbf16, #tpu.memory_space<vmem>>, vector<32x32xbf16>
    %cst_33 = arith.constant dense<0.000000e+00> : vector<256x32xf32>
    %35 = tpu.matmul %33, %34, %cst_33 {dimension_numbers = #tpu.dot_dimension_numbers<[1], [0], [0], [1], [0, 0, 1, 1], [], []>} : vector<256x32xbf16>, vector<32x32xbf16>, vector<256x32xf32> -> vector<256x32xf32>
    %36 = arith.addf %30, %35 : vector<256x32xf32>
    %c0_34 = arith.constant 0 : index
    %c2_35 = arith.constant 2 : index
    %c0_36 = arith.constant 0 : index
    %c0_37 = arith.constant 0 : index
    %37 = vector.load %arg1[%c0_34, %c2_35, %c0_36, %c0_37] : memref<1x18x18x32xbf16, #tpu.memory_space<vmem>>, vector<1x16x16x32xbf16>
    %38 = vector.shape_cast %37 : vector<1x16x16x32xbf16> to vector<16x16x32xbf16>
    %39 = vector.shape_cast %38 : vector<16x16x32xbf16> to vector<256x32xbf16>
    %c192 = arith.constant 192 : index
    %c0_38 = arith.constant 0 : index
    %40 = vector.load %arg2[%c192, %c0_38] : memref<288x32xbf16, #tpu.memory_space<vmem>>, vector<32x32xbf16>
    %cst_39 = arith.constant dense<0.000000e+00> : vector<256x32xf32>
    %41 = tpu.matmul %39, %40, %cst_39 {dimension_numbers = #tpu.dot_dimension_numbers<[1], [0], [0], [1], [0, 0, 1, 1], [], []>} : vector<256x32xbf16>, vector<32x32xbf16>, vector<256x32xf32> -> vector<256x32xf32>
    %42 = arith.addf %36, %41 : vector<256x32xf32>
    %c0_40 = arith.constant 0 : index
    %c2_41 = arith.constant 2 : index
    %c1_42 = arith.constant 1 : index
    %c0_43 = arith.constant 0 : index
    %43 = vector.load %arg1[%c0_40, %c2_41, %c1_42, %c0_43] : memref<1x18x18x32xbf16, #tpu.memory_space<vmem>>, vector<1x16x16x32xbf16>
    %44 = vector.shape_cast %43 : vector<1x16x16x32xbf16> to vector<16x16x32xbf16>
    %45 = vector.shape_cast %44 : vector<16x16x32xbf16> to vector<256x32xbf16>
    %c224 = arith.constant 224 : index
    %c0_44 = arith.constant 0 : index
    %46 = vector.load %arg2[%c224, %c0_44] : memref<288x32xbf16, #tpu.memory_space<vmem>>, vector<32x32xbf16>
    %cst_45 = arith.constant dense<0.000000e+00> : vector<256x32xf32>
    %47 = tpu.matmul %45, %46, %cst_45 {dimension_numbers = #tpu.dot_dimension_numbers<[1], [0], [0], [1], [0, 0, 1, 1], [], []>} : vector<256x32xbf16>, vector<32x32xbf16>, vector<256x32xf32> -> vector<256x32xf32>
    %48 = arith.addf %42, %47 : vector<256x32xf32>
    %c0_46 = arith.constant 0 : index
    %c2_47 = arith.constant 2 : index
    %c2_48 = arith.constant 2 : index
    %c0_49 = arith.constant 0 : index
    %49 = vector.load %arg1[%c0_46, %c2_47, %c2_48, %c0_49] : memref<1x18x18x32xbf16, #tpu.memory_space<vmem>>, vector<1x16x16x32xbf16>
    %50 = vector.shape_cast %49 : vector<1x16x16x32xbf16> to vector<16x16x32xbf16>
    %51 = vector.shape_cast %50 : vector<16x16x32xbf16> to vector<256x32xbf16>
    %c256 = arith.constant 256 : index
    %c0_50 = arith.constant 0 : index
    %52 = vector.load %arg2[%c256, %c0_50] : memref<288x32xbf16, #tpu.memory_space<vmem>>, vector<32x32xbf16>
    %cst_51 = arith.constant dense<0.000000e+00> : vector<256x32xf32>
    %53 = tpu.matmul %51, %52, %cst_51 {dimension_numbers = #tpu.dot_dimension_numbers<[1], [0], [0], [1], [0, 0, 1, 1], [], []>} : vector<256x32xbf16>, vector<32x32xbf16>, vector<256x32xf32> -> vector<256x32xf32>
    %54 = arith.addf %48, %53 : vector<256x32xf32>
    %c0_52 = arith.constant 0 : index
    %c0_53 = arith.constant 0 : index
    %55 = vector.load %arg3[%c0_52, %c0_53] : memref<1x32xf32, #tpu.memory_space<vmem>>, vector<1x32xf32>
    %56 = vector.broadcast %55 : vector<1x32xf32> to vector<256x32xf32>
    %57 = arith.addf %54, %56 : vector<256x32xf32>
    %cst_54 = arith.constant 0.000000e+00 : f32
    %58 = vector.broadcast %cst_54 : f32 to vector<256x32xf32>
    %59 = arith.maximumf %57, %58 : vector<256x32xf32>
    %60 = vector.shape_cast %59 : vector<256x32xf32> to vector<16x16x32xf32>
    %61 = arith.truncf %60 : vector<16x16x32xf32> to vector<16x16x32xbf16>
    %c0_55 = arith.constant 0 : index
    %c0_56 = arith.constant 0 : index
    %c0_57 = arith.constant 0 : index
    %c0_58 = arith.constant 0 : index
    %62 = vector.load %arg4[%c0_55, %c0_56, %c0_57, %c0_58] : memref<1x16x16x32xbf16, #tpu.memory_space<vmem>>, vector<1x16x16x32xbf16>
    %63 = vector.shape_cast %62 : vector<1x16x16x32xbf16> to vector<16x16x32xbf16>
    %64 = vector.shape_cast %61 : vector<16x16x32xbf16> to vector<1x16x16x32xbf16>
    tpu.vector_store %arg4[%c0_55, %c0_56, %c0_57, %c0_58], %64 {strides = array<i32>} : memref<1x16x16x32xbf16, #tpu.memory_space<vmem>>, vector<1x16x16x32xbf16>,
    return
  }
  func.func @transform_0(%arg0: i32) -> (i32, i32, i32, i32) {
    %c0_i32 = arith.constant 0 : i32
    %c0_i32_0 = arith.constant 0 : i32
    %c0_i32_1 = arith.constant 0 : i32
    %c0_i32_2 = arith.constant 0 : i32
    return %arg0, %c0_i32, %c0_i32_0, %c0_i32_1 : i32, i32, i32, i32
  }
  func.func @transform_1(%arg0: i32) -> (i32, i32) {
    %c0_i32 = arith.constant 0 : i32
    %c0_i32_0 = arith.constant 0 : i32
    %c0_i32_1 = arith.constant 0 : i32
    return %c0_i32, %c0_i32_0 : i32, i32
  }
  func.func @transform_2(%arg0: i32) -> (i32, i32) {
    %c0_i32 = arith.constant 0 : i32
    %c0_i32_0 = arith.constant 0 : i32
    %c0_i32_1 = arith.constant 0 : i32
    return %c0_i32, %c0_i32_0 : i32, i32
  }
  func.func @transform_3(%arg0: i32) -> (i32, i32, i32, i32) {
    %c0_i32 = arith.constant 0 : i32
    %c0_i32_0 = arith.constant 0 : i32
    %c0_i32_1 = arith.constant 0 : i32
    %c0_i32_2 = arith.constant 0 : i32
    return %arg0, %c0_i32, %c0_i32_0, %c0_i32_1 : i32, i32, i32, i32
  }
}

module attributes {stable_mosaic.version = 11 : i64} {
  func.func @_mm_bias_res_relu_kernel(%arg0: i32, %arg1: memref<256x32xbf16, #tpu.memory_space<vmem>>, %arg2: memref<32x128xbf16, #tpu.memory_space<vmem>>, %arg3: memref<1x128xf32, #tpu.memory_space<vmem>>, %arg4: memref<256x128xf32, #tpu.memory_space<vmem>>, %arg5: memref<256x128xf32, #tpu.memory_space<vmem>>) attributes {dimension_semantics = [#tpu.dimension_semantics<parallel>], iteration_bounds = array<i64: 2>, scalar_prefetch = 0 : i64, scratch_operands = 0 : i64, tpu.core_type = #tpu.core_type<tc>, window_params = [{transform_indices = @transform_0, window_bounds = array<i64: 256, 32>}, {pipeline_mode = #tpu.pipeline_mode<synchronous>, transform_indices = @transform_1, window_bounds = array<i64: 32, 128>}, {pipeline_mode = #tpu.pipeline_mode<synchronous>, transform_indices = @transform_2, window_bounds = array<i64: 1, 128>}, {transform_indices = @transform_3, window_bounds = array<i64: 256, 128>}, {transform_indices = @transform_4, window_bounds = array<i64: 256, 128>}]} {
    %c0 = arith.constant 0 : index
    %c0_0 = arith.constant 0 : index
    %0 = vector.load %arg1[%c0, %c0_0] : memref<256x32xbf16, #tpu.memory_space<vmem>>, vector<256x32xbf16>
    %c0_1 = arith.constant 0 : index
    %c0_2 = arith.constant 0 : index
    %1 = vector.load %arg2[%c0_1, %c0_2] : memref<32x128xbf16, #tpu.memory_space<vmem>>, vector<32x128xbf16>
    %cst = arith.constant dense<0.000000e+00> : vector<256x128xf32>
    %2 = tpu.matmul %0, %1, %cst {dimension_numbers = #tpu.dot_dimension_numbers<[1], [0], [0], [1], [0, 0, 1, 1], [], []>} : vector<256x32xbf16>, vector<32x128xbf16>, vector<256x128xf32> -> vector<256x128xf32>
    %c0_3 = arith.constant 0 : index
    %c0_4 = arith.constant 0 : index
    %3 = vector.load %arg3[%c0_3, %c0_4] : memref<1x128xf32, #tpu.memory_space<vmem>>, vector<1x128xf32>
    %4 = vector.broadcast %3 : vector<1x128xf32> to vector<256x128xf32>
    %5 = arith.addf %2, %4 : vector<256x128xf32>
    %c0_5 = arith.constant 0 : index
    %c0_6 = arith.constant 0 : index
    %6 = vector.load %arg4[%c0_5, %c0_6] : memref<256x128xf32, #tpu.memory_space<vmem>>, vector<256x128xf32>
    %7 = arith.addf %5, %6 : vector<256x128xf32>
    %cst_7 = arith.constant 0.000000e+00 : f32
    %8 = vector.broadcast %cst_7 : f32 to vector<256x128xf32>
    %9 = arith.maximumf %7, %8 : vector<256x128xf32>
    %c0_8 = arith.constant 0 : index
    %c0_9 = arith.constant 0 : index
    %10 = vector.load %arg5[%c0_8, %c0_9] : memref<256x128xf32, #tpu.memory_space<vmem>>, vector<256x128xf32>
    tpu.vector_store %arg5[%c0_8, %c0_9], %9 {strides = array<i32>} : memref<256x128xf32, #tpu.memory_space<vmem>>, vector<256x128xf32>,
    return
  }
  func.func @transform_0(%arg0: i32) -> (i32, i32) {
    %c0_i32 = arith.constant 0 : i32
    %c0_i32_0 = arith.constant 0 : i32
    return %arg0, %c0_i32 : i32, i32
  }
  func.func @transform_1(%arg0: i32) -> (i32, i32) {
    %c0_i32 = arith.constant 0 : i32
    %c0_i32_0 = arith.constant 0 : i32
    %c0_i32_1 = arith.constant 0 : i32
    return %c0_i32, %c0_i32_0 : i32, i32
  }
  func.func @transform_2(%arg0: i32) -> (i32, i32) {
    %c0_i32 = arith.constant 0 : i32
    %c0_i32_0 = arith.constant 0 : i32
    %c0_i32_1 = arith.constant 0 : i32
    return %c0_i32, %c0_i32_0 : i32, i32
  }
  func.func @transform_3(%arg0: i32) -> (i32, i32) {
    %c0_i32 = arith.constant 0 : i32
    %c0_i32_0 = arith.constant 0 : i32
    return %arg0, %c0_i32 : i32, i32
  }
  func.func @transform_4(%arg0: i32) -> (i32, i32) {
    %c0_i32 = arith.constant 0 : i32
    %c0_i32_0 = arith.constant 0 : i32
    return %arg0, %c0_i32 : i32, i32
  }
}

module attributes {stable_mosaic.version = 11 : i64} {
  func.func @_mm_bias_act_kernel(%arg0: i32, %arg1: memref<256x64xbf16, #tpu.memory_space<vmem>>, %arg2: memref<64x128xbf16, #tpu.memory_space<vmem>>, %arg3: memref<1x128xf32, #tpu.memory_space<vmem>>, %arg4: memref<256x128xf32, #tpu.memory_space<vmem>>) attributes {dimension_semantics = [#tpu.dimension_semantics<parallel>], iteration_bounds = array<i64: 2>, scalar_prefetch = 0 : i64, scratch_operands = 0 : i64, tpu.core_type = #tpu.core_type<tc>, window_params = [{transform_indices = @transform_0, window_bounds = array<i64: 256, 64>}, {pipeline_mode = #tpu.pipeline_mode<synchronous>, transform_indices = @transform_1, window_bounds = array<i64: 64, 128>}, {pipeline_mode = #tpu.pipeline_mode<synchronous>, transform_indices = @transform_2, window_bounds = array<i64: 1, 128>}, {transform_indices = @transform_3, window_bounds = array<i64: 256, 128>}]} {
    %c0 = arith.constant 0 : index
    %c0_0 = arith.constant 0 : index
    %0 = vector.load %arg1[%c0, %c0_0] : memref<256x64xbf16, #tpu.memory_space<vmem>>, vector<256x64xbf16>
    %c0_1 = arith.constant 0 : index
    %c0_2 = arith.constant 0 : index
    %1 = vector.load %arg2[%c0_1, %c0_2] : memref<64x128xbf16, #tpu.memory_space<vmem>>, vector<64x128xbf16>
    %cst = arith.constant dense<0.000000e+00> : vector<256x128xf32>
    %2 = tpu.matmul %0, %1, %cst {dimension_numbers = #tpu.dot_dimension_numbers<[1], [0], [0], [1], [0, 0, 1, 1], [], []>} : vector<256x64xbf16>, vector<64x128xbf16>, vector<256x128xf32> -> vector<256x128xf32>
    %c0_3 = arith.constant 0 : index
    %c0_4 = arith.constant 0 : index
    %3 = vector.load %arg3[%c0_3, %c0_4] : memref<1x128xf32, #tpu.memory_space<vmem>>, vector<1x128xf32>
    %4 = vector.broadcast %3 : vector<1x128xf32> to vector<256x128xf32>
    %5 = arith.addf %2, %4 : vector<256x128xf32>
    %c0_5 = arith.constant 0 : index
    %c0_6 = arith.constant 0 : index
    %6 = vector.load %arg4[%c0_5, %c0_6] : memref<256x128xf32, #tpu.memory_space<vmem>>, vector<256x128xf32>
    tpu.vector_store %arg4[%c0_5, %c0_6], %5 {strides = array<i32>} : memref<256x128xf32, #tpu.memory_space<vmem>>, vector<256x128xf32>,
    return
  }
  func.func @transform_0(%arg0: i32) -> (i32, i32) {
    %c0_i32 = arith.constant 0 : i32
    %c0_i32_0 = arith.constant 0 : i32
    return %arg0, %c0_i32 : i32, i32
  }
  func.func @transform_1(%arg0: i32) -> (i32, i32) {
    %c0_i32 = arith.constant 0 : i32
    %c0_i32_0 = arith.constant 0 : i32
    %c0_i32_1 = arith.constant 0 : i32
    return %c0_i32, %c0_i32_0 : i32, i32
  }
  func.func @transform_2(%arg0: i32) -> (i32, i32) {
    %c0_i32 = arith.constant 0 : i32
    %c0_i32_0 = arith.constant 0 : i32
    %c0_i32_1 = arith.constant 0 : i32
    return %c0_i32, %c0_i32_0 : i32, i32
  }
  func.func @transform_3(%arg0: i32) -> (i32, i32) {
    %c0_i32 = arith.constant 0 : i32
    %c0_i32_0 = arith.constant 0 : i32
    return %arg0, %c0_i32 : i32, i32
  }
}

</mosaic_0001>

<bundles_post_ra>
// kernel: run.4
= control target key start
LH: loop header
LB: loop body
LE: loop exit
PB: predicated region body
PF: predicated region fallthrough
CT: control target
= control target key end

     0   :  { %s790_s12 = smov 0   ;;  %s963_s0 = inlined_call_operand.vmem [shape: bf16[512,64], index: 0, kind: input, shape index: {}]   ;;  %s964_s1 = inlined_call_operand.vmem [shape: bf16[64,32], index: 1, kind: input, shape index: {}]   ;;  %s965_s2 = inlined_call_operand.vmem [shape: f32[1,32], index: 2, kind: input, shape index: {}]   ;;  %s966_s3 = inlined_call_operand.vmem [shape: bf16[512,32], index: 3, kind: output, shape index: {}]  }
   0x1 LB: > { %s614_s13 = sadd.s32 4294967295, %s768_s12   ;;  %p618_p0 = scmp.ge.s32.totalorder %s768_s12, 1  ;;  %s768_s12 = sphi %s790_s12, %s13_s12  }
   0x2   : > { %p138_p1 = scmp.lt.s32.totalorder %s768_s12, 3 }
   0x4   : > { %p139_p2 = pnand %p618_p0, %p138_p1 }
   0x5   : > { %s619_s16 = sshll.u32 (!%p139_p2), %s614_s13, 5 }
   0x6   : > { %142 = sbr.rel (%p139_p2) target bundleno = 224 (0xe0), region = 32  ;;  %p163_p3 = scmp.lt.s32.totalorder (!%p139_p2), %s619_s16, 63 }
   0xb   : > { %v740_v0 = vld [vmem:[%s964_s1 + $0x18] sm:$0xff]  ;;  %v739_v1 = vld [vmem:[%s964_s1 + $0x10] sm:$0xff]  ;;  %s968_s16 = smov (!%p163_p3, %s619_s16), 63  ;;  %v738_v2 = vld [vmem:[%s964_s1 + $0x8] sm:$0xff]  ;;  %vm323_vm0 = vcmask 523264   ;;  %vm525_vm1 = vcmask 257024  }
   0xc   : > { %376 = vmatpush.bf16.msra.mxu0 %v740_v0  ;;  %741 = vmatpush.bf16.msra.mxu1 %v740_v0  ;;  %s620_s21 = sshll.u32 %s968_s16, 2  ;;  %v737_v3 = vld [vmem:[%s964_s1] sm:$0xff] }
   0xd   : > { %742 = vmatpush.bf16.msra.mxu2 %v740_v0  ;;  %743 = vmatpush.bf16.msra.mxu3 %v740_v0  ;;  %s818_s26 = scalar_lea.vmem %s963_s0, %s620_s21  ;;  %v855_v20 = vld [vmem:[%s965_s2] ss:$0 sm:$0xff]  ;;  %s864_s4 = scalar_lea.vmem %s966_s3, %s620_s21 }
   0xe   : > { %v721_v4 = vld [vmem:[%s818_s26] sm:$0xff]  ;;  %v722_v8 = vld [vmem:[%s818_s26 + $0x8] sm:$0xff]  ;;  %v723_v12 = vld [vmem:[%s818_s26 + $0x10] sm:$0xff] }
   0xf   : > { %v725_v5 = vld [vmem:[%s818_s26 + $0x20] sm:$0xff]  ;;  %v726_v9 = vld [vmem:[%s818_s26 + $0x28] sm:$0xff]  ;;  %v727_v13 = vld [vmem:[%s818_s26 + $0x30] sm:$0xff] }
  0x10   : > { %377 = vmatpush.bf16.msra.mxu0 %v739_v1  ;;  %744 = vmatpush.bf16.msra.mxu1 %v739_v1  ;;  %v729_v6 = vld [vmem:[%s818_s26 + $0x40] sm:$0xff]  ;;  %v730_v10 = vld [vmem:[%s818_s26 + $0x48] sm:$0xff]  ;;  %v731_v14 = vld [vmem:[%s818_s26 + $0x50] sm:$0xff] }
  0x11   : > { %745 = vmatpush.bf16.msra.mxu2 %v739_v1  ;;  %746 = vmatpush.bf16.msra.mxu3 %v739_v1  ;;  %v733_v7 = vld [vmem:[%s818_s26 + $0x60] sm:$0xff]  ;;  %v734_v11 = vld [vmem:[%s818_s26 + $0x68] sm:$0xff]  ;;  %v735_v15 = vld [vmem:[%s818_s26 + $0x70] sm:$0xff] }
  0x12   : > { %v724_v16 = vld [vmem:[%s818_s26 + $0x18] sm:$0xff] }
  0x13   : > { %v728_v17 = vld [vmem:[%s818_s26 + $0x38] sm:$0xff] }
  0x14   : > { %378 = vmatpush.bf16.msra.mxu0 %v738_v2  ;;  %747 = vmatpush.bf16.msra.mxu1 %v738_v2  ;;  %v732_v18 = vld [vmem:[%s818_s26 + $0x58] sm:$0xff] }
  0x15   : > { %748 = vmatpush.bf16.msra.mxu2 %v738_v2  ;;  %749 = vmatpush.bf16.msra.mxu3 %v738_v2  ;;  %v736_v19 = vld [vmem:[%s818_s26 + $0x78] sm:$0xff] }
  0x18   : > { %379 = vmatpush.bf16.msra.mxu0 %v737_v3  ;;  %750 = vmatpush.bf16.msra.mxu1 %v737_v3 }
  0x19   : > { %751 = vmatpush.bf16.msra.mxu2 %v737_v3  ;;  %752 = vmatpush.bf16.msra.mxu3 %v737_v3 }
  0x1b   : > { %703 = vmatmul.msk.bf16.vlgmr.msra.gmra.mxu0 %vm323_vm0, %v721_v4  ;;  %707 = vmatmul.msk.bf16.vlgmr.msra.gmra.mxu1 %vm323_vm0, %v725_v5 }
  0x1c   : > { %711 = vmatmul.msk.bf16.vlgmr.msra.gmra.mxu2 %vm323_vm0, %v729_v6  ;;  %715 = vmatmul.msk.bf16.vlgmr.msra.gmra.mxu3 %vm323_vm0, %v733_v7 }
  0x2b   : > { %704 = vmatmul.msk.bf16.gmra.mxu0 %vm323_vm0, %v722_v8  ;;  %708 = vmatmul.msk.bf16.gmra.mxu1 %vm323_vm0, %v726_v9 }
  0x2c   : > { %712 = vmatmul.msk.bf16.gmra.mxu2 %vm323_vm0, %v730_v10  ;;  %716 = vmatmul.msk.bf16.gmra.mxu3 %vm323_vm0, %v734_v11 }
  0x3b   : > { %705 = vmatmul.msk.bf16.gmra.mxu0 %vm323_vm0, %v723_v12  ;;  %709 = vmatmul.msk.bf16.gmra.mxu1 %vm323_vm0, %v727_v13 }
  0x3c   : > { %713 = vmatmul.msk.bf16.gmra.mxu2 %vm323_vm0, %v731_v14  ;;  %717 = vmatmul.msk.bf16.gmra.mxu3 %vm323_vm0, %v735_v15 }
  0x4b   : > { %706 = vmatmul.msk.bf16.gmra.mxu0 %vm323_vm0, %v724_v16  ;;  %710 = vmatmul.msk.bf16.gmra.mxu1 %vm323_vm0, %v728_v17 }
  0x4c   : > { %714 = vmatmul.msk.bf16.gmra.mxu2 %vm323_vm0, %v732_v18  ;;  %718 = vmatmul.msk.bf16.gmra.mxu3 %vm323_vm0, %v736_v19 }
  0x98   : > { %v381_v21 = vpop.f32.mrf.mxu0  ;;  %v401_v22 = vpop.f32.mrf.mxu1 }
  0x99   : > { %v382_v23 = vadd.f32 %v855_v20, %v381_v21  ;;  %v402_v24 = vadd.f32 %v855_v20, %v401_v22 }
  0x9b   : > { %v461_v25 = vmax.f32 %v382_v23, 0.0  ;;  %v469_v26 = vmax.f32 %v402_v24, 0.0 }
  0x9d   : > { %v493_v27 = vpack.c.bf16 %v461_v25, %v461_v25  ;;  %v501_v28 = vpack.c.bf16 %v469_v26, %v469_v26 }
  0x9f   : > { %526 = vst.msk [vmem:[%s864_s4] sm:$0xf] %vm525_vm1, %v493_v27  ;;  %v421_v29 = vpop.f32.mrf.mxu2  ;;  %v441_v30 = vpop.f32.mrf.mxu3 }
  0xa0   : > { %534 = vst.msk [vmem:[%s864_s4 + $0x20] sm:$0xf] %vm525_vm1, %v501_v28  ;;  %v422_v31 = vadd.f32 %v855_v20, %v421_v29  ;;  %v442_v32 = vadd.f32 %v855_v20, %v441_v30  ;;  %v383_v33 = vpop.f32.mrf.mxu0  ;;  %v403_v34 = vpop.f32.mrf.mxu1 }
  0xa1   : > { %v384_v35 = vadd.f32 %v855_v20, %v383_v33  ;;  %v404_v36 = vadd.f32 %v855_v20, %v403_v34 }
  0xa2   : > { %v477_v37 = vmax.f32 %v422_v31, 0.0  ;;  %v485_v38 = vmax.f32 %v442_v32, 0.0 }
  0xa3   : > { %v462_v39 = vmax.f32 %v384_v35, 0.0  ;;  %v470_v40 = vmax.f32 %v404_v36, 0.0 }
  0xa4   : > { %v509_v41 = vpack.c.bf16 %v477_v37, %v477_v37  ;;  %v517_v42 = vpack.c.bf16 %v485_v38, %v485_v38 }
  0xa5   : > { %v494_v43 = vpack.c.bf16 %v462_v39, %v462_v39  ;;  %v502_v44 = vpack.c.bf16 %v470_v40, %v470_v40 }
  0xa6   : > { %542 = vst.msk [vmem:[%s864_s4 + $0x40] sm:$0xf] %vm525_vm1, %v509_v41 }
  0xa7   : > { %550 = vst.msk [vmem:[%s864_s4 + $0x60] sm:$0xf] %vm525_vm1, %v517_v42  ;;  %v423_v45 = vpop.f32.mrf.mxu2  ;;  %v443_v46 = vpop.f32.mrf.mxu3 }
  0xa8   : > { %527 = vst.msk [vmem:[%s864_s4 + $0x4] sm:$0xf] %vm525_vm1, %v494_v43  ;;  %v424_v47 = vadd.f32 %v855_v20, %v423_v45  ;;  %v444_v48 = vadd.f32 %v855_v20, %v443_v46  ;;  %v386_v49 = vpop.f32.mrf.mxu0  ;;  %v406_v50 = vpop.f32.mrf.mxu1 }
  0xa9   : > { %535 = vst.msk [vmem:[%s864_s4 + $0x24] sm:$0xf] %vm525_vm1, %v502_v44  ;;  %v387_v51 = vadd.f32 %v855_v20, %v386_v49  ;;  %v407_v52 = vadd.f32 %v855_v20, %v406_v50 }
  0xaa   : > { %v478_v53 = vmax.f32 %v424_v47, 0.0  ;;  %v486_v54 = vmax.f32 %v444_v48, 0.0 }
  0xab   : > { %v463_v55 = vmax.f32 %v387_v51, 0.0  ;;  %v471_v56 = vmax.f32 %v407_v52, 0.0 }
  0xac   : > { %v510_v57 = vpack.c.bf16 %v478_v53, %v478_v53  ;;  %v518_v58 = vpack.c.bf16 %v486_v54, %v486_v54 }
  0xad   : > { %v495_v59 = vpack.c.bf16 %v463_v55, %v463_v55  ;;  %v503_v60 = vpack.c.bf16 %v471_v56, %v471_v56 }
  0xae   : > { %543 = vst.msk [vmem:[%s864_s4 + $0x44] sm:$0xf] %vm525_vm1, %v510_v57 }
  0xaf   : > { %551 = vst.msk [vmem:[%s864_s4 + $0x64] sm:$0xf] %vm525_vm1, %v518_v58  ;;  %v426_v61 = vpop.f32.mrf.mxu2  ;;  %v446_v62 = vpop.f32.mrf.mxu3 }
  0xb0   : > { %528 = vst.msk [vmem:[%s864_s4 + $0x8] sm:$0xf] %vm525_vm1, %v495_v59  ;;  %v427_v63 = vadd.f32 %v855_v20, %v426_v61  ;;  %v447_v0 = vadd.f32 %v855_v20, %v446_v62  ;;  %v388_v1 = vpop.f32.mrf.mxu0  ;;  %v408_v2 = vpop.f32.mrf.mxu1 }
  0xb1   : > { %536 = vst.msk [vmem:[%s864_s4 + $0x28] sm:$0xf] %vm525_vm1, %v503_v60  ;;  %v389_v3 = vadd.f32 %v855_v20, %v388_v1  ;;  %v409_v4 = vadd.f32 %v855_v20, %v408_v2 }
  0xb2   : > { %v479_v5 = vmax.f32 %v427_v63, 0.0  ;;  %v487_v6 = vmax.f32 %v447_v0, 0.0 }
  0xb3   : > { %v464_v7 = vmax.f32 %v389_v3, 0.0  ;;  %v472_v8 = vmax.f32 %v409_v4, 0.0 }
  0xb4   : > { %v511_v9 = vpack.c.bf16 %v479_v5, %v479_v5  ;;  %v519_v10 = vpack.c.bf16 %v487_v6, %v487_v6 }
  0xb5   : > { %v496_v11 = vpack.c.bf16 %v464_v7, %v464_v7  ;;  %v504_v12 = vpack.c.bf16 %v472_v8, %v472_v8 }
  0xb6   : > { %544 = vst.msk [vmem:[%s864_s4 + $0x48] sm:$0xf] %vm525_vm1, %v511_v9 }
  0xb7   : > { %552 = vst.msk [vmem:[%s864_s4 + $0x68] sm:$0xf] %vm525_vm1, %v519_v10  ;;  %v428_v13 = vpop.f32.mrf.mxu2  ;;  %v448_v14 = vpop.f32.mrf.mxu3 }
  0xb8   : > { %529 = vst.msk [vmem:[%s864_s4 + $0xc] sm:$0xf] %vm525_vm1, %v496_v11  ;;  %v429_v15 = vadd.f32 %v855_v20, %v428_v13  ;;  %v449_v16 = vadd.f32 %v855_v20, %v448_v14  ;;  %v391_v17 = vpop.f32.mrf.mxu0  ;;  %v411_v18 = vpop.f32.mrf.mxu1 }
  0xb9   : > { %537 = vst.msk [vmem:[%s864_s4 + $0x2c] sm:$0xf] %vm525_vm1, %v504_v12  ;;  %v392_v19 = vadd.f32 %v855_v20, %v391_v17  ;;  %v412_v21 = vadd.f32 %v855_v20, %v411_v18 }
  0xba   : > { %v480_v22 = vmax.f32 %v429_v15, 0.0  ;;  %v488_v23 = vmax.f32 %v449_v16, 0.0 }
  0xbb   : > { %v465_v24 = vmax.f32 %v392_v19, 0.0  ;;  %v473_v25 = vmax.f32 %v412_v21, 0.0 }
  0xbc   : > { %v512_v26 = vpack.c.bf16 %v480_v22, %v480_v22  ;;  %v520_v27 = vpack.c.bf16 %v488_v23, %v488_v23 }
  0xbd   : > { %v497_v28 = vpack.c.bf16 %v465_v24, %v465_v24  ;;  %v505_v29 = vpack.c.bf16 %v473_v25, %v473_v25 }
  0xbe   : > { %545 = vst.msk [vmem:[%s864_s4 + $0x4c] sm:$0xf] %vm525_vm1, %v512_v26 }
  0xbf   : > { %553 = vst.msk [vmem:[%s864_s4 + $0x6c] sm:$0xf] %vm525_vm1, %v520_v27  ;;  %v431_v30 = vpop.f32.mrf.mxu2  ;;  %v451_v31 = vpop.f32.mrf.mxu3 }
  0xc0   : > { %530 = vst.msk [vmem:[%s864_s4 + $0x10] sm:$0xf] %vm525_vm1, %v497_v28  ;;  %v432_v32 = vadd.f32 %v855_v20, %v431_v30  ;;  %v452_v33 = vadd.f32 %v855_v20, %v451_v31  ;;  %v393_v34 = vpop.f32.mrf.mxu0  ;;  %v413_v35 = vpop.f32.mrf.mxu1 }
  0xc1   : > { %538 = vst.msk [vmem:[%s864_s4 + $0x30] sm:$0xf] %vm525_vm1, %v505_v29  ;;  %v394_v36 = vadd.f32 %v855_v20, %v393_v34  ;;  %v414_v37 = vadd.f32 %v855_v20, %v413_v35 }
  0xc2   : > { %v481_v38 = vmax.f32 %v432_v32, 0.0  ;;  %v489_v39 = vmax.f32 %v452_v33, 0.0 }
  0xc3   : > { %v466_v40 = vmax.f32 %v394_v36, 0.0  ;;  %v474_v41 = vmax.f32 %v414_v37, 0.0 }
  0xc4   : > { %v513_v42 = vpack.c.bf16 %v481_v38, %v481_v38  ;;  %v521_v43 = vpack.c.bf16 %v489_v39, %v489_v39 }
  0xc5   : > { %v498_v44 = vpack.c.bf16 %v466_v40, %v466_v40  ;;  %v506_v45 = vpack.c.bf16 %v474_v41, %v474_v41 }
  0xc6   : > { %546 = vst.msk [vmem:[%s864_s4 + $0x50] sm:$0xf] %vm525_vm1, %v513_v42 }
  0xc7   : > { %554 = vst.msk [vmem:[%s864_s4 + $0x70] sm:$0xf] %vm525_vm1, %v521_v43  ;;  %v433_v46 = vpop.f32.mrf.mxu2  ;;  %v453_v47 = vpop.f32.mrf.mxu3 }
  0xc8   : > { %531 = vst.msk [vmem:[%s864_s4 + $0x14] sm:$0xf] %vm525_vm1, %v498_v44  ;;  %v434_v48 = vadd.f32 %v855_v20, %v433_v46  ;;  %v454_v49 = vadd.f32 %v855_v20, %v453_v47  ;;  %v396_v50 = vpop.f32.mrf.mxu0  ;;  %v416_v51 = vpop.f32.mrf.mxu1 }
  0xc9   : > { %539 = vst.msk [vmem:[%s864_s4 + $0x34] sm:$0xf] %vm525_vm1, %v506_v45  ;;  %v397_v52 = vadd.f32 %v855_v20, %v396_v50  ;;  %v417_v53 = vadd.f32 %v855_v20, %v416_v51 }
  0xca   : > { %v482_v54 = vmax.f32 %v434_v48, 0.0  ;;  %v490_v55 = vmax.f32 %v454_v49, 0.0 }
  0xcb   : > { %v467_v56 = vmax.f32 %v397_v52, 0.0  ;;  %v475_v57 = vmax.f32 %v417_v53, 0.0 }
  0xcc   : > { %v514_v58 = vpack.c.bf16 %v482_v54, %v482_v54  ;;  %v522_v59 = vpack.c.bf16 %v490_v55, %v490_v55 }
  0xcd   : > { %v499_v60 = vpack.c.bf16 %v467_v56, %v467_v56  ;;  %v507_v61 = vpack.c.bf16 %v475_v57, %v475_v57 }
  0xce   : > { %547 = vst.msk [vmem:[%s864_s4 + $0x54] sm:$0xf] %vm525_vm1, %v514_v58 }
  0xcf   : > { %555 = vst.msk [vmem:[%s864_s4 + $0x74] sm:$0xf] %vm525_vm1, %v522_v59  ;;  %v436_v62 = vpop.f32.mrf.mxu2  ;;  %v456_v63 = vpop.f32.mrf.mxu3 }
  0xd0   : > { %532 = vst.msk [vmem:[%s864_s4 + $0x18] sm:$0xf] %vm525_vm1, %v499_v60  ;;  %v437_v0 = vadd.f32 %v855_v20, %v436_v62  ;;  %v457_v1 = vadd.f32 %v855_v20, %v456_v63  ;;  %v398_v2 = vpop.f32.mrf.mxu0  ;;  %v418_v3 = vpop.f32.mrf.mxu1 }
  0xd1   : > { %540 = vst.msk [vmem:[%s864_s4 + $0x38] sm:$0xf] %vm525_vm1, %v507_v61  ;;  %v399_v4 = vadd.f32 %v855_v20, %v398_v2  ;;  %v419_v5 = vadd.f32 %v855_v20, %v418_v3 }
  0xd2   : > { %v483_v6 = vmax.f32 %v437_v0, 0.0  ;;  %v491_v7 = vmax.f32 %v457_v1, 0.0 }
  0xd3   : > { %v468_v8 = vmax.f32 %v399_v4, 0.0  ;;  %v476_v9 = vmax.f32 %v419_v5, 0.0 }
  0xd4   : > { %v515_v10 = vpack.c.bf16 %v483_v6, %v483_v6  ;;  %v523_v11 = vpack.c.bf16 %v491_v7, %v491_v7 }
  0xd5   : > { %v500_v12 = vpack.c.bf16 %v468_v8, %v468_v8  ;;  %v508_v13 = vpack.c.bf16 %v476_v9, %v476_v9 }
  0xd6   : > { %548 = vst.msk [vmem:[%s864_s4 + $0x58] sm:$0xf] %vm525_vm1, %v515_v10 }
  0xd7   : > { %556 = vst.msk [vmem:[%s864_s4 + $0x78] sm:$0xf] %vm525_vm1, %v523_v11  ;;  %v438_v14 = vpop.f32.mrf.mxu2  ;;  %v458_v15 = vpop.f32.mrf.mxu3 }
  0xd8   : > { %533 = vst.msk [vmem:[%s864_s4 + $0x1c] sm:$0xf] %vm525_vm1, %v500_v12  ;;  %v439_v16 = vadd.f32 %v855_v20, %v438_v14  ;;  %v459_v17 = vadd.f32 %v855_v20, %v458_v15 }
  0xd9   : > { %541 = vst.msk [vmem:[%s864_s4 + $0x3c] sm:$0xf] %vm525_vm1, %v508_v13 }
  0xda   : > { %v484_v18 = vmax.f32 %v439_v16, 0.0  ;;  %v492_v19 = vmax.f32 %v459_v17, 0.0 }
  0xdc   : > { %v516_v21 = vpack.c.bf16 %v484_v18, %v484_v18  ;;  %v524_v22 = vpack.c.bf16 %v492_v19, %v492_v19 }
  0xde   : > { %549 = vst.msk [vmem:[%s864_s4 + $0x5c] sm:$0xf] %vm525_vm1, %v516_v21 }
  0xdf   : > { %557 = vst.msk [vmem:[%s864_s4 + $0x7c] sm:$0xf] %vm525_vm1, %v524_v22 }
  0xe0 PF: > { %s13_s12 = sadd.s32 1, %s768_s12  }
  0xe1   : > { %p10_p4 = scmp.ge.s32.totalorder %s13_s12, 4  }
  0xe3   :  { %12 = sbr.rel (!%p10_p4) target bundleno = 1 (0x1), region = 62 }

// kernel: run.7
= control target key start
LH: loop header
LB: loop body
LE: loop exit
PB: predicated region body
PF: predicated region fallthrough
CT: control target
= control target key end

     0   :  { %9 = vsyncpa [#allocation3], 0  ;;  %s1211_s0 = inlined_call_operand.vmem [shape: bf16[512,32], index: 0, kind: input, shape index: {}]   ;;  %s1212_s1 = inlined_call_operand.vmem [shape: bf16[32,128], index: 1, kind: input, shape index: {}]   ;;  %s1213_s2 = inlined_call_operand.vmem [shape: f32[1,128], index: 2, kind: input, shape index: {}]   ;;  %s1214_s3 = inlined_call_operand.vmem [shape: f32[512,128], index: 3, kind: input, shape index: {}]   ;;  %s1215_s4 = inlined_call_operand.hbm [shape: f32[512,128], index: 4, kind: output, shape index: {}]  }
   0x1   :  { %11 = vsyncpa [#allocation3 + $0x1], 0  ;;  %s970_s15 = smov 0   ;;  %s972_s16 = smov 0  }
   0x2   :  { %s974_s17 = smov 0   ;;  %s976_s18 = smov 0  }
   0x3 LB: > { %s991_s19 = sadd.s32 4294967295, %s941_s18   ;;  %s710_s20 = sadd.s32 4294967294, %s941_s18   ;;  %s941_s18 = sphi %s976_s18, %s1221_s18   ;;  %s937_s17 = sphi %s974_s17, %s1220_s17   ;;  %s933_s16 = sphi %s972_s16, %s1219_s16   ;;  %s929_s15 = sphi %s970_s15, %s1218_s15  }
   0x4   : > { %s995_s21 = sadd.s32 1, %s941_s18   ;;  %s118_s22 = sadd.s32 1, %s937_s17 }
   0x5   : > { %s115_s23 = ssub.s32 %s941_s18, %s995_s21  ;;  %p128_p0 = scmp.ne.s32.totalorder %s937_s17, %s933_s16 }
   0x6   : > { %p116_p1 = scmp.eq.s32.totalorder %s115_s23, 0  ;;  %p129_p2 = scmp.eq.s32.totalorder %s991_s19, 1 }
   0x7   : > { %p134_p3 = scmp.ne.s32.totalorder %s933_s16, %s929_s15  ;;  %p135_p4 = scmp.eq.s32.totalorder %s710_s20, 1 }
   0x8   : > { %s1006_s24 = scalar_select %p116_p1, %s937_s17, %s118_s22  }
   0x9   : > { %p1008_p5 = por %p129_p2, %p128_p0  ;;  %p1012_p6 = por %p135_p4, %p134_p3 }
   0xa   : > { %p713_p7 = scmp.ge.s32.totalorder %s941_s18, 1  ;;  %p177_p8 = scmp.lt.s32.totalorder %s941_s18, 3 }
   0xc   : > { %p178_p9 = pnand %p713_p7, %p177_p8 }
   0xd   : > { %s715_s29 = sshll.u32 (!%p178_p9), %s991_s19, 5  ;;  %s205_s22 = sand.u32 (!%p178_p9), 1, %s933_s16  }
   0xe   : > { %181 = sbr.rel (%p178_p9) target bundleno = 227 (0xe3), region = 36  ;;  %p209_p10 = scmp.lt.s32.totalorder (!%p178_p9), %s715_s29, 63 }
   0xf   : > { %s714_s23 = sshll.u32 (!%p178_p9), %s205_s22, 8  ;;  %s830_s28 = sshll.u32 (!%p178_p9), %s991_s19, 8 }
  0x10   : > { %s1083_s27 = scalar_lea.vmem (!%p178_p9), [#allocation2], %s714_s23  ;;  %s632_s5 = scalar_lea.hbm (!%p178_p9), %s1215_s4, %s830_s28 }
  0x11   : > { %s633_s19 = sshll.u32 (!%p178_p9), %s1083_s27, 4  ;;  %s621_s7 = scalar_lea.sflag (!%p178_p9), [#allocation3], %s205_s22  ;;  %s634_s19 = int_to_ptr.vmem [resolvable:$true] %s633_s19 }
  0x12   : > { %s899_s12 = scalar_lea.hbm (!%p178_p9), %s1215_s4, 512 }
  0x13   : > { %v829_v0 = vld [vmem:[%s1212_s1 + $0x8] sm:$0xff]  ;;  %v828_v1 = vld [vmem:[%s1212_s1] sm:$0xff]  ;;  %s1223_s29 = smov (!%p209_p10, %s715_s29), 63  ;;  %vm354_vm0 = vcmask 261120  }
  0x14   : > { %409 = vmatpush.bf16.msra.mxu0 %v829_v0  ;;  %831 = vmatpush.bf16.msra.mxu1 %v829_v0  ;;  %s716_s6 = sshll.u32 %s1223_s29, 2  ;;  %s718_s10 = sshll.u32 %s1223_s29, 3  ;;  %v1074_v18 = vld [vmem:[%s1213_s2] ss:$0 sm:$0xff] }
  0x15   : > { %832 = vmatpush.bf16.msra.mxu2 %v829_v0  ;;  %833 = vmatpush.bf16.msra.mxu3 %v829_v0  ;;  %s1031_s9 = scalar_lea.vmem %s1211_s0, %s716_s6  ;;  %s1069_s13 = scalar_lea.vmem %s1214_s3, %s718_s10 }
  0x16   : > { %v812_v2 = vld [vmem:[%s1031_s9] sm:$0xff]  ;;  %v813_v6 = vld [vmem:[%s1031_s9 + $0x8] sm:$0xff]  ;;  %v814_v10 = vld [vmem:[%s1031_s9 + $0x10] sm:$0xff]  ;;  %s635_s6 = sshll.u32 %s632_s5, 4  ;;  %s636_s6 = int_to_ptr.hbm [resolvable:$true] %s635_s6 }
  0x17   : > { %v816_v3 = vld [vmem:[%s1031_s9 + $0x20] sm:$0xff]  ;;  %v817_v7 = vld [vmem:[%s1031_s9 + $0x28] sm:$0xff]  ;;  %v818_v11 = vld [vmem:[%s1031_s9 + $0x30] sm:$0xff]  ;;  %s893_s8 = sshra.s32 %s636_s6, 4  ;;  %s894_s8 = int_to_ptr.hbm [resolvable:$true] %s893_s8 }
  0x18   : > { %410 = vmatpush.bf16.msra.mxu0 %v828_v1  ;;  %834 = vmatpush.bf16.msra.mxu1 %v828_v1  ;;  %v820_v4 = vld [vmem:[%s1031_s9 + $0x40] sm:$0xff]  ;;  %v821_v8 = vld [vmem:[%s1031_s9 + $0x48] sm:$0xff]  ;;  %v822_v12 = vld [vmem:[%s1031_s9 + $0x50] sm:$0xff]  ;;  %p900_p0 = scmp.lt.s32.totalorder %s894_s8, %s1215_s4 }
  0x19   : > { %835 = vmatpush.bf16.msra.mxu2 %v828_v1  ;;  %836 = vmatpush.bf16.msra.mxu3 %v828_v1  ;;  %v824_v5 = vld [vmem:[%s1031_s9 + $0x60] sm:$0xff]  ;;  %v825_v9 = vld [vmem:[%s1031_s9 + $0x68] sm:$0xff]  ;;  %v826_v13 = vld [vmem:[%s1031_s9 + $0x70] sm:$0xff] }
  0x1a   : > { %v815_v14 = vld [vmem:[%s1031_s9 + $0x18] sm:$0xff]  ;;  %v492_v20 = vld [vmem:[%s1069_s13] sm:$0xff]  ;;  %v493_v36 = vld [vmem:[%s1069_s13 + $0x8] sm:$0xff] }
  0x1b   : > { %791 = vmatmul.msk.bf16.vlgmr.msra.gmra.mxu0 %vm354_vm0, %v812_v2  ;;  %795 = vmatmul.msk.bf16.vlgmr.msra.gmra.mxu1 %vm354_vm0, %v816_v3  ;;  %v819_v15 = vld [vmem:[%s1031_s9 + $0x38] sm:$0xff]  ;;  %v500_v22 = vld [vmem:[%s1069_s13 + $0x40] sm:$0xff]  ;;  %v501_v38 = vld [vmem:[%s1069_s13 + $0x48] sm:$0xff] }
  0x1c   : > { %799 = vmatmul.msk.bf16.vlgmr.msra.gmra.mxu2 %vm354_vm0, %v820_v4  ;;  %803 = vmatmul.msk.bf16.vlgmr.msra.gmra.mxu3 %vm354_vm0, %v824_v5  ;;  %v823_v16 = vld [vmem:[%s1031_s9 + $0x58] sm:$0xff]  ;;  %v508_v30 = vld [vmem:[%s1069_s13 + $0x80] sm:$0xff]  ;;  %v509_v50 = vld [vmem:[%s1069_s13 + $0x88] sm:$0xff] }
  0x1d   : > { %v827_v17 = vld [vmem:[%s1031_s9 + $0x78] sm:$0xff]  ;;  %v516_v32 = vld [vmem:[%s1069_s13 + $0xc0] sm:$0xff]  ;;  %v517_v52 = vld [vmem:[%s1069_s13 + $0xc8] sm:$0xff]  ;;  %s895_s9 = scalar_lea.hbm %s894_s8, 256 }
  0x1e   : > { %v494_v56 = vld [vmem:[%s1069_s13 + $0x10] sm:$0xff]  ;;  %p896_p11 = scmp.ne.s32.totalorder %s894_s8, %s895_s9  ;;  %p901_p1 = scmp.lt.s32.totalorder %s899_s12, %s895_s9 }
  0x1f   : > { %v502_v58 = vld [vmem:[%s1069_s13 + $0x50] sm:$0xff] }
  0x20   : > { %p897_p12 = pnand %p896_p11, %p1008_p5  ;;  %p902_p2 = por %p901_p1, %p900_p0 }
  0x22   : > { %p898_p13 = pneg %p897_p12 }
  0x24   : > { %p903_p3 = pnand %p902_p2, %p898_p13 }
  0x2b   : > { %792 = vmatmul.msk.bf16.gmra.mxu0 %vm354_vm0, %v813_v6  ;;  %796 = vmatmul.msk.bf16.gmra.mxu1 %vm354_vm0, %v817_v7  ;;  %v510_v6 = vld [vmem:[%s1069_s13 + $0x90] sm:$0xff] }
  0x2c   : > { %800 = vmatmul.msk.bf16.gmra.mxu2 %vm354_vm0, %v821_v8  ;;  %804 = vmatmul.msk.bf16.gmra.mxu3 %vm354_vm0, %v825_v9  ;;  %v518_v8 = vld [vmem:[%s1069_s13 + $0xd0] sm:$0xff] }
  0x3b   : > { %793 = vmatmul.msk.bf16.gmra.mxu0 %vm354_vm0, %v814_v10  ;;  %797 = vmatmul.msk.bf16.gmra.mxu1 %vm354_vm0, %v818_v11 }
  0x3c   : > { %801 = vmatmul.msk.bf16.gmra.mxu2 %vm354_vm0, %v822_v12  ;;  %805 = vmatmul.msk.bf16.gmra.mxu3 %vm354_vm0, %v826_v13  ;;  %v495_v12 = vld [vmem:[%s1069_s13 + $0x18] sm:$0xff] }
  0x4b   : > { %794 = vmatmul.msk.bf16.gmra.mxu0 %vm354_vm0, %v815_v14  ;;  %798 = vmatmul.msk.bf16.gmra.mxu1 %vm354_vm0, %v819_v15  ;;  %v503_v14 = vld [vmem:[%s1069_s13 + $0x58] sm:$0xff] }
  0x4c   : > { %802 = vmatmul.msk.bf16.gmra.mxu2 %vm354_vm0, %v823_v16  ;;  %806 = vmatmul.msk.bf16.gmra.mxu3 %vm354_vm0, %v827_v17 }
  0x98   : > { %v412_v19 = vpop.f32.mrf.mxu0  ;;  %v432_v21 = vpop.f32.mrf.mxu1 }
  0x99   : > { %v413_v23 = vadd.f32 %v1074_v18, %v412_v19  ;;  %v433_v24 = vadd.f32 %v1074_v18, %v432_v21 }
  0x9b   : > { %v524_v25 = vadd.f32 %v492_v20, %v413_v23  ;;  %v532_v26 = vadd.f32 %v500_v22, %v433_v24 }
  0x9d   : > { %v556_v27 = vmax.f32 %v524_v25, 0.0  ;;  %v564_v28 = vmax.f32 %v532_v26, 0.0 }
  0x9f   : > { %588 = vst [vmem:[%s1083_s27] sm:$0xff] %v556_v27  ;;  %v452_v29 = vpop.f32.mrf.mxu2  ;;  %v472_v31 = vpop.f32.mrf.mxu3  ;;  %v511_v27 = vld [vmem:[%s1069_s13 + $0x98] sm:$0xff] }
  0xa0   : > { %596 = vst [vmem:[%s1083_s27 + $0x40] sm:$0xff] %v564_v28  ;;  %v453_v33 = vadd.f32 %v1074_v18, %v452_v29  ;;  %v473_v34 = vadd.f32 %v1074_v18, %v472_v31  ;;  %v414_v35 = vpop.f32.mrf.mxu0  ;;  %v434_v37 = vpop.f32.mrf.mxu1  ;;  %v519_v29 = vld [vmem:[%s1069_s13 + $0xd8] sm:$0xff] }
  0xa1   : > { %v415_v39 = vadd.f32 %v1074_v18, %v414_v35  ;;  %v435_v40 = vadd.f32 %v1074_v18, %v434_v37  ;;  %v504_v35 = vld [vmem:[%s1069_s13 + $0x60] sm:$0xff] }
  0xa2   : > { %v540_v41 = vadd.f32 %v508_v30, %v453_v33  ;;  %v548_v42 = vadd.f32 %v516_v32, %v473_v34  ;;  %v496_v33 = vld [vmem:[%s1069_s13 + $0x20] sm:$0xff] }
  0xa3   : > { %v525_v43 = vadd.f32 %v493_v36, %v415_v39  ;;  %v533_v44 = vadd.f32 %v501_v38, %v435_v40 }
  0xa4   : > { %v572_v45 = vmax.f32 %v540_v41, 0.0  ;;  %v580_v46 = vmax.f32 %v548_v42, 0.0 }
  0xa5   : > { %v557_v47 = vmax.f32 %v525_v43, 0.0  ;;  %v565_v48 = vmax.f32 %v533_v44, 0.0 }
  0xa6   : > { %604 = vst [vmem:[%s1083_s27 + $0x80] sm:$0xff] %v572_v45 }
  0xa7   : > { %612 = vst [vmem:[%s1083_s27 + $0xc0] sm:$0xff] %v580_v46  ;;  %v454_v49 = vpop.f32.mrf.mxu2  ;;  %v474_v51 = vpop.f32.mrf.mxu3 }
  0xa8   : > { %589 = vst [vmem:[%s1083_s27 + $0x8] sm:$0xff] %v557_v47  ;;  %v455_v53 = vadd.f32 %v1074_v18, %v454_v49  ;;  %v475_v54 = vadd.f32 %v1074_v18, %v474_v51  ;;  %v417_v55 = vpop.f32.mrf.mxu0  ;;  %v437_v57 = vpop.f32.mrf.mxu1  ;;  %v512_v47 = vld [vmem:[%s1069_s13 + $0xa0] sm:$0xff] }
  0xa9   : > { %597 = vst [vmem:[%s1083_s27 + $0x48] sm:$0xff] %v565_v48  ;;  %v418_v59 = vadd.f32 %v1074_v18, %v417_v55  ;;  %v438_v60 = vadd.f32 %v1074_v18, %v437_v57  ;;  %v520_v49 = vld [vmem:[%s1069_s13 + $0xe0] sm:$0xff]  ;;  %v505_v55 = vld [vmem:[%s1069_s13 + $0x68] sm:$0xff] }
  0xaa   : > { %v541_v61 = vadd.f32 %v509_v50, %v455_v53  ;;  %v549_v62 = vadd.f32 %v517_v52, %v475_v54  ;;  %v497_v53 = vld [vmem:[%s1069_s13 + $0x28] sm:$0xff] }
  0xab   : > { %v526_v63 = vadd.f32 %v494_v56, %v418_v59  ;;  %v534_v0 = vadd.f32 %v502_v58, %v438_v60 }
  0xac   : > { %v573_v1 = vmax.f32 %v541_v61, 0.0  ;;  %v581_v2 = vmax.f32 %v549_v62, 0.0 }
  0xad   : > { %v558_v3 = vmax.f32 %v526_v63, 0.0  ;;  %v566_v4 = vmax.f32 %v534_v0, 0.0 }
  0xae   : > { %605 = vst [vmem:[%s1083_s27 + $0x88] sm:$0xff] %v573_v1 }
  0xaf   : > { %613 = vst [vmem:[%s1083_s27 + $0xc8] sm:$0xff] %v581_v2  ;;  %v457_v5 = vpop.f32.mrf.mxu2  ;;  %v477_v7 = vpop.f32.mrf.mxu3 }
  0xb0   : > { %590 = vst [vmem:[%s1083_s27 + $0x10] sm:$0xff] %v558_v3  ;;  %v458_v9 = vadd.f32 %v1074_v18, %v457_v5  ;;  %v478_v10 = vadd.f32 %v1074_v18, %v477_v7  ;;  %v419_v11 = vpop.f32.mrf.mxu0  ;;  %v439_v13 = vpop.f32.mrf.mxu1  ;;  %v513_v3 = vld [vmem:[%s1069_s13 + $0xa8] sm:$0xff] }
  0xb1   : > { %598 = vst [vmem:[%s1083_s27 + $0x50] sm:$0xff] %v566_v4  ;;  %v420_v15 = vadd.f32 %v1074_v18, %v419_v11  ;;  %v440_v16 = vadd.f32 %v1074_v18, %v439_v13  ;;  %v521_v5 = vld [vmem:[%s1069_s13 + $0xe8] sm:$0xff]  ;;  %v506_v11 = vld [vmem:[%s1069_s13 + $0x70] sm:$0xff] }
  0xb2   : > { %v542_v17 = vadd.f32 %v510_v6, %v458_v9  ;;  %v550_v19 = vadd.f32 %v518_v8, %v478_v10  ;;  %v498_v9 = vld [vmem:[%s1069_s13 + $0x30] sm:$0xff] }
  0xb3   : > { %v527_v20 = vadd.f32 %v495_v12, %v420_v15  ;;  %v535_v21 = vadd.f32 %v503_v14, %v440_v16 }
  0xb4   : > { %v574_v22 = vmax.f32 %v542_v17, 0.0  ;;  %v582_v23 = vmax.f32 %v550_v19, 0.0 }
  0xb5   : > { %v559_v24 = vmax.f32 %v527_v20, 0.0  ;;  %v567_v25 = vmax.f32 %v535_v21, 0.0 }
  0xb6   : > { %606 = vst [vmem:[%s1083_s27 + $0x90] sm:$0xff] %v574_v22 }
  0xb7   : > { %614 = vst [vmem:[%s1083_s27 + $0xd0] sm:$0xff] %v582_v23  ;;  %v459_v26 = vpop.f32.mrf.mxu2  ;;  %v479_v28 = vpop.f32.mrf.mxu3 }
  0xb8   : > { %591 = vst [vmem:[%s1083_s27 + $0x18] sm:$0xff] %v559_v24  ;;  %v460_v30 = vadd.f32 %v1074_v18, %v459_v26  ;;  %v480_v31 = vadd.f32 %v1074_v18, %v479_v28  ;;  %v422_v32 = vpop.f32.mrf.mxu0  ;;  %v442_v34 = vpop.f32.mrf.mxu1  ;;  %v514_v24 = vld [vmem:[%s1069_s13 + $0xb0] sm:$0xff] }
  0xb9   : > { %599 = vst [vmem:[%s1083_s27 + $0x58] sm:$0xff] %v567_v25  ;;  %v423_v36 = vadd.f32 %v1074_v18, %v422_v32  ;;  %v443_v37 = vadd.f32 %v1074_v18, %v442_v34  ;;  %v522_v26 = vld [vmem:[%s1069_s13 + $0xf0] sm:$0xff]  ;;  %v507_v32 = vld [vmem:[%s1069_s13 + $0x78] sm:$0xff] }
  0xba   : > { %v543_v38 = vadd.f32 %v511_v27, %v460_v30  ;;  %v551_v39 = vadd.f32 %v519_v29, %v480_v31  ;;  %v499_v30 = vld [vmem:[%s1069_s13 + $0x38] sm:$0xff] }
  0xbb   : > { %v528_v40 = vadd.f32 %v496_v33, %v423_v36  ;;  %v536_v41 = vadd.f32 %v504_v35, %v443_v37 }
  0xbc   : > { %v575_v42 = vmax.f32 %v543_v38, 0.0  ;;  %v583_v43 = vmax.f32 %v551_v39, 0.0 }
  0xbd   : > { %v560_v44 = vmax.f32 %v528_v40, 0.0  ;;  %v568_v45 = vmax.f32 %v536_v41, 0.0 }
  0xbe   : > { %607 = vst [vmem:[%s1083_s27 + $0x98] sm:$0xff] %v575_v42 }
  0xbf   : > { %615 = vst [vmem:[%s1083_s27 + $0xd8] sm:$0xff] %v583_v43  ;;  %v462_v46 = vpop.f32.mrf.mxu2  ;;  %v482_v48 = vpop.f32.mrf.mxu3 }
  0xc0   : > { %592 = vst [vmem:[%s1083_s27 + $0x20] sm:$0xff] %v560_v44  ;;  %v463_v50 = vadd.f32 %v1074_v18, %v462_v46  ;;  %v483_v51 = vadd.f32 %v1074_v18, %v482_v48  ;;  %v424_v52 = vpop.f32.mrf.mxu0  ;;  %v444_v54 = vpop.f32.mrf.mxu1  ;;  %v515_v44 = vld [vmem:[%s1069_s13 + $0xb8] sm:$0xff] }
  0xc1   : > { %600 = vst [vmem:[%s1083_s27 + $0x60] sm:$0xff] %v568_v45  ;;  %v425_v56 = vadd.f32 %v1074_v18, %v424_v52  ;;  %v445_v57 = vadd.f32 %v1074_v18, %v444_v54  ;;  %v523_v46 = vld [vmem:[%s1069_s13 + $0xf8] sm:$0xff] }
  0xc2   : > { %v544_v58 = vadd.f32 %v512_v47, %v463_v50  ;;  %v552_v59 = vadd.f32 %v520_v49, %v483_v51 }
  0xc3   : > { %v529_v60 = vadd.f32 %v497_v53, %v425_v56  ;;  %v537_v61 = vadd.f32 %v505_v55, %v445_v57 }
  0xc4   : > { %v576_v62 = vmax.f32 %v544_v58, 0.0  ;;  %v584_v63 = vmax.f32 %v552_v59, 0.0 }
  0xc5   : > { %v561_v0 = vmax.f32 %v529_v60, 0.0  ;;  %v569_v1 = vmax.f32 %v537_v61, 0.0 }
  0xc6   : > { %608 = vst [vmem:[%s1083_s27 + $0xa0] sm:$0xff] %v576_v62 }
  0xc7   : > { %616 = vst [vmem:[%s1083_s27 + $0xe0] sm:$0xff] %v584_v63  ;;  %v464_v2 = vpop.f32.mrf.mxu2  ;;  %v484_v4 = vpop.f32.mrf.mxu3 }
  0xc8   : > { %593 = vst [vmem:[%s1083_s27 + $0x28] sm:$0xff] %v561_v0  ;;  %v465_v6 = vadd.f32 %v1074_v18, %v464_v2  ;;  %v485_v7 = vadd.f32 %v1074_v18, %v484_v4  ;;  %v427_v8 = vpop.f32.mrf.mxu0  ;;  %v447_v10 = vpop.f32.mrf.mxu1 }
  0xc9   : > { %601 = vst [vmem:[%s1083_s27 + $0x68] sm:$0xff] %v569_v1  ;;  %v428_v12 = vadd.f32 %v1074_v18, %v427_v8  ;;  %v448_v13 = vadd.f32 %v1074_v18, %v447_v10 }
  0xca   : > { %v545_v14 = vadd.f32 %v513_v3, %v465_v6  ;;  %v553_v15 = vadd.f32 %v521_v5, %v485_v7 }
  0xcb   : > { %v530_v16 = vadd.f32 %v498_v9, %v428_v12  ;;  %v538_v17 = vadd.f32 %v506_v11, %v448_v13 }
  0xcc   : > { %v577_v19 = vmax.f32 %v545_v14, 0.0  ;;  %v585_v20 = vmax.f32 %v553_v15, 0.0 }
  0xcd   : > { %v562_v21 = vmax.f32 %v530_v16, 0.0  ;;  %v570_v22 = vmax.f32 %v538_v17, 0.0 }
  0xce   : > { %609 = vst [vmem:[%s1083_s27 + $0xa8] sm:$0xff] %v577_v19 }
  0xcf   : > { %617 = vst [vmem:[%s1083_s27 + $0xe8] sm:$0xff] %v585_v20  ;;  %v467_v23 = vpop.f32.mrf.mxu2  ;;  %v487_v25 = vpop.f32.mrf.mxu3 }
  0xd0   : > { %594 = vst [vmem:[%s1083_s27 + $0x30] sm:$0xff] %v562_v21  ;;  %v468_v27 = vadd.f32 %v1074_v18, %v467_v23  ;;  %v488_v28 = vadd.f32 %v1074_v18, %v487_v25  ;;  %v429_v29 = vpop.f32.mrf.mxu0  ;;  %v449_v31 = vpop.f32.mrf.mxu1 }
  0xd1   : > { %602 = vst [vmem:[%s1083_s27 + $0x70] sm:$0xff] %v570_v22  ;;  %v430_v33 = vadd.f32 %v1074_v18, %v429_v29  ;;  %v450_v34 = vadd.f32 %v1074_v18, %v449_v31 }
  0xd2   : > { %v546_v35 = vadd.f32 %v514_v24, %v468_v27  ;;  %v554_v36 = vadd.f32 %v522_v26, %v488_v28 }
  0xd3   : > { %v531_v37 = vadd.f32 %v499_v30, %v430_v33  ;;  %v539_v38 = vadd.f32 %v507_v32, %v450_v34 }
  0xd4   : > { %v578_v39 = vmax.f32 %v546_v35, 0.0  ;;  %v586_v40 = vmax.f32 %v554_v36, 0.0 }
  0xd5   : > { %v563_v41 = vmax.f32 %v531_v37, 0.0  ;;  %v571_v42 = vmax.f32 %v539_v38, 0.0 }
  0xd6   : > { %610 = vst [vmem:[%s1083_s27 + $0xb0] sm:$0xff] %v578_v39 }
  0xd7   : > { %618 = vst [vmem:[%s1083_s27 + $0xf0] sm:$0xff] %v586_v40  ;;  %v469_v43 = vpop.f32.mrf.mxu2  ;;  %v489_v45 = vpop.f32.mrf.mxu3 }
  0xd8   : > { %595 = vst [vmem:[%s1083_s27 + $0x38] sm:$0xff] %v563_v41  ;;  %v470_v47 = vadd.f32 %v1074_v18, %v469_v43  ;;  %v490_v48 = vadd.f32 %v1074_v18, %v489_v45 }
  0xd9   : > { %603 = vst [vmem:[%s1083_s27 + $0x78] sm:$0xff] %v571_v42 }
  0xda   : > { %v547_v49 = vadd.f32 %v515_v44, %v470_v47  ;;  %v555_v50 = vadd.f32 %v523_v46, %v490_v48 }
  0xdc   : > { %v579_v51 = vmax.f32 %v547_v49, 0.0  ;;  %v587_v52 = vmax.f32 %v555_v50, 0.0 }
  0xde   : > { %611 = vst [vmem:[%s1083_s27 + $0xb8] sm:$0xff] %v579_v51 }
  0xdf   : > { %619 = vst [vmem:[%s1083_s27 + $0xf8] sm:$0xff] %v587_v52 }
  0xe0   : > { %906 = shalt.err (!%p903_p3)
}
  0xe1   : > { %s943_s20 = smov 128   ;;  %s944_s22 = smov 8  }
  0xe2   : > { %837 = dma.vmem_to_hbm [thread:$0]  (%p1008_p5), %s634_s19, 4096, %s636_s6, %s621_s7, %s943_s20, %s943_s20, %s944_s22  }
  0xe3 PF: > { %p843_p4 = scmp.ge.s32.totalorder %s941_s18, 2  ;;  %s650_s23 = sand.u32 1, %s929_s15  }
  0xe4   : > { %s651_s27 = scalar_lea.sflag [#allocation3], %s650_s23 }
  0xe5   : > { %p840_p7 = pnand %p843_p4, %p1012_p6 }
  0xe7   : > { %p841_p8 = pneg %p840_p7 }
  0xe9   : > { %924 = dma.done.wait (%p841_p8), %s651_s27, 4096  }
  0xea   : > { %926 = vsyncadd (%p841_p8), %s651_s27, 4294963200  ;;  %p14_p9 = scmp.ge.s32.totalorder %s995_s21, 4   ;;  %s1218_s15 = smov %s933_s16 }
  0xeb   : > { %s1219_s16 = smov %s937_s17  ;;  %s1220_s17 = smov %s1006_s24 }
  0xec   : > { %s1221_s18 = smov %s995_s21  ;;  %16 = sbr.rel (!%p14_p9) target bundleno = 3 (0x3), region = 74 }
  0xf1   :  { %657 = vsyncpa [#allocation3], 1 }
  0xf2   :  { %659 = vsyncpa [#allocation3 + $0x1], 1 }

// kernel: run.6
= control target key start
LH: loop header
LB: loop body
LE: loop exit
PB: predicated region body
PF: predicated region fallthrough
CT: control target
= control target key end

     0   :  { %s725_s12 = smov 0   ;;  %s863_s0 = inlined_call_operand.vmem [shape: bf16[512,64], index: 0, kind: input, shape index: {}]   ;;  %s864_s1 = inlined_call_operand.vmem [shape: bf16[64,128], index: 1, kind: input, shape index: {}]   ;;  %s865_s2 = inlined_call_operand.vmem [shape: f32[1,128], index: 2, kind: input, shape index: {}]   ;;  %s866_s3 = inlined_call_operand.vmem [shape: f32[512,128], index: 3, kind: output, shape index: {}]  }
   0x1 LB: > { %s549_s13 = sadd.s32 4294967295, %s703_s12   ;;  %p553_p0 = scmp.ge.s32.totalorder %s703_s12, 1  ;;  %s703_s12 = sphi %s725_s12, %s13_s12  }
   0x2   : > { %p138_p1 = scmp.lt.s32.totalorder %s703_s12, 3 }
   0x4   : > { %p139_p2 = pnand %p553_p0, %p138_p1 }
   0x5   : > { %s554_s16 = sshll.u32 (!%p139_p2), %s549_s13, 5 }
   0x6   : > { %142 = sbr.rel (%p139_p2) target bundleno = 220 (0xdc), region = 32  ;;  %p163_p3 = scmp.lt.s32.totalorder (!%p139_p2), %s554_s16, 63 }
   0xb   : > { %v675_v0 = vld [vmem:[%s864_s1 + $0x18] sm:$0xff]  ;;  %v674_v1 = vld [vmem:[%s864_s1 + $0x10] sm:$0xff]  ;;  %s868_s16 = smov (!%p163_p3, %s554_s16), 63  ;;  %v673_v2 = vld [vmem:[%s864_s1 + $0x8] sm:$0xff]  ;;  %vm323_vm0 = vcmask 523264  }
   0xc   : > { %376 = vmatpush.bf16.msra.mxu0 %v675_v0  ;;  %676 = vmatpush.bf16.msra.mxu1 %v675_v0  ;;  %s555_s21 = sshll.u32 %s868_s16, 2  ;;  %v672_v3 = vld [vmem:[%s864_s1] sm:$0xff]  ;;  %s557_s27 = sshll.u32 %s868_s16, 3 }
   0xd   : > { %677 = vmatpush.bf16.msra.mxu2 %v675_v0  ;;  %678 = vmatpush.bf16.msra.mxu3 %v675_v0  ;;  %s751_s26 = scalar_lea.vmem %s863_s0, %s555_s21  ;;  %v789_v20 = vld [vmem:[%s865_s2] ss:$0 sm:$0xff]  ;;  %s794_s5 = scalar_lea.vmem %s866_s3, %s557_s27 }
   0xe   : > { %v656_v4 = vld [vmem:[%s751_s26] sm:$0xff]  ;;  %v657_v8 = vld [vmem:[%s751_s26 + $0x8] sm:$0xff]  ;;  %v658_v12 = vld [vmem:[%s751_s26 + $0x10] sm:$0xff] }
   0xf   : > { %v660_v5 = vld [vmem:[%s751_s26 + $0x20] sm:$0xff]  ;;  %v661_v9 = vld [vmem:[%s751_s26 + $0x28] sm:$0xff]  ;;  %v662_v13 = vld [vmem:[%s751_s26 + $0x30] sm:$0xff] }
  0x10   : > { %377 = vmatpush.bf16.msra.mxu0 %v674_v1  ;;  %679 = vmatpush.bf16.msra.mxu1 %v674_v1  ;;  %v664_v6 = vld [vmem:[%s751_s26 + $0x40] sm:$0xff]  ;;  %v665_v10 = vld [vmem:[%s751_s26 + $0x48] sm:$0xff]  ;;  %v666_v14 = vld [vmem:[%s751_s26 + $0x50] sm:$0xff] }
  0x11   : > { %680 = vmatpush.bf16.msra.mxu2 %v674_v1  ;;  %681 = vmatpush.bf16.msra.mxu3 %v674_v1  ;;  %v668_v7 = vld [vmem:[%s751_s26 + $0x60] sm:$0xff]  ;;  %v669_v11 = vld [vmem:[%s751_s26 + $0x68] sm:$0xff]  ;;  %v670_v15 = vld [vmem:[%s751_s26 + $0x70] sm:$0xff] }
  0x12   : > { %v659_v16 = vld [vmem:[%s751_s26 + $0x18] sm:$0xff] }
  0x13   : > { %v663_v17 = vld [vmem:[%s751_s26 + $0x38] sm:$0xff] }
  0x14   : > { %378 = vmatpush.bf16.msra.mxu0 %v673_v2  ;;  %682 = vmatpush.bf16.msra.mxu1 %v673_v2  ;;  %v667_v18 = vld [vmem:[%s751_s26 + $0x58] sm:$0xff] }
  0x15   : > { %683 = vmatpush.bf16.msra.mxu2 %v673_v2  ;;  %684 = vmatpush.bf16.msra.mxu3 %v673_v2  ;;  %v671_v19 = vld [vmem:[%s751_s26 + $0x78] sm:$0xff] }
  0x18   : > { %379 = vmatpush.bf16.msra.mxu0 %v672_v3  ;;  %685 = vmatpush.bf16.msra.mxu1 %v672_v3 }
  0x19   : > { %686 = vmatpush.bf16.msra.mxu2 %v672_v3  ;;  %687 = vmatpush.bf16.msra.mxu3 %v672_v3 }
  0x1b   : > { %638 = vmatmul.msk.bf16.vlgmr.msra.gmra.mxu0 %vm323_vm0, %v656_v4  ;;  %642 = vmatmul.msk.bf16.vlgmr.msra.gmra.mxu1 %vm323_vm0, %v660_v5 }
  0x1c   : > { %646 = vmatmul.msk.bf16.vlgmr.msra.gmra.mxu2 %vm323_vm0, %v664_v6  ;;  %650 = vmatmul.msk.bf16.vlgmr.msra.gmra.mxu3 %vm323_vm0, %v668_v7 }
  0x2b   : > { %639 = vmatmul.msk.bf16.gmra.mxu0 %vm323_vm0, %v657_v8  ;;  %643 = vmatmul.msk.bf16.gmra.mxu1 %vm323_vm0, %v661_v9 }
  0x2c   : > { %647 = vmatmul.msk.bf16.gmra.mxu2 %vm323_vm0, %v665_v10  ;;  %651 = vmatmul.msk.bf16.gmra.mxu3 %vm323_vm0, %v669_v11 }
  0x3b   : > { %640 = vmatmul.msk.bf16.gmra.mxu0 %vm323_vm0, %v658_v12  ;;  %644 = vmatmul.msk.bf16.gmra.mxu1 %vm323_vm0, %v662_v13 }
  0x3c   : > { %648 = vmatmul.msk.bf16.gmra.mxu2 %vm323_vm0, %v666_v14  ;;  %652 = vmatmul.msk.bf16.gmra.mxu3 %vm323_vm0, %v670_v15 }
  0x4b   : > { %641 = vmatmul.msk.bf16.gmra.mxu0 %vm323_vm0, %v659_v16  ;;  %645 = vmatmul.msk.bf16.gmra.mxu1 %vm323_vm0, %v663_v17 }
  0x4c   : > { %649 = vmatmul.msk.bf16.gmra.mxu2 %vm323_vm0, %v667_v18  ;;  %653 = vmatmul.msk.bf16.gmra.mxu3 %vm323_vm0, %v671_v19 }
  0x98   : > { %v381_v21 = vpop.f32.mrf.mxu0  ;;  %v401_v22 = vpop.f32.mrf.mxu1 }
  0x99   : > { %v382_v23 = vadd.f32 %v789_v20, %v381_v21  ;;  %v402_v24 = vadd.f32 %v789_v20, %v401_v22 }
  0x9b   : > { %461 = vst [vmem:[%s794_s5] sm:$0xff] %v382_v23 }
  0x9c   : > { %469 = vst [vmem:[%s794_s5 + $0x40] sm:$0xff] %v402_v24 }
  0x9f   : > { %v421_v25 = vpop.f32.mrf.mxu2  ;;  %v441_v26 = vpop.f32.mrf.mxu3 }
  0xa0   : > { %v422_v27 = vadd.f32 %v789_v20, %v421_v25  ;;  %v442_v28 = vadd.f32 %v789_v20, %v441_v26  ;;  %v383_v29 = vpop.f32.mrf.mxu0  ;;  %v403_v30 = vpop.f32.mrf.mxu1 }
  0xa1   : > { %v384_v31 = vadd.f32 %v789_v20, %v383_v29  ;;  %v404_v32 = vadd.f32 %v789_v20, %v403_v30 }
  0xa2   : > { %477 = vst [vmem:[%s794_s5 + $0x80] sm:$0xff] %v422_v27 }
  0xa3   : > { %485 = vst [vmem:[%s794_s5 + $0xc0] sm:$0xff] %v442_v28 }
  0xa4   : > { %462 = vst [vmem:[%s794_s5 + $0x8] sm:$0xff] %v384_v31 }
  0xa5   : > { %470 = vst [vmem:[%s794_s5 + $0x48] sm:$0xff] %v404_v32 }
  0xa7   : > { %v423_v33 = vpop.f32.mrf.mxu2  ;;  %v443_v34 = vpop.f32.mrf.mxu3 }
  0xa8   : > { %v424_v35 = vadd.f32 %v789_v20, %v423_v33  ;;  %v444_v36 = vadd.f32 %v789_v20, %v443_v34  ;;  %v386_v37 = vpop.f32.mrf.mxu0  ;;  %v406_v38 = vpop.f32.mrf.mxu1 }
  0xa9   : > { %v387_v39 = vadd.f32 %v789_v20, %v386_v37  ;;  %v407_v40 = vadd.f32 %v789_v20, %v406_v38 }
  0xaa   : > { %478 = vst [vmem:[%s794_s5 + $0x88] sm:$0xff] %v424_v35 }
  0xab   : > { %486 = vst [vmem:[%s794_s5 + $0xc8] sm:$0xff] %v444_v36 }
  0xac   : > { %463 = vst [vmem:[%s794_s5 + $0x10] sm:$0xff] %v387_v39 }
  0xad   : > { %471 = vst [vmem:[%s794_s5 + $0x50] sm:$0xff] %v407_v40 }
  0xaf   : > { %v426_v41 = vpop.f32.mrf.mxu2  ;;  %v446_v42 = vpop.f32.mrf.mxu3 }
  0xb0   : > { %v427_v43 = vadd.f32 %v789_v20, %v426_v41  ;;  %v447_v44 = vadd.f32 %v789_v20, %v446_v42  ;;  %v388_v45 = vpop.f32.mrf.mxu0  ;;  %v408_v46 = vpop.f32.mrf.mxu1 }
  0xb1   : > { %v389_v47 = vadd.f32 %v789_v20, %v388_v45  ;;  %v409_v48 = vadd.f32 %v789_v20, %v408_v46 }
  0xb2   : > { %479 = vst [vmem:[%s794_s5 + $0x90] sm:$0xff] %v427_v43 }
  0xb3   : > { %487 = vst [vmem:[%s794_s5 + $0xd0] sm:$0xff] %v447_v44 }
  0xb4   : > { %464 = vst [vmem:[%s794_s5 + $0x18] sm:$0xff] %v389_v47 }
  0xb5   : > { %472 = vst [vmem:[%s794_s5 + $0x58] sm:$0xff] %v409_v48 }
  0xb7   : > { %v428_v49 = vpop.f32.mrf.mxu2  ;;  %v448_v50 = vpop.f32.mrf.mxu3 }
  0xb8   : > { %v429_v51 = vadd.f32 %v789_v20, %v428_v49  ;;  %v449_v52 = vadd.f32 %v789_v20, %v448_v50  ;;  %v391_v53 = vpop.f32.mrf.mxu0  ;;  %v411_v54 = vpop.f32.mrf.mxu1 }
  0xb9   : > { %v392_v55 = vadd.f32 %v789_v20, %v391_v53  ;;  %v412_v56 = vadd.f32 %v789_v20, %v411_v54 }
  0xba   : > { %480 = vst [vmem:[%s794_s5 + $0x98] sm:$0xff] %v429_v51 }
  0xbb   : > { %488 = vst [vmem:[%s794_s5 + $0xd8] sm:$0xff] %v449_v52 }
  0xbc   : > { %465 = vst [vmem:[%s794_s5 + $0x20] sm:$0xff] %v392_v55 }
  0xbd   : > { %473 = vst [vmem:[%s794_s5 + $0x60] sm:$0xff] %v412_v56 }
  0xbf   : > { %v431_v57 = vpop.f32.mrf.mxu2  ;;  %v451_v58 = vpop.f32.mrf.mxu3 }
  0xc0   : > { %v432_v59 = vadd.f32 %v789_v20, %v431_v57  ;;  %v452_v60 = vadd.f32 %v789_v20, %v451_v58  ;;  %v393_v61 = vpop.f32.mrf.mxu0  ;;  %v413_v62 = vpop.f32.mrf.mxu1 }
  0xc1   : > { %v394_v63 = vadd.f32 %v789_v20, %v393_v61  ;;  %v414_v0 = vadd.f32 %v789_v20, %v413_v62 }
  0xc2   : > { %481 = vst [vmem:[%s794_s5 + $0xa0] sm:$0xff] %v432_v59 }
  0xc3   : > { %489 = vst [vmem:[%s794_s5 + $0xe0] sm:$0xff] %v452_v60 }
  0xc4   : > { %466 = vst [vmem:[%s794_s5 + $0x28] sm:$0xff] %v394_v63 }
  0xc5   : > { %474 = vst [vmem:[%s794_s5 + $0x68] sm:$0xff] %v414_v0 }
  0xc7   : > { %v433_v1 = vpop.f32.mrf.mxu2  ;;  %v453_v2 = vpop.f32.mrf.mxu3 }
  0xc8   : > { %v434_v3 = vadd.f32 %v789_v20, %v433_v1  ;;  %v454_v4 = vadd.f32 %v789_v20, %v453_v2  ;;  %v396_v5 = vpop.f32.mrf.mxu0  ;;  %v416_v6 = vpop.f32.mrf.mxu1 }
  0xc9   : > { %v397_v7 = vadd.f32 %v789_v20, %v396_v5  ;;  %v417_v8 = vadd.f32 %v789_v20, %v416_v6 }
  0xca   : > { %482 = vst [vmem:[%s794_s5 + $0xa8] sm:$0xff] %v434_v3 }
  0xcb   : > { %490 = vst [vmem:[%s794_s5 + $0xe8] sm:$0xff] %v454_v4 }
  0xcc   : > { %467 = vst [vmem:[%s794_s5 + $0x30] sm:$0xff] %v397_v7 }
  0xcd   : > { %475 = vst [vmem:[%s794_s5 + $0x70] sm:$0xff] %v417_v8 }
  0xcf   : > { %v436_v9 = vpop.f32.mrf.mxu2  ;;  %v456_v10 = vpop.f32.mrf.mxu3 }
  0xd0   : > { %v437_v11 = vadd.f32 %v789_v20, %v436_v9  ;;  %v457_v12 = vadd.f32 %v789_v20, %v456_v10  ;;  %v398_v13 = vpop.f32.mrf.mxu0  ;;  %v418_v14 = vpop.f32.mrf.mxu1 }
  0xd1   : > { %v399_v15 = vadd.f32 %v789_v20, %v398_v13  ;;  %v419_v16 = vadd.f32 %v789_v20, %v418_v14 }
  0xd2   : > { %483 = vst [vmem:[%s794_s5 + $0xb0] sm:$0xff] %v437_v11 }
  0xd3   : > { %491 = vst [vmem:[%s794_s5 + $0xf0] sm:$0xff] %v457_v12 }
  0xd4   : > { %468 = vst [vmem:[%s794_s5 + $0x38] sm:$0xff] %v399_v15 }
  0xd5   : > { %476 = vst [vmem:[%s794_s5 + $0x78] sm:$0xff] %v419_v16 }
  0xd7   : > { %v438_v17 = vpop.f32.mrf.mxu2  ;;  %v458_v18 = vpop.f32.mrf.mxu3 }
  0xd8   : > { %v439_v19 = vadd.f32 %v789_v20, %v438_v17  ;;  %v459_v21 = vadd.f32 %v789_v20, %v458_v18 }
  0xda   : > { %484 = vst [vmem:[%s794_s5 + $0xb8] sm:$0xff] %v439_v19 }
  0xdb   : > { %492 = vst [vmem:[%s794_s5 + $0xf8] sm:$0xff] %v459_v21 }
  0xdc PF: > { %s13_s12 = sadd.s32 1, %s703_s12  }
  0xdd   : > { %p10_p4 = scmp.ge.s32.totalorder %s13_s12, 4  }
  0xdf   :  { %12 = sbr.rel (!%p10_p4) target bundleno = 1 (0x1), region = 62 }

// kernel: run.5
= control target key start
LH: loop header
LB: loop body
LE: loop exit
PB: predicated region body
PF: predicated region fallthrough
CT: control target
= control target key end

     0   :  { %s5190_s12 = smov 0   ;;  %s6627_s0 = inlined_call_operand.vmem [shape: bf16[2,18,18,32], index: 0, kind: input, shape index: {}]   ;;  %s6628_s1 = inlined_call_operand.vmem [shape: bf16[288,32], index: 1, kind: input, shape index: {}]   ;;  %s6629_s2 = inlined_call_operand.vmem [shape: f32[1,32], index: 2, kind: input, shape index: {}]   ;;  %s6630_s3 = inlined_call_operand.vmem [shape: bf16[2,16,16,32], index: 3, kind: output, shape index: {}]  }
   0x1 LB: > { %s4370_s13 = sadd.s32 4294967295, %s5168_s12   ;;  %p4374_p0 = scmp.ge.s32.totalorder %s5168_s12, 1  ;;  %s5168_s12 = sphi %s5190_s12, %s13_s12  }
   0x2   : > { %p137_p1 = scmp.lt.s32.totalorder %s5168_s12, 3 }
   0x4   : > { %p138_p2 = pnand %p4374_p0, %p137_p1 }
   0x6   : > { %141 = sbr.rel (%p138_p2) target bundleno = 760 (0x2f8), region = 32 }
   0xb   : > { %v5048_v0 = vld [vmem:[%s6628_s1 + $0x18] sm:$0xff]  ;;  %p161_p3 = scmp.lt.s32.totalorder %s4370_s13, 1  ;;  %v5047_v1 = vld [vmem:[%s6628_s1 + $0x10] sm:$0xff]  ;;  %v5050_v2 = vld [vmem:[%s6628_s1 + $0x28] sm:$0xff]  ;;  %vm224_vm0 = vsmask.f32 3328 }
   0xc   : > { %5095 = vmatpush.bf16.msra.mxu1 %v5048_v0  ;;  %5096 = vmatpush.bf16.msra.mxu2 %v5048_v0  ;;  %v5068_v3 = vld [vmem:[%s6628_s1 + $0x38] sm:$0xff]  ;;  %v5046_v4 = vld [vmem:[%s6628_s1 + $0x8] sm:$0xff]  ;;  %vm225_vm1 = vsmask.f32 7440  ;;  %vm675_vm3 = vcmask 261120   ;;  %vm1090_vm4 = vcmask 1042432  }
   0xd   : > { %s6642_s13 = smov (!%p161_p3, %s4370_s13), 1  ;;  %5097 = vmatpush.bf16.msra.mxu3 %v5048_v0  ;;  %730 = vmatpush.bf16.msra.mxu0 %v5048_v0  ;;  %v5070_v5 = vld [vmem:[%s6628_s1 + $0x48] sm:$0xff]  ;;  %vm5234_vm2 = vmor %vm224_vm0, %vm225_vm1  ;;  %vm1091_vm5 = vcmask 1046532   ;;  %vm4282_vm7 = vcmask 257024  }
   0xe   : > { %s5101_s18 = smul.u32 216, %s6642_s13  ;;  %vm5429_vm6 = vmor %vm1090_vm4, %vm1091_vm5  ;;  %s5028_s5 = sshll.u32 %s6642_s13, 7 }
   0xf   : > { %s6289_s8 = scalar_lea.vmem %s6630_s3, %s5028_s5 }
  0x10   : > { %5098 = vmatpush.bf16.msra.mxu1 %v5047_v1  ;;  %5099 = vmatpush.bf16.msra.mxu2 %v5047_v1  ;;  %s5222_s29 = scalar_lea.vmem %s6627_s0, %s5101_s18 }
  0x11   : > { %5100 = vmatpush.bf16.msra.mxu3 %v5047_v1  ;;  %731 = vmatpush.bf16.msra.mxu0 %v5047_v1  ;;  %v180_v6 = vld [vmem:[%s5222_s29 + $0x30] sm:$0xf]  ;;  %v181_v7 = vld [vmem:[%s5222_s29 + $0x34] sm:$0xf]  ;;  %v212_v8 = vld [vmem:[%s5222_s29 + $0x38] sm:$0x1] }
  0x12   : > { %v324_v9 = vshrl.u32 %v180_v6, 16  ;;  %v327_v10 = vshll.u32 %v180_v6, 16  ;;  %v333_v11 = vshll.u32 %v181_v7, 16  ;;  %v337_v12 = vshrl.u32 %v181_v7, 16  ;;  %v188_v13 = vld [vmem:[%s5222_s29 + $0x60] sm:$0xf] }
  0x13   : > { %v343_v14 = vshll.u32 %v212_v8, 16  ;;  %v189_v15 = vld [vmem:[%s5222_s29 + $0x64] sm:$0xf]  ;;  %v216_v16 = vld [vmem:[%s5222_s29 + $0x68] sm:$0x1]  ;;  %v420_v17 = vshrl.u32 %v188_v13, 16 }
  0x14   : > { %1323 = vmatpush.bf16.msrb.mxu2 %v5050_v2  ;;  %959 = vmatpush.bf16.msrb.mxu1 %v5046_v4  ;;  %v326_v18 = vrot.slane %v324_v9, 4  ;;  %v329_v19 = vrot.slane %v327_v10, 5  ;;  %v335_v20 = vrot.slane %v333_v11, 5  ;;  %v339_v21 = vrot.slane %v337_v12, 4  ;;  %v196_v22 = vld [vmem:[%s5222_s29 + $0x90] sm:$0xf] }
  0x15   : > { %1621 = vmatpush.bf16.msrb.mxu3 %v5068_v3  ;;  %2286 = vmatpush.bf16.msrb.mxu0 %v5070_v5  ;;  %v345_v23 = vrot.slane %v343_v14, 5  ;;  %v422_v24 = vrot.slane %v420_v17, 4  ;;  %v423_v25 = vshll.u32 %v188_v13, 16  ;;  %v429_v26 = vshll.u32 %v189_v15, 16  ;;  %v197_v31 = vld [vmem:[%s5222_s29 + $0x94] sm:$0xf] }
  0x16   : > { %v330_v27 = vor.u32 %v329_v19, %v326_v18  ;;  %v340_v28 = vor.u32 %v339_v21, %v335_v20  ;;  %v433_v29 = vshrl.u32 %v189_v15, 16  ;;  %v439_v30 = vshll.u32 %v216_v16, 16  ;;  %v220_v41 = vld [vmem:[%s5222_s29 + $0x98] sm:$0x1]  ;;  %v172_v57 = vld [vmem:[%s5222_s29] sm:$0xf] }
  0x17   : > { %v425_v33 = vrot.slane %v423_v25, 5  ;;  %v431_v34 = vrot.slane %v429_v26, 5  ;;  %v516_v35 = vshrl.u32 %v196_v22, 16  ;;  %v519_v43 = vshll.u32 %v196_v22, 16  ;;  %v5247_v61 = vld [vmem:[%s5222_s29 + $0x4] sm:$0xf] }
  0x18   : > { %v331_v36 = vrot.slane %v330_v27, 4  ;;  %v341_v37 = vrot.slane %v340_v28, 4  ;;  %v435_v38 = vrot.slane %v433_v29, 4  ;;  %v441_v39 = vrot.slane %v439_v30, 5  ;;  %v5250_v62 = vld [vmem:[%s5222_s29 + $0x8] sm:$0x1] }
  0x19   : > { %v426_v40 = vor.u32 %v425_v33, %v422_v24  ;;  %v518_v42 = vrot.slane %v516_v35, 4  ;;  %v525_v44 = vshll.u32 %v197_v31, 16  ;;  %v529_v48 = vshrl.u32 %v197_v31, 16  ;;  %v182_v15 = vld [vmem:[%s5222_s29 + $0x3c] sm:$0xf] }
  0x1a   : > { %v336_v45 = vsel %vm5234_vm2, %v331_v36, %v335_v20  ;;  %v346_v46 = vsel %vm5234_vm2, %v341_v37, %v345_v23  ;;  %v436_v47 = vor.u32 %v435_v38, %v431_v34  ;;  %v521_v52 = vrot.slane %v519_v43, 5  ;;  %v5262_v16 = vld [vmem:[%s5222_s29 + $0x40] sm:$0xf]  ;;  %v5267_v21 = vld [vmem:[%s5222_s29 + $0x44] sm:$0x1] }
  0x1b   : > { %v623_v49 = vunpack.c.l.b16 %v336_v45  ;;  %v624_v50 = vunpack.c.l.b16 %v346_v46  ;;  %v427_v51 = vrot.slane %v426_v40, 4  ;;  %v527_v54 = vrot.slane %v525_v44, 5  ;;  %v190_v29 = vld [vmem:[%s5222_s29 + $0x6c] sm:$0xf]  ;;  %v217_v43 = vld [vmem:[%s5222_s29 + $0x74] sm:$0x1] }
  0x1c   : > { %v437_v53 = vrot.slane %v436_v47, 4  ;;  %v531_v55 = vrot.slane %v529_v48, 4  ;;  %v535_v56 = vshll.u32 %v220_v41, 16  ;;  %v522_v60 = vor.u32 %v521_v52, %v518_v42 }
  0x1d   : > { %v651_v58 = vpack.c.b16 %v624_v50, %v623_v49  ;;  %v432_v59 = vsel %vm5234_vm2, %v427_v51, %v431_v34  ;;  %v228_v5 = vshrl.u32 %v172_v57, 16  ;;  %v231_v6 = vshll.u32 %v172_v57, 16  ;;  %v198_v57 = vld [vmem:[%s5222_s29 + $0x9c] sm:$0xf] }
  0x1e   : > { %v442_v63 = vsel %vm5234_vm2, %v437_v53, %v441_v39  ;;  %v631_v0 = vunpack.c.l.b16 %v432_v59  ;;  %v532_v1 = vor.u32 %v531_v55, %v527_v54  ;;  %v537_v2 = vrot.slane %v535_v56, 5  ;;  %v191_v39 = vld [vmem:[%s5222_s29 + $0x70] sm:$0xf] }
  0x1f   : > { %4390 = vmatmul.msk.bf16.vlgmr.msra.gmra.mxu1 %vm675_vm3, %v651_v58  ;;  %v632_v3 = vunpack.c.l.b16 %v442_v63  ;;  %v523_v4 = vrot.slane %v522_v60, 4  ;;  %v237_v8 = vshll.u32 %v5247_v61, 16  ;;  %v241_v9 = vshrl.u32 %v5247_v61, 16  ;;  %v199_v63 = vld [vmem:[%s5222_s29 + $0xa0] sm:$0xf] }
  0x20   : > { %v533_v7 = vrot.slane %v532_v1, 4  ;;  %v247_v10 = vshll.u32 %v5250_v62, 16  ;;  %v230_v13 = vrot.slane %v228_v5, 4  ;;  %v233_v14 = vrot.slane %v231_v6, 5 }
  0x21   : > { %v655_v11 = vpack.c.b16 %v632_v3, %v631_v0  ;;  %v528_v12 = vsel %vm5234_vm2, %v523_v4, %v527_v54  ;;  %v239_v19 = vrot.slane %v237_v8, 5  ;;  %v243_v20 = vrot.slane %v241_v9, 4  ;;  %v221_v4 = vld [vmem:[%s5222_s29 + $0xa4] sm:$0x1] }
  0x22   : > { %v538_v17 = vsel %vm5234_vm2, %v533_v7, %v537_v2  ;;  %v639_v18 = vunpack.c.l.b16 %v528_v12  ;;  %v234_v23 = vor.u32 %v233_v14, %v230_v13  ;;  %v249_v24 = vrot.slane %v247_v10, 5  ;;  %v174_v13 = vld [vmem:[%s5222_s29 + $0xc] sm:$0xf] }
  0x23   : > { %4394 = vmatmul.msk.bf16.vlgmr.msra.gmra.mxu2 %vm675_vm3, %v655_v11  ;;  %v640_v22 = vunpack.c.l.b16 %v538_v17  ;;  %v244_v25 = vor.u32 %v243_v20, %v239_v19  ;;  %v348_v26 = vshrl.u32 %v182_v15, 16  ;;  %v351_v27 = vshll.u32 %v182_v15, 16 }
  0x24   : > { %v357_v28 = vshll.u32 %v5262_v16, 16  ;;  %v235_v31 = vrot.slane %v234_v23, 4  ;;  %v361_v33 = vshrl.u32 %v5262_v16, 16  ;;  %v367_v34 = vshll.u32 %v5267_v21, 16 }
  0x25   : > { %v659_v30 = vpack.c.b16 %v640_v22, %v639_v18  ;;  %v245_v35 = vrot.slane %v244_v25, 4  ;;  %v350_v36 = vrot.slane %v348_v26, 4  ;;  %v353_v37 = vrot.slane %v351_v27, 5  ;;  %v5296_v25 = vld [vmem:[%s5222_s29 + $0x10] sm:$0xf] }
  0x26   : > { %v359_v38 = vrot.slane %v357_v28, 5  ;;  %v240_v40 = vsel %vm5234_vm2, %v235_v31, %v239_v19  ;;  %v363_v41 = vrot.slane %v361_v33, 4  ;;  %v369_v42 = vrot.slane %v367_v34, 5  ;;  %v5049_v19 = vld [vmem:[%s6628_s1 + $0x20] sm:$0xff] }
  0x27   : > { %4398 = vmatmul.msk.bf16.vlgmr.msra.gmra.mxu3 %vm675_vm3, %v659_v30  ;;  %v444_v44 = vshrl.u32 %v190_v29, 16  ;;  %v250_v45 = vsel %vm5234_vm2, %v245_v35, %v249_v24  ;;  %v615_v46 = vunpack.c.l.b16 %v240_v40  ;;  %v354_v47 = vor.u32 %v353_v37, %v350_v36  ;;  %1324 = vmatpush.bf16.msrb.mxu2 %v5049_v19  ;;  %v5307_v40 = vld [vmem:[%s5222_s29 + $0x4c] sm:$0xf] }
  0x28   : > { %v447_v48 = vshll.u32 %v190_v29, 16  ;;  %v616_v49 = vunpack.c.l.b16 %v250_v45  ;;  %v364_v50 = vor.u32 %v363_v41, %v359_v38  ;;  %v453_v52 = vshll.u32 %v191_v39, 16  ;;  %v5299_v29 = vld [vmem:[%s5222_s29 + $0x14] sm:$0x1] }
  0x29   : > { %v446_v51 = vrot.slane %v444_v44, 4  ;;  %v355_v53 = vrot.slane %v354_v47, 4  ;;  %v457_v55 = vshrl.u32 %v191_v39, 16  ;;  %v463_v56 = vshll.u32 %v217_v43, 16  ;;  %v184_v39 = vld [vmem:[%s5222_s29 + $0x48] sm:$0xf] }
  0x2a   : > { %v449_v54 = vrot.slane %v447_v48, 5  ;;  %v647_v58 = vpack.c.b16 %v616_v49, %v615_v46  ;;  %v365_v59 = vrot.slane %v364_v50, 4  ;;  %v455_v60 = vrot.slane %v453_v52, 5  ;;  %v5067_v45 = vld [vmem:[%s6628_s1 + $0x30] sm:$0xff]  ;;  %v5045_v46 = vld [vmem:[%s6628_s1] sm:$0xff] }
  0x2b   : > { %v360_v0 = vsel %vm5234_vm2, %v355_v53, %v359_v38  ;;  %v459_v2 = vrot.slane %v457_v55, 4  ;;  %v465_v3 = vrot.slane %v463_v56, 5  ;;  %v540_v7 = vshrl.u32 %v198_v57, 16  ;;  %v5323_v56 = vld [vmem:[%s5222_s29 + $0x50] sm:$0x1]  ;;  %1622 = vmatpush.bf16.msrb.mxu3 %v5067_v45  ;;  %960 = vmatpush.bf16.msrb.mxu1 %v5045_v46 }
  0x2c   : > { %v450_v1 = vor.u32 %v449_v54, %v446_v51  ;;  %4386 = vmatmul.msk.bf16.vlgmr.msra.gmra.mxu0 %vm675_vm3, %v647_v58  ;;  %v370_v5 = vsel %vm5234_vm2, %v365_v59, %v369_v42  ;;  %v625_v6 = vunpack.c.l.b16 %v360_v0  ;;  %v543_v8 = vshll.u32 %v198_v57, 16  ;;  %v5069_v51 = vld [vmem:[%s6628_s1 + $0x40] sm:$0xff] }
  0x2d   : > { %v626_v9 = vunpack.c.l.b16 %v370_v5  ;;  %v460_v11 = vor.u32 %v459_v2, %v455_v60  ;;  %v549_v12 = vshll.u32 %v199_v63, 16  ;;  %v542_v14 = vrot.slane %v540_v7, 4  ;;  %2287 = vmatpush.bf16.msrb.mxu0 %v5069_v51 }
  0x2e   : > { %v451_v10 = vrot.slane %v450_v1, 4  ;;  %v545_v15 = vrot.slane %v543_v8, 5  ;;  %v553_v17 = vshrl.u32 %v199_v63, 16  ;;  %v559_v18 = vshll.u32 %v221_v4, 16  ;;  %v193_v8 = vld [vmem:[%s5222_s29 + $0x7c] sm:$0xf] }
  0x2f   : > { %v652_v20 = vpack.c.b16 %v626_v9, %v625_v6  ;;  %v461_v23 = vrot.slane %v460_v11, 4  ;;  %v551_v24 = vrot.slane %v549_v12, 5  ;;  %v252_v33 = vshrl.u32 %v174_v13, 16 }
  0x30   : > { %v456_v22 = vsel %vm5234_vm2, %v451_v10, %v455_v60  ;;  %v546_v27 = vor.u32 %v545_v15, %v542_v14  ;;  %v555_v28 = vrot.slane %v553_v17, 4  ;;  %v561_v31 = vrot.slane %v559_v18, 5  ;;  %v218_v17 = vld [vmem:[%s5222_s29 + $0x80] sm:$0x1] }
  0x31   : > { %v633_v26 = vunpack.c.l.b16 %v456_v22  ;;  %4391 = vmatmul.msk.bf16.gmra.mxu1 %vm675_vm3, %v652_v20  ;;  %v466_v30 = vsel %vm5234_vm2, %v461_v23, %v465_v3  ;;  %v255_v34 = vshll.u32 %v174_v13, 16  ;;  %v261_v38 = vshll.u32 %v5296_v25, 16  ;;  %v192_v3 = vld [vmem:[%s5222_s29 + $0x78] sm:$0xf] }
  0x32   : > { %v634_v35 = vunpack.c.l.b16 %v466_v30  ;;  %v547_v36 = vrot.slane %v546_v27, 4  ;;  %v556_v37 = vor.u32 %v555_v28, %v551_v24  ;;  %v254_v41 = vrot.slane %v252_v33, 4 }
  0x33   : > { %v257_v42 = vrot.slane %v255_v34, 5  ;;  %v265_v43 = vshrl.u32 %v5296_v25, 16  ;;  %v271_v44 = vshll.u32 %v5299_v29, 16  ;;  %v263_v50 = vrot.slane %v261_v38, 5 }
  0x34   : > { %v656_v47 = vpack.c.b16 %v634_v35, %v633_v26  ;;  %v552_v48 = vsel %vm5234_vm2, %v547_v36, %v551_v24  ;;  %v557_v49 = vrot.slane %v556_v37, 4  ;;  %v372_v58 = vshrl.u32 %v184_v39, 16  ;;  %v200_v35 = vld [vmem:[%s5222_s29 + $0xa8] sm:$0xf] }
  0x35   : > { %v641_v52 = vunpack.c.l.b16 %v552_v48  ;;  %v258_v53 = vor.u32 %v257_v42, %v254_v41  ;;  %v267_v54 = vrot.slane %v265_v43, 4  ;;  %v273_v55 = vrot.slane %v271_v44, 5  ;;  %v222_v41 = vld [vmem:[%s5222_s29 + $0xb0] sm:$0x1] }
  0x36   : > { %4395 = vmatmul.msk.bf16.gmra.mxu2 %vm675_vm3, %v656_v47  ;;  %v562_v57 = vsel %vm5234_vm2, %v557_v49, %v561_v31  ;;  %v375_v59 = vshll.u32 %v184_v39, 16  ;;  %v381_v60 = vshll.u32 %v5307_v40, 16  ;;  %v385_v2 = vshrl.u32 %v5307_v40, 16  ;;  %v201_v39 = vld [vmem:[%s5222_s29 + $0xac] sm:$0xf] }
  0x37   : > { %v642_v63 = vunpack.c.l.b16 %v562_v57  ;;  %v259_v0 = vrot.slane %v258_v53, 4  ;;  %v268_v1 = vor.u32 %v267_v54, %v263_v50  ;;  %v374_v4 = vrot.slane %v372_v58, 4 }
  0x38   : > { %v377_v5 = vrot.slane %v375_v59, 5  ;;  %v383_v6 = vrot.slane %v381_v60, 5  ;;  %v391_v7 = vshll.u32 %v5323_v56, 16  ;;  %v387_v12 = vrot.slane %v385_v2, 4  ;;  %v176_v59 = vld [vmem:[%s5222_s29 + $0x18] sm:$0xf] }
  0x39   : > { %v660_v9 = vpack.c.b16 %v642_v63, %v641_v52  ;;  %v264_v10 = vsel %vm5234_vm2, %v259_v0, %v263_v50  ;;  %v269_v11 = vrot.slane %v268_v1, 4  ;;  %v468_v18 = vshrl.u32 %v192_v3, 16  ;;  %v5351_v1 = vld [vmem:[%s5222_s29 + $0x1c] sm:$0xf]  ;;  %v5354_v2 = vld [vmem:[%s5222_s29 + $0x20] sm:$0x1] }
  0x3a   : > { %v617_v13 = vunpack.c.l.b16 %v264_v10  ;;  %v378_v14 = vor.u32 %v377_v5, %v374_v4  ;;  %v393_v15 = vrot.slane %v391_v7, 5  ;;  %v388_v20 = vor.u32 %v387_v12, %v383_v6 }
  0x3b   : > { %4399 = vmatmul.msk.bf16.gmra.mxu3 %vm675_vm3, %v660_v9  ;;  %v274_v19 = vsel %vm5234_vm2, %v269_v11, %v273_v55  ;;  %v471_v22 = vshll.u32 %v192_v3, 16  ;;  %v477_v23 = vshll.u32 %v193_v8, 16  ;;  %v470_v27 = vrot.slane %v468_v18, 4 }
  0x3c   : > { %v618_v24 = vunpack.c.l.b16 %v274_v19  ;;  %v379_v26 = vrot.slane %v378_v14, 4  ;;  %v481_v28 = vshrl.u32 %v193_v8, 16  ;;  %v389_v30 = vrot.slane %v388_v20, 4 }
  0x3d   : > { %v473_v31 = vrot.slane %v471_v22, 5  ;;  %v479_v33 = vrot.slane %v477_v23, 5  ;;  %v487_v34 = vshll.u32 %v218_v17, 16  ;;  %v564_v48 = vshrl.u32 %v200_v35, 16  ;;  %v5364_v22 = vld [vmem:[%s5222_s29 + $0x58] sm:$0xf] }
  0x3e   : > { %v648_v36 = vpack.c.b16 %v618_v24, %v617_v13  ;;  %v384_v37 = vsel %vm5234_vm2, %v379_v26, %v383_v6  ;;  %v483_v38 = vrot.slane %v481_v28, 4  ;;  %v394_v42 = vsel %vm5234_vm2, %v389_v30, %v393_v15  ;;  %v186_v15 = vld [vmem:[%s5222_s29 + $0x54] sm:$0xf]  ;;  %v5369_v28 = vld [vmem:[%s5222_s29 + $0x5c] sm:$0x1] }
  0x3f   : > { %v627_v43 = vunpack.c.l.b16 %v384_v37  ;;  %v474_v44 = vor.u32 %v473_v31, %v470_v27  ;;  %v489_v45 = vrot.slane %v487_v34, 5  ;;  %v628_v46 = vunpack.c.l.b16 %v394_v42 }
  0x40   : > { %4387 = vmatmul.msk.bf16.gmra.mxu0 %vm675_vm3, %v648_v36  ;;  %v484_v47 = vor.u32 %v483_v38, %v479_v33  ;;  %v567_v49 = vshll.u32 %v200_v35, 16  ;;  %v573_v51 = vshll.u32 %v201_v39, 16  ;;  %v577_v52 = vshrl.u32 %v201_v39, 16  ;;  %v194_v39 = vld [vmem:[%s5222_s29 + $0x84] sm:$0xf] }
  0x41   : > { %v475_v50 = vrot.slane %v474_v44, 4  ;;  %v583_v53 = vshll.u32 %v222_v41, 16  ;;  %v653_v54 = vpack.c.b16 %v628_v46, %v627_v43  ;;  %v566_v57 = vrot.slane %v564_v48, 4 }
  0x42   : > { %v485_v55 = vrot.slane %v484_v47, 4  ;;  %v569_v58 = vrot.slane %v567_v49, 5  ;;  %v575_v63 = vrot.slane %v573_v51, 5  ;;  %v579_v0 = vrot.slane %v577_v52, 4  ;;  %v195_v49 = vld [vmem:[%s5222_s29 + $0x88] sm:$0xf] }
  0x43   : > { %v480_v60 = vsel %vm5234_vm2, %v475_v50, %v479_v33  ;;  %4392 = vmatmul.msk.bf16.gmra.mxu1 %vm675_vm3, %v653_v54  ;;  %v585_v6 = vrot.slane %v583_v53, 5  ;;  %v276_v9 = vshrl.u32 %v176_v59, 16  ;;  %v279_v10 = vshll.u32 %v176_v59, 16  ;;  %v219_v53 = vld [vmem:[%s5222_s29 + $0x8c] sm:$0x1] }
  0x44   : > { %v490_v3 = vsel %vm5234_vm2, %v485_v55, %v489_v45  ;;  %v635_v4 = vunpack.c.l.b16 %v480_v60  ;;  %v570_v5 = vor.u32 %v569_v58, %v566_v57  ;;  %v580_v8 = vor.u32 %v579_v0, %v575_v63 }
  0x45   : > { %v636_v7 = vunpack.c.l.b16 %v490_v3  ;;  %v285_v12 = vshll.u32 %v5351_v1, 16  ;;  %v289_v13 = vshrl.u32 %v5351_v1, 16  ;;  %v295_v14 = vshll.u32 %v5354_v2, 16 }
  0x46   : > { %v571_v11 = vrot.slane %v570_v5, 4  ;;  %v581_v18 = vrot.slane %v580_v8, 4  ;;  %v278_v19 = vrot.slane %v276_v9, 4  ;;  %v281_v20 = vrot.slane %v279_v10, 5  ;;  %v202_v8 = vld [vmem:[%s5222_s29 + $0xb4] sm:$0xf] }
  0x47   : > { %v657_v17 = vpack.c.b16 %v636_v7, %v635_v4  ;;  %v287_v24 = vrot.slane %v285_v12, 5  ;;  %v291_v26 = vrot.slane %v289_v13, 4  ;;  %v297_v27 = vrot.slane %v295_v14, 5  ;;  %v203_v12 = vld [vmem:[%s5222_s29 + $0xb8] sm:$0xf] }
  0x48   : > { %v576_v23 = vsel %vm5234_vm2, %v571_v11, %v575_v63  ;;  %v586_v30 = vsel %vm5234_vm2, %v581_v18, %v585_v6  ;;  %v282_v33 = vor.u32 %v281_v20, %v278_v19  ;;  %v396_v34 = vshrl.u32 %v186_v15, 16  ;;  %v223_v18 = vld [vmem:[%s5222_s29 + $0xbc] sm:$0x1]  ;;  %v5090_v19 = vld [vmem:[%s6628_s1 + $0x68] sm:$0xff] }
  0x49   : > { %4396 = vmatmul.msk.bf16.gmra.mxu2 %vm675_vm3, %v657_v17  ;;  %v643_v31 = vunpack.c.l.b16 %v576_v23  ;;  %v644_v35 = vunpack.c.l.b16 %v586_v30  ;;  %v292_v36 = vor.u32 %v291_v26, %v287_v24  ;;  %v399_v37 = vshll.u32 %v186_v15, 16 }
  0x4a   : > { %v405_v38 = vshll.u32 %v5364_v22, 16  ;;  %v283_v41 = vrot.slane %v282_v33, 4  ;;  %v398_v42 = vrot.slane %v396_v34, 4  ;;  %v409_v43 = vshrl.u32 %v5364_v22, 16  ;;  %2993 = vmatpush.bf16.msra.mxu2 %v5090_v19 }
  0x4b   : > { %v415_v44 = vshll.u32 %v5369_v28, 16  ;;  %v661_v45 = vpack.c.b16 %v644_v35, %v643_v31  ;;  %v293_v46 = vrot.slane %v292_v36, 4  ;;  %v401_v47 = vrot.slane %v399_v37, 5 }
  0x4c   : > { %v407_v48 = vrot.slane %v405_v38, 5  ;;  %v288_v50 = vsel %vm5234_vm2, %v283_v41, %v287_v24  ;;  %v411_v51 = vrot.slane %v409_v43, 4  ;;  %v492_v54 = vshrl.u32 %v194_v39, 16  ;;  %v178_v38 = vld [vmem:[%s5222_s29 + $0x24] sm:$0xf] }
  0x4d   : > { %v417_v52 = vrot.slane %v415_v44, 5  ;;  %4400 = vmatmul.msk.bf16.gmra.mxu3 %vm675_vm3, %v661_v45  ;;  %v298_v55 = vsel %vm5234_vm2, %v293_v46, %v297_v27  ;;  %v619_v57 = vunpack.c.l.b16 %v288_v50  ;;  %v402_v58 = vor.u32 %v401_v47, %v398_v42  ;;  %v5400_v44 = vld [vmem:[%s5222_s29 + $0x28] sm:$0xf]  ;;  %v5403_v45 = vld [vmem:[%s5222_s29 + $0x2c] sm:$0x1]  ;;  %v5092_v50 = vld [vmem:[%s6628_s1 + $0x78] sm:$0xff] }
  0x4e   : > { %v495_v59 = vshll.u32 %v194_v39, 16  ;;  %v620_v60 = vunpack.c.l.b16 %v298_v55  ;;  %v412_v63 = vor.u32 %v411_v51, %v407_v48  ;;  %v494_v0 = vrot.slane %v492_v54, 4  ;;  %v5072_v51 = vld [vmem:[%s6628_s1 + $0x58] sm:$0xff]  ;;  %3658 = vmatpush.bf16.msra.mxu3 %v5092_v50 }
  0x4f   : > { %v501_v3 = vshll.u32 %v195_v49, 16  ;;  %v403_v4 = vrot.slane %v402_v58, 4  ;;  %v505_v6 = vshrl.u32 %v195_v49, 16  ;;  %v511_v7 = vshll.u32 %v219_v53, 16  ;;  %2695 = vmatpush.bf16.msra.mxu1 %v5072_v51 }
  0x50   : > { %v497_v5 = vrot.slane %v495_v59, 5  ;;  %v649_v9 = vpack.c.b16 %v620_v60, %v619_v57  ;;  %v413_v10 = vrot.slane %v412_v63, 4  ;;  %v588_v24 = vshrl.u32 %v202_v8, 16 }
  0x51   : > { %v503_v11 = vrot.slane %v501_v3, 5  ;;  %v408_v13 = vsel %vm5234_vm2, %v403_v4, %v407_v48  ;;  %v507_v15 = vrot.slane %v505_v6, 4  ;;  %v513_v17 = vrot.slane %v511_v7, 5  ;;  %v1042_v6 = vld [vmem:[%s5222_s29] sm:$0xe] }
  0x52   : > { %v498_v14 = vor.u32 %v497_v5, %v494_v0  ;;  %4388 = vmatmul.msk.bf16.gmra.mxu0 %vm675_vm3, %v649_v9  ;;  %v418_v20 = vsel %vm5234_vm2, %v413_v10, %v417_v52  ;;  %v629_v23 = vunpack.c.l.b16 %v408_v13  ;;  %v591_v26 = vshll.u32 %v202_v8, 16  ;;  %v5094_v52 = vld [vmem:[%s6628_s1 + $0x88] sm:$0xff] }
  0x53   : > { %v630_v27 = vunpack.c.l.b16 %v418_v20  ;;  %v508_v31 = vor.u32 %v507_v15, %v503_v11  ;;  %v597_v33 = vshll.u32 %v203_v12, 16  ;;  %v590_v34 = vrot.slane %v588_v24, 4  ;;  %4067 = vmatpush.bf16.msra.mxu0 %v5094_v52  ;;  %v4650_v15 = vld [vmem:[%s5222_s29 + $0xc] sm:$0xf] }
  0x54   : > { %v499_v30 = vrot.slane %v498_v14, 4  ;;  %v593_v35 = vrot.slane %v591_v26, 5  ;;  %v601_v36 = vshrl.u32 %v203_v12, 16  ;;  %v607_v37 = vshll.u32 %v223_v18, 16 }
  0x55   : > { %v654_v39 = vpack.c.b16 %v630_v27, %v629_v23  ;;  %v509_v42 = vrot.slane %v508_v31, 4  ;;  %v599_v43 = vrot.slane %v597_v33, 5  ;;  %v1098_v46 = vrot.slane %v5250_v62, 5  ;;  %v4653_v62 = vld [vmem:[%s5222_s29 + $0x18] sm:$0xf] }
  0x56   : > { %v504_v41 = vsel %vm5234_vm2, %v499_v30, %v503_v11  ;;  %v594_v48 = vor.u32 %v593_v35, %v590_v34  ;;  %v603_v49 = vrot.slane %v601_v36, 4  ;;  %v609_v54 = vrot.slane %v607_v37, 5 }
  0x57   : > { %v637_v47 = vunpack.c.l.b16 %v504_v41  ;;  %4393 = vmatmul.msk.bf16.gmra.mxu1 %vm675_vm3, %v654_v39  ;;  %v514_v53 = vsel %vm5234_vm2, %v509_v42, %v513_v17  ;;  %v300_v55 = vshrl.u32 %v178_v38, 16  ;;  %v303_v57 = vshll.u32 %v178_v38, 16  ;;  %v4651_v17 = vld [vmem:[%s5222_s29 + $0x10] sm:$0xf] }
  0x58   : > { %v638_v58 = vunpack.c.l.b16 %v514_v53  ;;  %v595_v59 = vrot.slane %v594_v48, 4  ;;  %v604_v60 = vor.u32 %v603_v49, %v599_v43  ;;  %v309_v63 = vshll.u32 %v5400_v44, 16  ;;  %v5029_v53 = vld [vmem:[%s5222_s29] sm:$0xff] }
  0x59   : > { %v302_v0 = vrot.slane %v300_v55, 4  ;;  %v305_v3 = vrot.slane %v303_v57, 5  ;;  %v313_v4 = vshrl.u32 %v5400_v44, 16  ;;  %v319_v5 = vshll.u32 %v5403_v45, 16 }
  0x5a   : > { %v658_v7 = vpack.c.b16 %v638_v58, %v637_v47  ;;  %v600_v8 = vsel %vm5234_vm2, %v595_v59, %v599_v43  ;;  %v605_v9 = vrot.slane %v604_v60, 4  ;;  %v311_v10 = vrot.slane %v309_v63, 5  ;;  %v4652_v43 = vld [vmem:[%s5222_s29 + $0x14] sm:$0x1] }
  0x5b   : > { %v645_v11 = vunpack.c.l.b16 %v600_v8  ;;  %v306_v12 = vor.u32 %v305_v3, %v302_v0  ;;  %v315_v13 = vrot.slane %v313_v4, 4  ;;  %v321_v14 = vrot.slane %v319_v5, 5  ;;  %v4654_v4 = vld [vmem:[%s5222_s29 + $0x1c] sm:$0xf]  ;;  %v1043_v5 = vld [vmem:[%s5222_s29 + $0xc] sm:$0xe] }
  0x5c   : > { %4397 = vmatmul.msk.bf16.gmra.mxu2 %vm675_vm3, %v658_v7  ;;  %v610_v18 = vsel %vm5234_vm2, %v605_v9, %v609_v54  ;;  %v4490_v19 = vrot.slane %v1042_v6, 9  ;;  %v1095_v27 = vrot.slane %v5247_v61, 5  ;;  %v1785_v30 = vshrl.u32 %v4650_v15, 16 }
  0x5d   : > { %v646_v20 = vunpack.c.l.b16 %v610_v18  ;;  %v307_v23 = vrot.slane %v306_v12, 4  ;;  %v316_v24 = vor.u32 %v315_v13, %v311_v10  ;;  %v1788_v31 = vshll.u32 %v4650_v15, 16  ;;  %v5051_v12 = vld [vmem:[%s5222_s29 + $0xc] sm:$0xff] }
  0x5e   : > { %v1794_v33 = vshll.u32 %v4651_v17, 16  ;;  %v1798_v34 = vshrl.u32 %v4651_v17, 16  ;;  %v1096_v38 = vsel %vm5429_vm6, %v4490_v19, %v1095_v27  ;;  %v1097_v41 = vrot.slane %v1095_v27, 4 }
  0x5f   : > { %v662_v35 = vpack.c.b16 %v646_v20, %v645_v11  ;;  %v312_v36 = vsel %vm5234_vm2, %v307_v23, %v311_v10  ;;  %v317_v37 = vrot.slane %v316_v24, 4  ;;  %v1209_v42 = vunpack.c.l.b16 %v1096_v38  ;;  %v4655_v24 = vld [vmem:[%s5222_s29 + $0x20] sm:$0x1] }
  0x60   : > { %v621_v39 = vunpack.c.l.b16 %v312_v36  ;;  %v1787_v47 = vrot.slane %v1785_v30, 4  ;;  %v1790_v48 = vrot.slane %v1788_v31, 5  ;;  %v1796_v49 = vrot.slane %v1794_v33, 5  ;;  %v5030_v33 = vld [vmem:[%s5222_s29 + $0xc] sm:$0xff] }
  0x61   : > { %4401 = vmatmul.msk.bf16.gmra.mxu3 %vm675_vm3, %v662_v35  ;;  %v322_v61 = vsel %vm5234_vm2, %v317_v37, %v321_v14  ;;  %v1800_v50 = vrot.slane %v1798_v34, 4  ;;  %v1099_v52 = vsel %vm5429_vm6, %v1097_v41, %v1098_v46  ;;  %v1804_v58 = vshll.u32 %v4652_v43, 16  ;;  %v4657_v43 = vld [vmem:[%s5222_s29 + $0x28] sm:$0xf] }
  0x62   : > { %v622_v51 = vunpack.c.l.b16 %v322_v61  ;;  %v1210_v54 = vunpack.c.l.b16 %v1099_v52  ;;  %v1791_v55 = vor.u32 %v1790_v48, %v1787_v47  ;;  %v1102_v46 = vrot.slane %v5296_v25, 5  ;;  %v1044_v61 = vld [vmem:[%s5222_s29 + $0x18] sm:$0xe] }
  0x63   : > { %v1801_v57 = vor.u32 %v1800_v50, %v1796_v49  ;;  %v1806_v3 = vrot.slane %v1804_v58, 5  ;;  %v1809_v6 = vshrl.u32 %v4653_v62, 16  ;;  %v1812_v7 = vshll.u32 %v4653_v62, 16 }
  0x64   : > { %v650_v59 = vpack.c.b16 %v622_v51, %v621_v39  ;;  %v1241_v60 = vpack.c.b16 %v1210_v54, %v1209_v42  ;;  %v1792_v63 = vrot.slane %v1791_v55, 4  ;;  %v1818_v10 = vshll.u32 %v4654_v4, 16  ;;  %v4656_v39 = vld [vmem:[%s5222_s29 + $0x24] sm:$0xf] }
  0x65   : > { %v1802_v0 = vrot.slane %v1801_v57, 4  ;;  %v1822_v11 = vshrl.u32 %v4654_v4, 16  ;;  %v4491_v13 = vrot.slane %v1043_v5, 9  ;;  %v1104_v14 = vrot.slane %v1102_v46, 4  ;;  %v5052_v57 = vld [vmem:[%s5222_s29 + $0x18] sm:$0xff] }
  0x66   : > { %4389 = vmatmul.msk.bf16.gmra.mxu0 %vm675_vm3, %v650_v59  ;;  %v1797_v8 = vsel %vm5234_vm2, %v1792_v63, %v1796_v49  ;;  %v1105_v25 = vrot.slane %v5299_v29, 5  ;;  %v1811_v18 = vrot.slane %v1809_v6, 4  ;;  %v1814_v19 = vrot.slane %v1812_v7, 5  ;;  %v4658_v4 = vld [vmem:[%s5222_s29 + $0x2c] sm:$0x1] }
  0x67   : > { %4474 = vmatmul.msk.bf16.vlgmr.msrb.gmra.mxu1 %vm675_vm3, %v5029_v53  ;;  %v1807_v9 = vsel %vm5234_vm2, %v1802_v0, %v1806_v3  ;;  %v2172_v15 = vunpack.c.l.b16 %v1797_v8  ;;  %v1820_v20 = vrot.slane %v1818_v10, 5  ;;  %v1824_v23 = vrot.slane %v1822_v11, 4 }
  0x68   : > { %v2173_v17 = vunpack.c.l.b16 %v1807_v9  ;;  %v1103_v27 = vsel %vm5429_vm6, %v4491_v13, %v1102_v46  ;;  %v1106_v30 = vsel %vm5429_vm6, %v1104_v14, %v1105_v25  ;;  %v1815_v29 = vor.u32 %v1814_v19, %v1811_v18  ;;  %v5031_v9 = vld [vmem:[%s5222_s29 + $0x18] sm:$0xff] }
  0x69   : > { %v1825_v34 = vor.u32 %v1824_v23, %v1820_v20  ;;  %v1828_v35 = vshll.u32 %v4655_v24, 16  ;;  %v1211_v36 = vunpack.c.l.b16 %v1103_v27  ;;  %v1212_v37 = vunpack.c.l.b16 %v1106_v30  ;;  %v1045_v23 = vld [vmem:[%s5222_s29 + $0x24] sm:$0xe] }
  0x6a   : > { %v2204_v31 = vpack.c.b16 %v2173_v17, %v2172_v15  ;;  %v1816_v38 = vrot.slane %v1815_v29, 4  ;;  %v1109_v48 = vrot.slane %v5351_v1, 5  ;;  %v1833_v49 = vshrl.u32 %v4656_v39, 16  ;;  %v4659_v15 = vld [vmem:[%s5222_s29 + $0x30] sm:$0xf]  ;;  %v5053_v29 = vld [vmem:[%s5222_s29 + $0x24] sm:$0xff] }
  0x6b   : > { %v1826_v41 = vrot.slane %v1825_v34, 4  ;;  %v1830_v42 = vrot.slane %v1828_v35, 5  ;;  %v1242_v47 = vpack.c.b16 %v1212_v37, %v1211_v36  ;;  %v1836_v51 = vshll.u32 %v4656_v39, 16  ;;  %v4660_v17 = vld [vmem:[%s5222_s29 + $0x34] sm:$0xf] }
  0x6c   : > { %4514 = vmatmul.msk.bf16.vlgmr.msrb.gmra.mxu2 %vm675_vm3, %v1241_v60  ;;  %v1821_v50 = vsel %vm5234_vm2, %v1816_v38, %v1820_v20  ;;  %v1842_v52 = vshll.u32 %v4657_v43, 16  ;;  %v1846_v53 = vshrl.u32 %v4657_v43, 16  ;;  %v4492_v55 = vrot.slane %v1044_v61, 9 }
  0x6d   : > { %v1831_v54 = vsel %vm5234_vm2, %v1826_v41, %v1830_v42  ;;  %v2174_v58 = vunpack.c.l.b16 %v1821_v50  ;;  %v1111_v59 = vrot.slane %v1109_v48, 4  ;;  %v1112_v1 = vrot.slane %v5354_v2, 5  ;;  %v4661_v42 = vld [vmem:[%s5222_s29 + $0x38] sm:$0x1] }
  0x6e   : > { %v1835_v60 = vrot.slane %v1833_v49, 4  ;;  %v2175_v63 = vunpack.c.l.b16 %v1831_v54  ;;  %v1838_v0 = vrot.slane %v1836_v51, 5  ;;  %v1844_v3 = vrot.slane %v1842_v52, 5  ;;  %v4663_v54 = vld [vmem:[%s5222_s29 + $0x40] sm:$0xf] }
  0x6f   : > { %v1848_v62 = vrot.slane %v1846_v53, 4  ;;  %v1110_v46 = vsel %vm5429_vm6, %v4492_v55, %v1109_v48  ;;  %v1113_v5 = vsel %vm5429_vm6, %v1111_v59, %v1112_v1  ;;  %v1852_v2 = vshll.u32 %v4658_v4, 16  ;;  %v4662_v53 = vld [vmem:[%s5222_s29 + $0x3c] sm:$0xf]  ;;  %v5111_v1 = vld [vmem:[%s5222_s29 + $0x34] sm:$0xf] }
  0x70   : > { %v2205_v6 = vpack.c.b16 %v2175_v63, %v2174_v58  ;;  %v1839_v7 = vor.u32 %v1838_v0, %v1835_v60  ;;  %v1213_v10 = vunpack.c.l.b16 %v1110_v46  ;;  %v1214_v11 = vunpack.c.l.b16 %v1113_v5  ;;  %v1046_v63 = vld [vmem:[%s5222_s29 + $0x30] sm:$0xe] }
  0x71   : > { %4634 = vmatmul.msk.bf16.vlgmr.msrb.gmra.mxu3 %vm675_vm3, %v5051_v12  ;;  %v1849_v8 = vor.u32 %v1848_v62, %v1844_v3  ;;  %v1854_v14 = vrot.slane %v1852_v2, 5  ;;  %v1116_v18 = vrot.slane %v5400_v44, 5  ;;  %v1857_v24 = vshrl.u32 %v4659_v15, 16  ;;  %v5112_v2 = vld [vmem:[%s5222_s29 + $0x38] sm:$0x1] }
  0x72   : > { %v1840_v12 = vrot.slane %v1839_v7, 4  ;;  %v1243_v25 = vpack.c.b16 %v1214_v11, %v1213_v10  ;;  %v1860_v27 = vshll.u32 %v4659_v15, 16  ;;  %v1866_v30 = vshll.u32 %v4660_v17, 16  ;;  %v5054_v10 = vld [vmem:[%s5222_s29 + $0x30] sm:$0xff] }
  0x73   : > { %v1850_v13 = vrot.slane %v1849_v8, 4  ;;  %v1118_v34 = vrot.slane %v1116_v18, 4  ;;  %v1119_v44 = vrot.slane %v5403_v45, 5  ;;  %v1859_v37 = vrot.slane %v1857_v24, 4  ;;  %v5032_v45 = vld [vmem:[%s5222_s29 + $0x24] sm:$0xff] }
  0x74   : > { %v1845_v19 = vsel %vm5234_vm2, %v1840_v12, %v1844_v3  ;;  %v1862_v38 = vrot.slane %v1860_v27, 5  ;;  %v1868_v39 = vrot.slane %v1866_v30, 5  ;;  %v1876_v50 = vshll.u32 %v4661_v42, 16  ;;  %v5033_v30 = vld [vmem:[%s5222_s29 + $0x30] sm:$0xff] }
  0x75   : > { %v1855_v20 = vsel %vm5234_vm2, %v1850_v13, %v1854_v14  ;;  %v2176_v35 = vunpack.c.l.b16 %v1845_v19  ;;  %v1123_v60 = vrot.slane %v5111_v1, 5  ;;  %v1881_v0 = vshrl.u32 %v4662_v53, 16 }
  0x76   : > { %4706 = vmatmul.msk.bf16.vlgmr.msrb.gmra.mxu0 %vm675_vm3, %v2204_v31  ;;  %v1870_v31 = vshrl.u32 %v4660_v17, 16  ;;  %v2177_v36 = vunpack.c.l.b16 %v1855_v20  ;;  %v1863_v48 = vor.u32 %v1862_v38, %v1859_v37  ;;  %v1878_v58 = vrot.slane %v1876_v50, 5  ;;  %v4664_v17 = vld [vmem:[%s5222_s29 + $0x44] sm:$0x1]  ;;  %v4665_v37 = vld [vmem:[%s5222_s29 + $0x48] sm:$0xf] }
  0x77   : > { %4475 = vmatmul.msk.bf16.gmra.mxu1 %vm675_vm3, %v5030_v33  ;;  %v4493_v33 = vrot.slane %v1045_v23, 9  ;;  %v1884_v3 = vshll.u32 %v4662_v53, 16  ;;  %v1890_v62 = vshll.u32 %v4663_v54, 16  ;;  %v1894_v4 = vshrl.u32 %v4663_v54, 16  ;;  %v4666_v38 = vld [vmem:[%s5222_s29 + $0x4c] sm:$0xf] }
  0x78   : > { %v1872_v41 = vrot.slane %v1870_v31, 4  ;;  %v2206_v61 = vpack.c.b16 %v2177_v36, %v2176_v35  ;;  %v1864_v55 = vrot.slane %v1863_v48, 4  ;;  %v4494_v7 = vrot.slane %v1046_v63, 9  ;;  %v5055_v53 = vld [vmem:[%s5222_s29 + $0x3c] sm:$0xff] }
  0x79   : > { %v1117_v43 = vsel %vm5429_vm6, %v4493_v33, %v1116_v18  ;;  %v1125_v8 = vrot.slane %v1123_v60, 4  ;;  %v1883_v11 = vrot.slane %v1881_v0, 4  ;;  %v1886_v12 = vrot.slane %v1884_v3, 5  ;;  %v4667_v3 = vld [vmem:[%s5222_s29 + $0x50] sm:$0x1] }
  0x7a   : > { %v1873_v49 = vor.u32 %v1872_v41, %v1868_v39  ;;  %v1215_v51 = vunpack.c.l.b16 %v1117_v43  ;;  %v1869_v5 = vsel %vm5234_vm2, %v1864_v55, %v1868_v39  ;;  %v1892_v13 = vrot.slane %v1890_v62, 5 }
  0x7b   : > { %v1896_v14 = vrot.slane %v1894_v4, 4  ;;  %v1124_v18 = vsel %vm5429_vm6, %v4494_v7, %v1123_v60  ;;  %v1887_v20 = vor.u32 %v1886_v12, %v1883_v11  ;;  %v1900_v24 = vshll.u32 %v4664_v17, 16 }
  0x7c   : > { %4515 = vmatmul.msk.bf16.gmra.mxu2 %vm675_vm3, %v1242_v47  ;;  %v1120_v47 = vsel %vm5429_vm6, %v1118_v34, %v1119_v44  ;;  %v1905_v48 = vshrl.u32 %v4665_v37, 16  ;;  %v1914_v50 = vshll.u32 %v4666_v38, 16 }
  0x7d   : > { %v1216_v52 = vunpack.c.l.b16 %v1120_v47  ;;  %v1897_v23 = vor.u32 %v1896_v14, %v1892_v13  ;;  %v1888_v44 = vrot.slane %v1887_v20, 4  ;;  %v1902_v36 = vrot.slane %v1900_v24, 5 }
  0x7e   : > { %v1916_v63 = vrot.slane %v1914_v50, 5  ;;  %v1137_v20 = vrot.slane %v5307_v40, 5 }
  0x7f   : > { %v1244_v59 = vpack.c.b16 %v1216_v52, %v1215_v51  ;;  %v1898_v35 = vrot.slane %v1897_v23, 4  ;;  %v1893_v42 = vsel %vm5234_vm2, %v1888_v44, %v1892_v13  ;;  %v1918_v51 = vshrl.u32 %v4666_v38, 16 }
  0x80   : > { %v2180_v52 = vunpack.c.l.b16 %v1893_v42  ;;  %v1139_v38 = vrot.slane %v1137_v20, 4 }
  0x81   : > { %4635 = vmatmul.msk.bf16.gmra.mxu3 %vm675_vm3, %v5052_v57  ;;  %v1874_v57 = vrot.slane %v1873_v49, 4  ;;  %v1903_v43 = vsel %vm5234_vm2, %v1898_v35, %v1902_v36  ;;  %v1908_v49 = vshll.u32 %v4665_v37, 16  ;;  %v1920_v0 = vrot.slane %v1918_v51, 4  ;;  %v5056_v36 = vld [vmem:[%s5222_s29 + $0x48] sm:$0xff]  ;;  %v4670_v51 = vld [vmem:[%s5222_s29 + $0x5c] sm:$0x1] }
  0x82   : > { %v2181_v54 = vunpack.c.l.b16 %v1903_v43 }
  0x83   : > { %v1910_v60 = vrot.slane %v1908_v49, 5  ;;  %v1921_v7 = vor.u32 %v1920_v0, %v1916_v63 }
  0x85   : > { %v1922_v13 = vrot.slane %v1921_v7, 4 }
  0x86   : > { %4707 = vmatmul.msk.bf16.gmra.mxu0 %vm675_vm3, %v2205_v6  ;;  %v1879_v6 = vsel %vm5234_vm2, %v1874_v57, %v1878_v58 }
  0x87   : > { %4476 = vmatmul.msk.bf16.gmra.mxu1 %vm675_vm3, %v5031_v9  ;;  %v1126_v9 = vrot.slane %v5112_v2, 5  ;;  %v2179_v15 = vunpack.c.l.b16 %v1879_v6 }
  0x89   : > { %v1127_v19 = vsel %vm5429_vm6, %v1125_v8, %v1126_v9  ;;  %v1924_v8 = vshll.u32 %v4667_v3, 16  ;;  %v5034_v9 = vld [vmem:[%s5222_s29 + $0x3c] sm:$0xff] }
  0x8a   : > { %v1218_v33 = vunpack.c.l.b16 %v1127_v19  ;;  %v4669_v19 = vld [vmem:[%s5222_s29 + $0x58] sm:$0xf]  ;;  %v4671_v3 = vld [vmem:[%s5222_s29 + $0x60] sm:$0xf] }
  0x8b   : > { %v1926_v14 = vrot.slane %v1924_v8, 5  ;;  %v1942_v44 = vshrl.u32 %v4669_v19, 16 }
  0x8c   : > { %4516 = vmatmul.msk.bf16.gmra.mxu2 %vm675_vm3, %v1243_v25  ;;  %v2178_v25 = vunpack.c.l.b16 %v1869_v5  ;;  %v2208_v5 = vpack.c.b16 %v2181_v54, %v2180_v52 }
  0x8d   : > { %v1927_v24 = vsel %vm5234_vm2, %v1922_v13, %v1926_v14  ;;  %v1944_v49 = vrot.slane %v1942_v44, 4 }
  0x8e   : > { %v2207_v27 = vpack.c.b16 %v2179_v15, %v2178_v25  ;;  %v2183_v43 = vunpack.c.l.b16 %v1927_v24 }
  0x91   : > { %4636 = vmatmul.msk.bf16.gmra.mxu3 %vm675_vm3, %v5053_v29  ;;  %v1217_v29 = vunpack.c.l.b16 %v1124_v18  ;;  %v4668_v18 = vld [vmem:[%s5222_s29 + $0x54] sm:$0xf] }
  0x93   : > { %v1245_v41 = vpack.c.b16 %v1218_v33, %v1217_v29  ;;  %v1932_v29 = vshll.u32 %v4668_v18, 16  ;;  %v1938_v33 = vshll.u32 %v4669_v19, 16 }
  0x96   : > { %4708 = vmatmul.msk.bf16.gmra.mxu0 %vm675_vm3, %v2206_v61  ;;  %v1130_v61 = vrot.slane %v5262_v16, 5  ;;  %v1907_v16 = vrot.slane %v1905_v48, 4  ;;  %v1940_v48 = vrot.slane %v1938_v33, 5  ;;  %v1147_v33 = vrot.slane %v5369_v28, 5 }
  0x97   : > { %4477 = vmatmul.msk.bf16.gmra.mxu1 %vm675_vm3, %v5032_v45  ;;  %v1047_v45 = vld [vmem:[%s5222_s29 + $0x3c] sm:$0xe] }
  0x98   : > { %v4495_v57 = vrot.slane %v1047_v45, 9  ;;  %v1132_v58 = vrot.slane %v1130_v61, 4  ;;  %v1934_v45 = vrot.slane %v1932_v29, 5 }
  0x9a   : > { %v1131_v62 = vsel %vm5429_vm6, %v4495_v57, %v1130_v61  ;;  %v5035_v57 = vld [vmem:[%s5222_s29 + $0x48] sm:$0xff] }
  0x9c   : > { %v5513_v46 = vpop.f32.mrf.mxu1  ;;  %4517 = vmatmul.msk.bf16.gmra.mxu2 %vm675_vm3, %v1244_v59  ;;  %v1133_v59 = vrot.slane %v5267_v21, 5  ;;  %v1911_v21 = vor.u32 %v1910_v60, %v1907_v16  ;;  %v1948_v16 = vshll.u32 %v4670_v51, 16  ;;  %v5036_v51 = vld [vmem:[%s5222_s29 + $0x54] sm:$0xff] }
  0x9e   : > { %v1134_v4 = vsel %vm5429_vm6, %v1132_v58, %v1133_v59  ;;  %v1912_v12 = vrot.slane %v1911_v21, 4  ;;  %v1945_v59 = vor.u32 %v1944_v49, %v1940_v48  ;;  %v1950_v7 = vrot.slane %v1948_v16, 5 }
  0x9f   : > { %v1220_v11 = vunpack.c.l.b16 %v1134_v4 }
  0xa0   : > { %v1917_v23 = vsel %vm5234_vm2, %v1912_v12, %v1916_v63  ;;  %v1946_v21 = vrot.slane %v1945_v59, 4  ;;  %v1144_v12 = vrot.slane %v5364_v22, 5 }
  0xa1   : > { %4637 = vmatmul.msk.bf16.gmra.mxu3 %vm675_vm3, %v5054_v10  ;;  %v1219_v10 = vunpack.c.l.b16 %v1131_v62  ;;  %v2182_v42 = vunpack.c.l.b16 %v1917_v23  ;;  %v4672_v62 = vld [vmem:[%s5222_s29 + $0x64] sm:$0xf] }
  0xa2   : > { %v1966_v13 = vshrl.u32 %v4672_v62, 16  ;;  %v1951_v19 = vsel %vm5234_vm2, %v1946_v21, %v1950_v7  ;;  %v1146_v29 = vrot.slane %v1144_v12, 4 }
  0xa3   : > { %v1246_v15 = vpack.c.b16 %v1220_v11, %v1219_v10  ;;  %v2209_v54 = vpack.c.b16 %v2183_v43, %v2182_v42  ;;  %v1956_v10 = vshll.u32 %v4671_v3, 16  ;;  %v1962_v11 = vshll.u32 %v4672_v62, 16  ;;  %v4674_v62 = vld [vmem:[%s5222_s29 + $0x6c] sm:$0xf] }
  0xa4   : > { %v5529_v31 = vpop.f32.mrf.mxu1  ;;  %v1968_v44 = vrot.slane %v1966_v13, 4  ;;  %v1050_v13 = vld [vmem:[%s5222_s29 + $0x60] sm:$0xe] }
  0xa5   : > { %v1958_v24 = vrot.slane %v1956_v10, 5  ;;  %v5113_v10 = vld [vmem:[%s5222_s29 + $0x64] sm:$0xf] }
  0xa6   : > { %v5531_v34 = vpop.f32.mrf.mxu2  ;;  %4709 = vmatmul.msk.bf16.gmra.mxu0 %vm675_vm3, %v2207_v27  ;;  %v1048_v27 = vld [vmem:[%s5222_s29 + $0x48] sm:$0xe] }
  0xa7   : > { %4478 = vmatmul.msk.bf16.gmra.mxu1 %vm675_vm3, %v5033_v30  ;;  %v1929_v30 = vshrl.u32 %v4668_v18, 16  ;;  %v4496_v40 = vrot.slane %v1048_v27, 9  ;;  %v1964_v27 = vrot.slane %v1962_v11, 5  ;;  %v1151_v11 = vrot.slane %v5113_v10, 5 }
  0xa9   : > { %v5537_v39 = vpop.f32.mrf.mxu0  ;;  %v1931_v61 = vrot.slane %v1929_v30, 4  ;;  %v5057_v30 = vld [vmem:[%s5222_s29 + $0x54] sm:$0xff] }
  0xaa   : > { %v5543_v47 = vpop.f32.mrf.mxu3 }
  0xab   : > { %v1935_v58 = vor.u32 %v1934_v45, %v1931_v61  ;;  %v1148_v45 = vsel %vm5429_vm6, %v1146_v29, %v1147_v33  ;;  %v5058_v29 = vld [vmem:[%s5222_s29 + $0x60] sm:$0xff] }
  0xac   : > { %4518 = vmatmul.msk.bf16.gmra.mxu2 %vm675_vm3, %v1245_v41  ;;  %v1140_v41 = vrot.slane %v5323_v56, 5 }
  0xae   : > { %v5549_v55 = vpop.f32.mrf.mxu1  ;;  %v5552_v1 = vpop.f32.mrf.mxu2  ;;  %v1141_v56 = vsel %vm5429_vm6, %v1139_v38, %v1140_v41  ;;  %v4673_v38 = vld [vmem:[%s5222_s29 + $0x68] sm:$0x1] }
  0xaf   : > { %v1222_v63 = vunpack.c.l.b16 %v1141_v56  ;;  %v1972_v49 = vshll.u32 %v4673_v38, 16 }
  0xb1   : > { %4638 = vmatmul.msk.bf16.gmra.mxu3 %vm675_vm3, %v5055_v53  ;;  %v5560_v6 = vpop.f32.mrf.mxu0  ;;  %v1138_v53 = vsel %vm5429_vm6, %v4496_v40, %v1137_v20  ;;  %v2185_v40 = vunpack.c.l.b16 %v1951_v19 }
  0xb2   : > { %v5562_v2 = vpop.f32.mrf.mxu3  ;;  %v1221_v60 = vunpack.c.l.b16 %v1138_v53  ;;  %v5089_v53 = vld [vmem:[%s6628_s1 + $0x60] sm:$0xff] }
  0xb3   : > { %2994 = vmatpush.bf16.msra.mxu2 %v5089_v53 }
  0xb4   : > { %v1247_v8 = vpack.c.b16 %v1222_v63, %v1221_v60  ;;  %v1974_v60 = vrot.slane %v1972_v49, 5  ;;  %v5091_v63 = vld [vmem:[%s6628_s1 + $0x70] sm:$0xff] }
  0xb5   : > { %3659 = vmatpush.bf16.msra.mxu3 %v5091_v63  ;;  %v4676_v49 = vld [vmem:[%s5222_s29 + $0x74] sm:$0x1] }
  0xb6   : > { %4710 = vmatmul.msk.bf16.gmra.mxu0 %vm675_vm3, %v2208_v5  ;;  %v5566_v25 = vpop.f32.mrf.mxu1  ;;  %v1936_v5 = vrot.slane %v1935_v58, 4 }
  0xb7   : > { %4479 = vmatmul.msk.bf16.gmra.mxu1 %vm675_vm3, %v5034_v9  ;;  %v1953_v9 = vshrl.u32 %v4671_v3, 16  ;;  %v5071_v3 = vld [vmem:[%s6628_s1 + $0x50] sm:$0xff] }
  0xb8   : > { %v1941_v18 = vsel %vm5234_vm2, %v1936_v5, %v1940_v48  ;;  %v1969_v48 = vor.u32 %v1968_v44, %v1964_v27  ;;  %v4675_v5 = vld [vmem:[%s5222_s29 + $0x70] sm:$0xf]  ;;  %2696 = vmatpush.bf16.msra.mxu1 %v5071_v3 }
  0xb9   : > { %v5569_v17 = vpop.f32.mrf.mxu2  ;;  %v1955_v23 = vrot.slane %v1953_v9, 4  ;;  %v1986_v19 = vshll.u32 %v4675_v5, 16 }
  0xba   : > { %v1970_v16 = vrot.slane %v1969_v48, 4 }
  0xbb   : > { %v1959_v43 = vor.u32 %v1958_v24, %v1955_v23  ;;  %v1990_v23 = vshrl.u32 %v4675_v5, 16  ;;  %v5093_v24 = vld [vmem:[%s6628_s1 + $0x80] sm:$0xff] }
  0xbc   : > { %4519 = vmatmul.msk.bf16.gmra.mxu2 %vm675_vm3, %v1246_v15  ;;  %v1049_v15 = vld [vmem:[%s5222_s29 + $0x54] sm:$0xe]  ;;  %v1975_v9 = vsel %vm5234_vm2, %v1970_v16, %v1974_v60  ;;  %4068 = vmatpush.bf16.msra.mxu0 %v5093_v24  ;;  %v5037_v60 = vld [vmem:[%s5222_s29 + $0x60] sm:$0xff] }
  0xbd   : > { %v5579_v35 = vpop.f32.mrf.mxu0  ;;  %v4497_v22 = vrot.slane %v1049_v15, 9  ;;  %v1960_v59 = vrot.slane %v1959_v43, 4  ;;  %v1977_v15 = vshrl.u32 %v4674_v62, 16  ;;  %v2187_v44 = vunpack.c.l.b16 %v1975_v9 }
  0xbe   : > { %v5583_v37 = vpop.f32.mrf.mxu3 }
  0xbf   : > { %v1145_v61 = vsel %vm5429_vm6, %v4497_v22, %v1144_v12  ;;  %v1979_v38 = vrot.slane %v1977_v15, 4  ;;  %v4677_v15 = vld [vmem:[%s5222_s29 + $0x78] sm:$0xf] }
  0xc0   : > { %v5586_v50 = vpop.f32.mrf.mxu1 }
  0xc1   : > { %4639 = vmatmul.msk.bf16.gmra.mxu3 %vm675_vm3, %v5056_v36  ;;  %v5590_v52 = vpop.f32.mrf.mxu2  ;;  %v2184_v36 = vunpack.c.l.b16 %v1941_v18  ;;  %v1980_v18 = vshll.u32 %v4674_v62, 16 }
  0xc3   : > { %v2210_v28 = vpack.c.b16 %v2185_v40, %v2184_v36  ;;  %v4498_v36 = vrot.slane %v1050_v13, 9  ;;  %v1153_v40 = vrot.slane %v1151_v11, 4  ;;  %v1982_v43 = vrot.slane %v1980_v18, 5  ;;  %v4678_v18 = vld [vmem:[%s5222_s29 + $0x7c] sm:$0xf] }
  0xc5   : > { %v5597_v0 = vpop.f32.mrf.mxu0 }
  0xc6   : > { %4711 = vmatmul.msk.bf16.gmra.mxu0 %vm675_vm3, %v2209_v54  ;;  %v5602_v4 = vpop.f32.mrf.mxu3  ;;  %v1223_v54 = vunpack.c.l.b16 %v1145_v61  ;;  %v1988_v61 = vrot.slane %v1986_v19, 5  ;;  %v5115_v19 = vld [vmem:[%s5222_s29 + $0x70] sm:$0xf] }
  0xc7   : > { %4480 = vmatmul.msk.bf16.gmra.mxu1 %vm675_vm3, %v5035_v57  ;;  %v1224_v57 = vunpack.c.l.b16 %v1148_v45  ;;  %v1992_v45 = vrot.slane %v1990_v23, 4  ;;  %v1158_v23 = vrot.slane %v5115_v19, 5 }
  0xc8   : > { %v5606_v14 = vpop.f32.mrf.mxu1 }
  0xc9   : > { %v1248_v21 = vpack.c.b16 %v1224_v57, %v1223_v54  ;;  %v1983_v54 = vor.u32 %v1982_v43, %v1979_v38  ;;  %v1993_v57 = vor.u32 %v1992_v45, %v1988_v61  ;;  %v5116_v43 = vld [vmem:[%s5222_s29 + $0x74] sm:$0x1] }
  0xca   : > { %v1161_v45 = vrot.slane %v5116_v43, 5 }
  0xcb   : > { %v1994_v9 = vrot.slane %v1993_v57, 4 }
  0xcc   : > { %v5613_v20 = vpop.f32.mrf.mxu2  ;;  %4520 = vmatmul.msk.bf16.gmra.mxu2 %vm675_vm3, %v1247_v8  ;;  %v1965_v8 = vsel %vm5234_vm2, %v1960_v59, %v1964_v27  ;;  %v1996_v59 = vshll.u32 %v4676_v49, 16  ;;  %v5059_v49 = vld [vmem:[%s5222_s29 + $0x6c] sm:$0xff] }
  0xcd   : > { %v2186_v33 = vunpack.c.l.b16 %v1965_v8  ;;  %v1984_v8 = vrot.slane %v1983_v54, 4 }
  0xce   : > { %v1998_v10 = vrot.slane %v1996_v59, 5 }
  0xcf   : > { %v5619_v41 = vpop.f32.mrf.mxu0  ;;  %v2211_v53 = vpack.c.b16 %v2187_v44, %v2186_v33  ;;  %v1989_v24 = vsel %vm5234_vm2, %v1984_v8, %v1988_v61  ;;  %v2004_v33 = vshll.u32 %v4677_v15, 16  ;;  %v2010_v44 = vshll.u32 %v4678_v18, 16  ;;  %v4679_v8 = vld [vmem:[%s5222_s29 + $0x80] sm:$0x1] }
  0xd0   : > { %v5621_v42 = vpop.f32.mrf.mxu3 }
  0xd1   : > { %4640 = vmatmul.msk.bf16.gmra.mxu3 %vm675_vm3, %v5057_v30  ;;  %v5114_v30 = vld [vmem:[%s5222_s29 + $0x68] sm:$0x1] }
  0xd2   : > { %v1154_v22 = vrot.slane %v5114_v30, 5  ;;  %v1051_v30 = vld [vmem:[%s5222_s29 + $0x6c] sm:$0xe] }
  0xd4   : > { %v5632_v56 = vpop.f32.mrf.mxu1  ;;  %v5634_v58 = vpop.f32.mrf.mxu2 }
  0xd6   : > { %4712 = vmatmul.msk.bf16.gmra.mxu0 %vm675_vm3, %v2210_v28  ;;  %v1152_v28 = vsel %vm5429_vm6, %v4498_v36, %v1151_v11  ;;  %v2014_v36 = vshrl.u32 %v4678_v18, 16 }
  0xd7   : > { %4481 = vmatmul.msk.bf16.gmra.mxu1 %vm675_vm3, %v5036_v51  ;;  %v5646_v7 = vpop.f32.mrf.mxu0  ;;  %v1155_v51 = vsel %vm5429_vm6, %v1153_v40, %v1154_v22  ;;  %v1225_v62 = vunpack.c.l.b16 %v1152_v28  ;;  %v4499_v28 = vrot.slane %v1051_v30, 9 }
  0xd8   : > { %v5653_v12 = vpop.f32.mrf.mxu3  ;;  %v1226_v5 = vunpack.c.l.b16 %v1155_v51  ;;  %v1160_v51 = vrot.slane %v1158_v23, 4 }
  0xda   : > { %v1249_v13 = vpack.c.b16 %v1226_v5, %v1225_v62  ;;  %v2016_v62 = vrot.slane %v2014_v36, 4 }
  0xdc   : > { %4521 = vmatmul.msk.bf16.gmra.mxu2 %vm675_vm3, %v1248_v21  ;;  %v5661_v27 = vpop.f32.mrf.mxu1 }
  0xdf   : > { %v5664_v48 = vpop.f32.mrf.mxu2 }
  0xe1   : > { %4641 = vmatmul.msk.bf16.gmra.mxu3 %vm675_vm3, %v5058_v29  ;;  %v2001_v29 = vshrl.u32 %v4677_v15, 16  ;;  %v5038_v15 = vld [vmem:[%s5222_s29 + $0x6c] sm:$0xff] }
  0xe3   : > { %v5672_v16 = vpop.f32.mrf.mxu0  ;;  %v2003_v59 = vrot.slane %v2001_v29, 4 }
  0xe4   : > { %v5675_v63 = vpop.f32.mrf.mxu3  ;;  %v962_v3 = vpop.f32.mrf.mxu1 }
  0xe5   : > { %v963_v21 = vadd.f32 %v962_v3, %v5537_v39  ;;  %v1999_v39 = vsel %vm5234_vm2, %v1994_v9, %v1998_v10  ;;  %v2012_v3 = vrot.slane %v2010_v44, 5  ;;  %v1159_v9 = vsel %vm5429_vm6, %v4499_v28, %v1158_v23 }
  0xe6   : > { %4713 = vmatmul.msk.bf16.gmra.mxu0 %vm675_vm3, %v2211_v53  ;;  %v2188_v53 = vunpack.c.l.b16 %v1989_v24  ;;  %v2189_v54 = vunpack.c.l.b16 %v1999_v39  ;;  %v2020_v24 = vshll.u32 %v4679_v8, 16 }
  0xe7   : > { %v5679_v11 = vpop.f32.mrf.mxu2  ;;  %4482 = vmatmul.msk.bf16.gmra.mxu1 %vm675_vm3, %v5037_v60  ;;  %v2006_v60 = vrot.slane %v2004_v33, 5  ;;  %v2017_v19 = vor.u32 %v2016_v62, %v2012_v3 }
  0xe8   : > { %v2212_v10 = vpack.c.b16 %v2189_v54, %v2188_v53  ;;  %v2022_v43 = vrot.slane %v2020_v24, 5  ;;  %v4681_v53 = vld [vmem:[%s5222_s29 + $0x88] sm:$0xf]  ;;  %v5117_v54 = vld [vmem:[%s5222_s29 + $0x7c] sm:$0xf] }
  0xe9   : > { %v2007_v18 = vor.u32 %v2006_v60, %v2003_v59  ;;  %v1052_v59 = vld [vmem:[%s5222_s29 + $0x78] sm:$0xe] }
  0xeb   : > { %v5690_v22 = vpop.f32.mrf.mxu0  ;;  %v2008_v36 = vrot.slane %v2007_v18, 4 }
  0xec   : > { %v5692_v40 = vpop.f32.mrf.mxu3  ;;  %4522 = vmatmul.msk.bf16.gmra.mxu2 %vm675_vm3, %v1249_v13  ;;  %v964_v38 = vpop.f32.mrf.mxu1 }
  0xed   : > { %v965_v61 = vadd.f32 %v964_v38, %v5560_v6  ;;  %v1162_v6 = vsel %vm5429_vm6, %v1160_v51, %v1161_v45  ;;  %v2018_v38 = vrot.slane %v2017_v19, 4  ;;  %v4680_v45 = vld [vmem:[%s5222_s29 + $0x84] sm:$0xf]  ;;  %v5060_v19 = vld [vmem:[%s5222_s29 + $0x78] sm:$0xff] }
  0xee   : > { %v1228_v29 = vunpack.c.l.b16 %v1162_v6  ;;  %v2028_v60 = vshll.u32 %v4680_v45, 16  ;;  %v2038_v6 = vshrl.u32 %v4681_v53, 16 }
  0xef   : > { %v1326_v57 = vpop.f32.mrf.mxu2  ;;  %v2023_v8 = vsel %vm5234_vm2, %v2018_v38, %v2022_v43 }
  0xf0   : > { %v1406_v5 = vadd.f32 %v1326_v57, %v963_v21  ;;  %v1227_v21 = vunpack.c.l.b16 %v1159_v9  ;;  %v1165_v57 = vrot.slane %v5117_v54, 5  ;;  %v2034_v9 = vshll.u32 %v4681_v53, 16 }
  0xf1   : > { %4642 = vmatmul.msk.bf16.gmra.mxu3 %vm675_vm3, %v5059_v49  ;;  %v2040_v38 = vrot.slane %v2038_v6, 4 }
  0xf2   : > { %v1250_v51 = vpack.c.b16 %v1228_v29, %v1227_v21 }
  0xf3   : > { %v2289_v13 = vpop.f32.mrf.mxu0 }
  0xf4   : > { %v1624_v39 = vpop.f32.mrf.mxu3  ;;  %v967_v30 = vpop.f32.mrf.mxu1 }
  0xf5   : > { %v1704_v33 = vadd.f32 %v1624_v39, %v1406_v5  ;;  %v968_v23 = vadd.f32 %v967_v30, %v5579_v35  ;;  %v2025_v35 = vshrl.u32 %v4680_v45, 16  ;;  %v2013_v5 = vsel %vm5234_vm2, %v2008_v36, %v2012_v3 }
  0xf6   : > { %4714 = vmatmul.msk.bf16.gmra.mxu0 %vm675_vm3, %v2212_v10  ;;  %v5118_v10 = vld [vmem:[%s5222_s29 + $0x80] sm:$0x1]  ;;  %v4500_v39 = vrot.slane %v1052_v59, 9  ;;  %v1167_v30 = vrot.slane %v1165_v57, 4  ;;  %v2190_v21 = vunpack.c.l.b16 %v2013_v5  ;;  %v2191_v3 = vunpack.c.l.b16 %v2023_v8 }
  0xf7   : > { %v1328_v44 = vpop.f32.mrf.mxu2  ;;  %4483 = vmatmul.msk.bf16.gmra.mxu1 %vm675_vm3, %v5038_v15  ;;  %v5709_v49 = vadd.f32 %v2289_v13, %v1704_v33  ;;  %v1168_v13 = vrot.slane %v5118_v10, 5  ;;  %v2027_v29 = vrot.slane %v2025_v35, 4  ;;  %v2030_v33 = vrot.slane %v2028_v60, 5  ;;  %v5039_v35 = vld [vmem:[%s5222_s29 + $0x78] sm:$0xff] }
  0xf8   : > { %v1407_v28 = vadd.f32 %v1328_v44, %v965_v61  ;;  %v2036_v36 = vrot.slane %v2034_v9, 5  ;;  %v2213_v53 = vpack.c.b16 %v2191_v3, %v2190_v21  ;;  %v4684_v21 = vld [vmem:[%s5222_s29 + $0x94] sm:$0xf]  ;;  %v5119_v3 = vld [vmem:[%s5222_s29 + $0x88] sm:$0xf] }
  0xf9   : > { %v2031_v54 = vor.u32 %v2030_v33, %v2027_v29  ;;  %v1172_v29 = vrot.slane %v5119_v3, 5  ;;  %v1053_v33 = vld [vmem:[%s5222_s29 + $0x84] sm:$0xe] }
  0xfa   : > { %v2041_v60 = vor.u32 %v2040_v38, %v2036_v36 }
  0xfb   : > { %v2291_v62 = vpop.f32.mrf.mxu0  ;;  %v2032_v10 = vrot.slane %v2031_v54, 4 }
  0xfc   : > { %v1626_v61 = vpop.f32.mrf.mxu3  ;;  %4523 = vmatmul.msk.bf16.gmra.mxu2 %vm675_vm3, %v1250_v51  ;;  %v969_v15 = vpop.f32.mrf.mxu1  ;;  %v4682_v51 = vld [vmem:[%s5222_s29 + $0x8c] sm:$0x1] }
  0xfd   : > { %v1705_v18 = vadd.f32 %v1626_v61, %v1407_v28  ;;  %v970_v24 = vadd.f32 %v969_v15, %v5597_v0  ;;  %v1166_v28 = vsel %vm5429_vm6, %v4500_v39, %v1165_v57  ;;  %v1169_v0 = vsel %vm5429_vm6, %v1167_v30, %v1168_v13 }
  0xfe   : > { %v2044_v5 = vshll.u32 %v4682_v51, 16  ;;  %v1230_v9 = vunpack.c.l.b16 %v1169_v0  ;;  %v2042_v61 = vrot.slane %v2041_v60, 4  ;;  %v2062_v0 = vshrl.u32 %v4684_v21, 16  ;;  %v5061_v60 = vld [vmem:[%s5222_s29 + $0x84] sm:$0xff] }
  0xff   : > { %v1331_v44 = vpop.f32.mrf.mxu2  ;;  %v5722_v43 = vadd.f32 %v2291_v62, %v1705_v18  ;;  %v4683_v18 = vld [vmem:[%s5222_s29 + $0x90] sm:$0xf] }
 0x100   : > { %v1408_v45 = vadd.f32 %v1331_v44, %v968_v23  ;;  %v1229_v23 = vunpack.c.l.b16 %v1166_v28  ;;  %v2046_v15 = vrot.slane %v2044_v5, 5  ;;  %v2049_v44 = vshrl.u32 %v4683_v18, 16 }
 0x101   : > { %4643 = vmatmul.msk.bf16.gmra.mxu3 %vm675_vm3, %v5060_v19  ;;  %v2052_v51 = vshll.u32 %v4683_v18, 16  ;;  %v2058_v28 = vshll.u32 %v4684_v21, 16  ;;  %v4501_v5 = vrot.slane %v1053_v33, 9 }
 0x102   : > { %v1251_v30 = vpack.c.b16 %v1230_v9, %v1229_v23  ;;  %v2051_v9 = vrot.slane %v2049_v44, 4 }
 0x103   : > { %v2294_v59 = vpop.f32.mrf.mxu0 }
 0x104   : > { %v1629_v8 = vpop.f32.mrf.mxu3  ;;  %v972_v62 = vpop.f32.mrf.mxu1 }
 0x105   : > { %v1706_v6 = vadd.f32 %v1629_v8, %v1408_v45  ;;  %v973_v57 = vadd.f32 %v972_v62, %v5619_v41  ;;  %v2037_v41 = vsel %vm5234_vm2, %v2032_v10, %v2036_v36  ;;  %v2047_v45 = vsel %vm5234_vm2, %v2042_v61, %v2046_v15 }
 0x106   : > { %4715 = vmatmul.msk.bf16.gmra.mxu0 %vm675_vm3, %v2213_v53  ;;  %v5120_v53 = vld [vmem:[%s5222_s29 + $0x8c] sm:$0x1]  ;;  %v1174_v8 = vrot.slane %v1172_v29, 4  ;;  %v2192_v62 = vunpack.c.l.b16 %v2037_v41  ;;  %v2193_v23 = vunpack.c.l.b16 %v2047_v45  ;;  %v2054_v10 = vrot.slane %v2052_v51, 5  ;;  %v5040_v41 = vld [vmem:[%s5222_s29 + $0x84] sm:$0xff] }
 0x107   : > { %v1333_v13 = vpop.f32.mrf.mxu2  ;;  %4484 = vmatmul.msk.bf16.gmra.mxu1 %vm675_vm3, %v5039_v35  ;;  %v5735_v19 = vadd.f32 %v2294_v59, %v1706_v6  ;;  %v1175_v54 = vrot.slane %v5120_v53, 5  ;;  %v2064_v61 = vrot.slane %v2062_v0, 4 }
 0x108   : > { %v1409_v39 = vadd.f32 %v1333_v13, %v970_v24  ;;  %v2060_v13 = vrot.slane %v2058_v28, 5  ;;  %v2214_v21 = vpack.c.b16 %v2193_v23, %v2192_v62  ;;  %v2055_v33 = vor.u32 %v2054_v10, %v2051_v9  ;;  %v4687_v62 = vld [vmem:[%s5222_s29 + $0xa0] sm:$0xf]  ;;  %v1054_v10 = vld [vmem:[%s5222_s29 + $0x90] sm:$0xe] }
 0x10a   : > { %v2065_v44 = vor.u32 %v2064_v61, %v2060_v13 }
 0x10b   : > { %v2296_v38 = vpop.f32.mrf.mxu0 }
 0x10c   : > { %v1631_v24 = vpop.f32.mrf.mxu3  ;;  %4524 = vmatmul.msk.bf16.gmra.mxu2 %vm675_vm3, %v1251_v30  ;;  %v974_v59 = vpop.f32.mrf.mxu1  ;;  %v4685_v30 = vld [vmem:[%s5222_s29 + $0x98] sm:$0x1] }
 0x10d   : > { %v1707_v35 = vadd.f32 %v1631_v24, %v1409_v39  ;;  %v975_v36 = vadd.f32 %v974_v59, %v5646_v7  ;;  %v1173_v7 = vsel %vm5429_vm6, %v4501_v5, %v1172_v29  ;;  %v1176_v39 = vsel %vm5429_vm6, %v1174_v8, %v1175_v54  ;;  %v4686_v29 = vld [vmem:[%s5222_s29 + $0x9c] sm:$0xf] }
 0x10e   : > { %v2068_v45 = vshll.u32 %v4685_v30, 16  ;;  %v1232_v28 = vunpack.c.l.b16 %v1176_v39  ;;  %v2056_v24 = vrot.slane %v2055_v33, 4  ;;  %v2066_v59 = vrot.slane %v2065_v44, 4 }
 0x10f   : > { %v1336_v6 = vpop.f32.mrf.mxu2  ;;  %v5748_v15 = vadd.f32 %v2296_v38, %v1707_v35  ;;  %v2073_v23 = vshrl.u32 %v4686_v29, 16  ;;  %v2076_v9 = vshll.u32 %v4686_v29, 16  ;;  %v2086_v39 = vshrl.u32 %v4687_v62, 16 }
 0x110   : > { %v1410_v18 = vadd.f32 %v1336_v6, %v973_v57  ;;  %v1231_v57 = vunpack.c.l.b16 %v1173_v7  ;;  %v2070_v35 = vrot.slane %v2068_v45, 5  ;;  %v5121_v6 = vld [vmem:[%s5222_s29 + $0x94] sm:$0xf]  ;;  %v2082_v7 = vshll.u32 %v4687_v62, 16 }
 0x111   : > { %4644 = vmatmul.msk.bf16.gmra.mxu3 %vm675_vm3, %v5061_v60  ;;  %v2075_v33 = vrot.slane %v2073_v23, 4  ;;  %v2078_v44 = vrot.slane %v2076_v9, 5 }
 0x112   : > { %v1252_v8 = vpack.c.b16 %v1232_v28, %v1231_v57  ;;  %v2071_v30 = vsel %vm5234_vm2, %v2066_v59, %v2070_v35  ;;  %v4502_v57 = vrot.slane %v1054_v10, 9 }
 0x113   : > { %v2299_v3 = vpop.f32.mrf.mxu0  ;;  %v2079_v62 = vor.u32 %v2078_v44, %v2075_v33  ;;  %v4690_v33 = vld [vmem:[%s5222_s29 + $0xac] sm:$0xf] }
 0x114   : > { %v1634_v51 = vpop.f32.mrf.mxu3  ;;  %v977_v38 = vpop.f32.mrf.mxu1 }
 0x115   : > { %v1708_v0 = vadd.f32 %v1634_v51, %v1410_v18  ;;  %v978_v53 = vadd.f32 %v977_v38, %v5672_v16  ;;  %v1179_v16 = vrot.slane %v5121_v6, 5  ;;  %v2061_v18 = vsel %vm5234_vm2, %v2056_v24, %v2060_v13  ;;  %v5062_v51 = vld [vmem:[%s5222_s29 + $0x90] sm:$0xff] }
 0x116   : > { %4716 = vmatmul.msk.bf16.gmra.mxu0 %vm675_vm3, %v2214_v21  ;;  %v5122_v21 = vld [vmem:[%s5222_s29 + $0x98] sm:$0x1]  ;;  %v2194_v28 = vunpack.c.l.b16 %v2061_v18  ;;  %v2088_v24 = vrot.slane %v2086_v39, 4  ;;  %v5041_v6 = vld [vmem:[%s5222_s29 + $0x90] sm:$0xff] }
 0x117   : > { %v1338_v54 = vpop.f32.mrf.mxu2  ;;  %4485 = vmatmul.msk.bf16.gmra.mxu1 %vm675_vm3, %v5040_v41  ;;  %v5761_v60 = vadd.f32 %v2299_v3, %v1708_v0  ;;  %v1182_v3 = vrot.slane %v5122_v21, 5  ;;  %v1181_v13 = vrot.slane %v1179_v16, 4  ;;  %v2195_v0 = vunpack.c.l.b16 %v2071_v30 }
 0x118   : > { %v1411_v5 = vadd.f32 %v1338_v54, %v975_v36  ;;  %v2084_v54 = vrot.slane %v2082_v7, 5  ;;  %v2080_v21 = vrot.slane %v2079_v62, 4  ;;  %v5124_v62 = vld [vmem:[%s5222_s29 + $0xa4] sm:$0x1] }
 0x119   : > { %v2215_v23 = vpack.c.b16 %v2195_v0, %v2194_v28  ;;  %v5123_v28 = vld [vmem:[%s5222_s29 + $0xa0] sm:$0xf] }
 0x11a   : > { %v2089_v10 = vor.u32 %v2088_v24, %v2084_v54  ;;  %v1186_v0 = vrot.slane %v5123_v28, 5  ;;  %v1055_v24 = vld [vmem:[%s5222_s29 + $0x9c] sm:$0xe] }
 0x11b   : > { %v2301_v61 = vpop.f32.mrf.mxu0 }
 0x11c   : > { %v1636_v36 = vpop.f32.mrf.mxu3  ;;  %4525 = vmatmul.msk.bf16.gmra.mxu2 %vm675_vm3, %v1252_v8  ;;  %v979_v41 = vpop.f32.mrf.mxu1  ;;  %v4688_v8 = vld [vmem:[%s5222_s29 + $0xa4] sm:$0x1] }
 0x11d   : > { %v1709_v45 = vadd.f32 %v1636_v36, %v1411_v5  ;;  %v980_v38 = vadd.f32 %v979_v41, %v5690_v22  ;;  %v1180_v5 = vsel %vm5429_vm6, %v4502_v57, %v1179_v16  ;;  %v1183_v22 = vsel %vm5429_vm6, %v1181_v13, %v1182_v3  ;;  %v4689_v36 = vld [vmem:[%s5222_s29 + $0xa8] sm:$0xf] }
 0x11e   : > { %v2092_v18 = vshll.u32 %v4688_v8, 16  ;;  %v1234_v7 = vunpack.c.l.b16 %v1183_v22  ;;  %v2090_v3 = vrot.slane %v2089_v10, 4  ;;  %v2097_v57 = vshrl.u32 %v4689_v36, 16 }
 0x11f   : > { %v1341_v29 = vpop.f32.mrf.mxu2  ;;  %v5774_v59 = vadd.f32 %v2301_v61, %v1709_v45  ;;  %v2085_v13 = vsel %vm5234_vm2, %v2080_v21, %v2084_v54  ;;  %v2110_v8 = vshrl.u32 %v4690_v33, 16 }
 0x120   : > { %v1412_v35 = vadd.f32 %v1341_v29, %v978_v53  ;;  %v1233_v53 = vunpack.c.l.b16 %v1180_v5  ;;  %v2094_v41 = vrot.slane %v2092_v18, 5  ;;  %v2100_v29 = vshll.u32 %v4689_v36, 16  ;;  %v5063_v18 = vld [vmem:[%s5222_s29 + $0x9c] sm:$0xff] }
 0x121   : > { %4645 = vmatmul.msk.bf16.gmra.mxu3 %vm675_vm3, %v5062_v51  ;;  %v2099_v54 = vrot.slane %v2097_v57, 4 }
 0x122   : > { %v1253_v51 = vpack.c.b16 %v1234_v7, %v1233_v53  ;;  %v2095_v22 = vsel %vm5234_vm2, %v2090_v3, %v2094_v41  ;;  %v1188_v53 = vrot.slane %v1186_v0, 4  ;;  %v2102_v7 = vrot.slane %v2100_v29, 5  ;;  %v4691_v41 = vld [vmem:[%s5222_s29 + $0xb0] sm:$0x1] }
 0x123   : > { %v2304_v9 = vpop.f32.mrf.mxu0  ;;  %v2197_v21 = vunpack.c.l.b16 %v2095_v22 }
 0x124   : > { %v1639_v61 = vpop.f32.mrf.mxu3  ;;  %v982_v30 = vpop.f32.mrf.mxu1  ;;  %v2103_v57 = vor.u32 %v2102_v7, %v2099_v54 }
 0x125   : > { %v1710_v39 = vadd.f32 %v1639_v61, %v1412_v35  ;;  %v2106_v35 = vshll.u32 %v4690_v33, 16  ;;  %v4503_v61 = vrot.slane %v1055_v24, 9  ;;  %v5042_v24 = vld [vmem:[%s5222_s29 + $0x9c] sm:$0xff] }
 0x126   : > { %4717 = vmatmul.msk.bf16.gmra.mxu0 %vm675_vm3, %v2215_v23  ;;  %v1189_v23 = vrot.slane %v5124_v62, 5 }
 0x127   : > { %v1343_v16 = vpop.f32.mrf.mxu2  ;;  %4486 = vmatmul.msk.bf16.gmra.mxu1 %vm675_vm3, %v5041_v6  ;;  %v5787_v44 = vadd.f32 %v2304_v9, %v1710_v39  ;;  %v2196_v9 = vunpack.c.l.b16 %v2085_v13  ;;  %v983_v39 = vadd.f32 %v982_v30, %v5513_v46  ;;  %v2108_v36 = vrot.slane %v2106_v35, 5 }
 0x128   : > { %v1413_v45 = vadd.f32 %v1343_v16, %v980_v38  ;;  %v2112_v16 = vrot.slane %v2110_v8, 4  ;;  %v2116_v13 = vshll.u32 %v4691_v41, 16 }
 0x129   : > { %v2216_v46 = vpack.c.b16 %v2197_v21, %v2196_v9  ;;  %v4692_v9 = vld [vmem:[%s5222_s29 + $0xb4] sm:$0xf] }
 0x12a   : > { %v2113_v30 = vor.u32 %v2112_v16, %v2108_v36  ;;  %v2118_v54 = vrot.slane %v2116_v13, 5  ;;  %v2124_v41 = vshll.u32 %v4692_v9, 16 }
 0x12b   : > { %v2306_v5 = vpop.f32.mrf.mxu0 }
 0x12c   : > { %v1641_v38 = vpop.f32.mrf.mxu3  ;;  %4526 = vmatmul.msk.bf16.gmra.mxu2 %vm675_vm3, %v1253_v51  ;;  %v984_v6 = vpop.f32.mrf.mxu1  ;;  %v1190_v51 = vsel %vm5429_vm6, %v1188_v53, %v1189_v23  ;;  %v2114_v23 = vrot.slane %v2113_v30, 4 }
 0x12d   : > { %v1711_v10 = vadd.f32 %v1641_v38, %v1413_v45  ;;  %v1187_v45 = vsel %vm5429_vm6, %v4503_v61, %v1186_v0  ;;  %v1236_v22 = vunpack.c.l.b16 %v1190_v51  ;;  %v2104_v38 = vrot.slane %v2103_v57, 4  ;;  %v5126_v57 = vld [vmem:[%s5222_s29 + $0xb0] sm:$0x1] }
 0x12e   : > { %v985_v0 = vadd.f32 %v984_v6, %v5529_v31  ;;  %v2121_v31 = vshrl.u32 %v4692_v9, 16  ;;  %v2119_v6 = vsel %vm5234_vm2, %v2114_v23, %v2118_v54 }
 0x12f   : > { %v1346_v3 = vpop.f32.mrf.mxu2  ;;  %v5800_v33 = vadd.f32 %v2306_v5, %v1711_v10  ;;  %v1235_v5 = vunpack.c.l.b16 %v1187_v45  ;;  %v2109_v16 = vsel %vm5234_vm2, %v2104_v38, %v2108_v36 }
 0x130   : > { %v1414_v28 = vadd.f32 %v1346_v3, %v983_v39  ;;  %v5125_v39 = vld [vmem:[%s5222_s29 + $0xac] sm:$0xf]  ;;  %v1056_v3 = vld [vmem:[%s5222_s29 + $0xa8] sm:$0xe] }
 0x131   : > { %4646 = vmatmul.msk.bf16.gmra.mxu3 %vm675_vm3, %v5063_v18  ;;  %v4693_v18 = vld [vmem:[%s5222_s29 + $0xb8] sm:$0xf]  ;;  %v1254_v7 = vpack.c.b16 %v1236_v22, %v1235_v5  ;;  %v1193_v21 = vrot.slane %v5125_v39, 5  ;;  %v2198_v5 = vunpack.c.l.b16 %v2109_v16  ;;  %v2199_v22 = vunpack.c.l.b16 %v2119_v6  ;;  %v4694_v39 = vld [vmem:[%s5222_s29 + $0xbc] sm:$0x1] }
 0x132   : > { %v2134_v45 = vshrl.u32 %v4693_v18, 16 }
 0x133   : > { %v2309_v29 = vpop.f32.mrf.mxu0 }
 0x134   : > { %v1644_v35 = vpop.f32.mrf.mxu3  ;;  %v987_v8 = vpop.f32.mrf.mxu1  ;;  %v2136_v54 = vrot.slane %v2134_v45, 4 }
 0x135   : > { %v1712_v62 = vadd.f32 %v1644_v35, %v1414_v28  ;;  %v2130_v28 = vshll.u32 %v4693_v18, 16  ;;  %v5064_v35 = vld [vmem:[%s5222_s29 + $0xa8] sm:$0xff]  ;;  %v988_v38 = vadd.f32 %v987_v8, %v5549_v55  ;;  %v2217_v55 = vpack.c.b16 %v2199_v22, %v2198_v5 }
 0x136   : > { %4718 = vmatmul.msk.bf16.gmra.mxu0 %vm675_vm3, %v2216_v46  ;;  %v1196_v46 = vrot.slane %v5126_v57, 5 }
 0x137   : > { %v1348_v10 = vpop.f32.mrf.mxu2  ;;  %4487 = vmatmul.msk.bf16.gmra.mxu1 %vm675_vm3, %v5042_v24  ;;  %v5813_v61 = vadd.f32 %v2309_v29, %v1712_v62  ;;  %v4504_v29 = vrot.slane %v1056_v3, 9  ;;  %v1195_v24 = vrot.slane %v1193_v21, 4  ;;  %v2123_v62 = vrot.slane %v2121_v31, 4  ;;  %v5043_v31 = vld [vmem:[%s5222_s29 + $0xa8] sm:$0xff] }
 0x138   : > { %v1415_v53 = vadd.f32 %v1348_v10, %v985_v0  ;;  %v2126_v0 = vrot.slane %v2124_v41, 5  ;;  %v5825_v23 = vrot.slane %v2130_v28, 5  ;;  %v2140_v28 = vshll.u32 %v4694_v39, 16 }
 0x13a   : > { %v2127_v8 = vor.u32 %v2126_v0, %v2123_v62  ;;  %v2137_v16 = vor.u32 %v2136_v54, %v5825_v23  ;;  %v2142_v62 = vrot.slane %v2140_v28, 5 }
 0x13b   : > { %v2311_v51 = vpop.f32.mrf.mxu0 }
 0x13c   : > { %v1646_v30 = vpop.f32.mrf.mxu3  ;;  %4527 = vmatmul.msk.bf16.gmra.mxu2 %vm675_vm3, %v1254_v7  ;;  %v989_v13 = vpop.f32.mrf.mxu1  ;;  %v1194_v7 = vsel %vm5429_vm6, %v4504_v29, %v1193_v21  ;;  %v4695_v21 = vld [vmem:[%s5222_s29 + $0xc0] sm:$0xf]  ;;  %v5127_v29 = vld [vmem:[%s5222_s29 + $0x10] sm:$0xf] }
 0x13d   : > { %v1713_v36 = vadd.f32 %v1646_v30, %v1415_v53  ;;  %v1197_v53 = vsel %vm5429_vm6, %v1195_v24, %v1196_v46  ;;  %v1237_v6 = vunpack.c.l.b16 %v1194_v7  ;;  %v4696_v30 = vld [vmem:[%s5222_s29 + $0xc4] sm:$0xf]  ;;  %v2467_v46 = vrot.slane %v5127_v29, 5 }
 0x13e   : > { %v1238_v41 = vunpack.c.l.b16 %v1197_v53  ;;  %v990_v24 = vadd.f32 %v989_v13, %v5566_v25  ;;  %v2148_v0 = vshll.u32 %v4695_v21, 16  ;;  %v5128_v53 = vld [vmem:[%s5222_s29 + $0xb8] sm:$0xf]  ;;  %v1057_v13 = vld [vmem:[%s5222_s29 + $0xb4] sm:$0xe] }
 0x13f   : > { %v1351_v9 = vpop.f32.mrf.mxu2  ;;  %v5827_v10 = vadd.f32 %v2311_v51, %v1713_v36  ;;  %v2128_v36 = vrot.slane %v2127_v8, 4  ;;  %v1200_v39 = vrot.slane %v5128_v53, 5  ;;  %v2469_v8 = vrot.slane %v2467_v46, 4  ;;  %v5065_v53 = vld [vmem:[%s5222_s29 + $0xb4] sm:$0xff] }
 0x140   : > { %v1416_v18 = vadd.f32 %v1351_v9, %v988_v38  ;;  %v1255_v22 = vpack.c.b16 %v1238_v41, %v1237_v6  ;;  %v2145_v38 = vshrl.u32 %v4695_v21, 16  ;;  %v2154_v9 = vshll.u32 %v4696_v30, 16 }
 0x141   : > { %6635 = vst [vmem:[#allocation2_spill] sm:$0xff] %v5827_v10  ;;  %4647 = vmatmul.msk.bf16.gmra.mxu3 %vm675_vm3, %v5064_v35  ;;  %v2138_v35 = vrot.slane %v2137_v16, 4  ;;  %v5130_v16 = vld [vmem:[%s5222_s29 + $0x14] sm:$0x1]  ;;  %v2133_v6 = vsel %vm5234_vm2, %v2128_v36, %v5825_v23 }
 0x142   : > { %v2147_v21 = vrot.slane %v2145_v38, 4  ;;  %v2200_v36 = vunpack.c.l.b16 %v2133_v6 }
 0x143   : > { %v2314_v3 = vpop.f32.mrf.mxu0  ;;  %v2143_v41 = vsel %vm5234_vm2, %v2138_v35, %v2142_v62  ;;  %v4697_v62 = vld [vmem:[%s5222_s29 + $0xc8] sm:$0x1] }
 0x144   : > { %v1649_v45 = vpop.f32.mrf.mxu3  ;;  %v992_v51 = vpop.f32.mrf.mxu1  ;;  %v2201_v35 = vunpack.c.l.b16 %v2143_v41  ;;  %v5044_v41 = vld [vmem:[%s5222_s29 + $0xb4] sm:$0xff] }
 0x145   : > { %v1714_v57 = vadd.f32 %v1649_v45, %v1416_v18  ;;  %v2158_v18 = vshrl.u32 %v4696_v30, 16  ;;  %v2470_v45 = vrot.slane %v5130_v16, 5  ;;  %v5855_v30 = vrot.slane %v2154_v9, 5 }
 0x146   : > { %4719 = vmatmul.msk.bf16.gmra.mxu0 %vm675_vm3, %v2217_v55  ;;  %v5129_v55 = vld [vmem:[%s5222_s29 + $0xbc] sm:$0x1]  ;;  %v1202_v16 = vrot.slane %v1200_v39, 4  ;;  %v993_v23 = vadd.f32 %v992_v51, %v5586_v50 }
 0x147   : > { %v1353_v5 = vpop.f32.mrf.mxu2  ;;  %4488 = vmatmul.msk.bf16.gmra.mxu1 %vm675_vm3, %v5043_v31  ;;  %v5843_v7 = vadd.f32 %v2314_v3, %v1714_v57  ;;  %v1203_v25 = vrot.slane %v5129_v55, 5  ;;  %v2150_v57 = vrot.slane %v2148_v0, 5  ;;  %v2160_v29 = vrot.slane %v2158_v18, 4 }
 0x148   : > { %v1417_v54 = vadd.f32 %v1353_v5, %v990_v24  ;;  %v4722_v24 = vld [vmem:[%s5222_s29 + $0xc] sm:$0xe]  ;;  %v4505_v55 = vrot.slane %v1057_v13, 9  ;;  %v2471_v38 = vsel %vm5429_vm6, %v2469_v8, %v2470_v45  ;;  %v4898_v8 = vld [vmem:[%s5222_s29 + $0x18] sm:$0xf] }
 0x149   : > { %6636 = vst [vmem:[#allocation3_spill] sm:$0xff] %v5843_v7  ;;  %v4738_v7 = vrot.slane %v4722_v24, 9  ;;  %v2582_v18 = vunpack.c.l.b16 %v2471_v38  ;;  %v1204_v51 = vsel %vm5429_vm6, %v1202_v16, %v1203_v25  ;;  %v2161_v13 = vor.u32 %v2160_v29, %v5855_v30 }
 0x14a   : > { %v1201_v50 = vsel %vm5429_vm6, %v4505_v55, %v1200_v39  ;;  %v1240_v39 = vunpack.c.l.b16 %v1204_v51  ;;  %v3157_v29 = vshrl.u32 %v4898_v8, 16  ;;  %v4900_v51 = vld [vmem:[%s5222_s29 + $0x20] sm:$0x1] }
 0x14b   : > { %v2316_v31 = vpop.f32.mrf.mxu0  ;;  %v1239_v24 = vunpack.c.l.b16 %v1201_v50  ;;  %v2162_v25 = vrot.slane %v2161_v13, 4 }
 0x14c   : > { %v1651_v3 = vpop.f32.mrf.mxu3  ;;  %4528 = vmatmul.msk.bf16.gmra.mxu2 %vm675_vm3, %v1255_v22  ;;  %v994_v28 = vpop.f32.mrf.mxu1  ;;  %v2468_v22 = vsel %vm5429_vm6, %v4738_v7, %v2467_v46  ;;  %v2164_v46 = vshll.u32 %v4697_v62, 16  ;;  %v2218_v7 = vpack.c.b16 %v2201_v35, %v2200_v36 }
 0x14d   : > { %v1715_v5 = vadd.f32 %v1651_v3, %v1417_v54  ;;  %v2151_v54 = vor.u32 %v2150_v57, %v2147_v21  ;;  %v2581_v9 = vunpack.c.l.b16 %v2468_v22  ;;  %v5878_v3 = vld [vmem:[%s5222_s29 + $0x1c] sm:$0xf]  ;;  %v1256_v22 = vpack.c.b16 %v1240_v39, %v1239_v24 }
 0x14e   : > { %v2166_v16 = vrot.slane %v2164_v46, 5  ;;  %v3170_v36 = vshrl.u32 %v5878_v3, 16  ;;  %v3176_v39 = vshll.u32 %v4900_v51, 16 }
 0x14f   : > { %v1356_v10 = vpop.f32.mrf.mxu2  ;;  %v5871_v6 = vpack.c.b16 %v2582_v18, %v2581_v9  ;;  %v5874_v45 = vadd.f32 %v2316_v31, %v1715_v5  ;;  %v3160_v31 = vshll.u32 %v4898_v8, 16  ;;  %v3166_v5 = vshll.u32 %v5878_v3, 16  ;;  %v5066_v8 = vld [vmem:[%s5222_s29 + $0xc0] sm:$0xff] }
 0x150   : > { %v1418_v0 = vadd.f32 %v1356_v10, %v993_v23  ;;  %v995_v23 = vadd.f32 %v994_v28, %v5606_v14  ;;  %v2167_v14 = vsel %vm5234_vm2, %v2162_v25, %v2166_v16  ;;  %v3159_v28 = vrot.slane %v3157_v29, 4  ;;  %v4901_v25 = vld [vmem:[%s5222_s29 + $0x24] sm:$0xf] }
 0x151   : > { %4648 = vmatmul.msk.bf16.gmra.mxu3 %vm675_vm3, %v5065_v53  ;;  %v2152_v53 = vrot.slane %v2151_v54, 4  ;;  %v3162_v54 = vrot.slane %v3160_v31, 5  ;;  %v3168_v9 = vrot.slane %v3166_v5, 5  ;;  %v3172_v18 = vrot.slane %v3170_v36, 4  ;;  %v5899_v5 = vld [vmem:[%s5222_s29 + $0x28] sm:$0xf] }
 0x152   : > { %v3178_v31 = vrot.slane %v3176_v39, 5 }
 0x153   : > { %v2319_v10 = vpop.f32.mrf.mxu0  ;;  %v3173_v24 = vor.u32 %v3172_v18, %v3168_v9  ;;  %v5132_v18 = vld [vmem:[%s5222_s29 + $0x20] sm:$0x1] }
 0x154   : > { %v1654_v21 = vpop.f32.mrf.mxu3  ;;  %v997_v57 = vpop.f32.mrf.mxu1 }
 0x155   : > { %v1716_v55 = vadd.f32 %v1654_v21, %v1418_v0  ;;  %v2157_v0 = vsel %vm5234_vm2, %v2152_v53, %v5855_v30  ;;  %v998_v30 = vadd.f32 %v997_v57, %v5632_v56  ;;  %v3163_v21 = vor.u32 %v3162_v54, %v3159_v28  ;;  %v4970_v57 = vld [vmem:[%s5222_s29 + $0x18] sm:$0xe]  ;;  %v5131_v28 = vld [vmem:[%s5222_s29 + $0x1c] sm:$0xf] }
 0x156   : > { %4720 = vmatmul.msk.bf16.gmra.mxu0 %vm675_vm3, %v2218_v7  ;;  %v2474_v54 = vrot.slane %v5131_v28, 5 }
 0x157   : > { %v1358_v35 = vpop.f32.mrf.mxu2  ;;  %4489 = vmatmul.msk.bf16.gmra.mxu1 %vm675_vm3, %v5044_v41  ;;  %v5885_v38 = vadd.f32 %v2319_v10, %v1716_v55  ;;  %v2202_v10 = vunpack.c.l.b16 %v2157_v0  ;;  %v2203_v41 = vunpack.c.l.b16 %v2167_v14  ;;  %v3164_v29 = vrot.slane %v3163_v21, 4 }
 0x158   : > { %v1419_v62 = vadd.f32 %v1358_v35, %v995_v23  ;;  %v3174_v23 = vrot.slane %v3173_v24, 4  ;;  %v3839_v35 = vrot.slane %v5878_v3, 5  ;;  %v4986_v21 = vrot.slane %v4970_v57, 9 }
 0x159   : > { %v2219_v16 = vpack.c.b16 %v2203_v41, %v2202_v10  ;;  %v4723_v10 = vld [vmem:[%s5222_s29 + $0x18] sm:$0xe]  ;;  %v3190_v41 = vshll.u32 %v5899_v5, 16  ;;  %v3169_v3 = vsel %vm5234_vm2, %v3164_v29, %v3168_v9 }
 0x15a   : > { %v3841_v39 = vrot.slane %v3839_v35, 4  ;;  %v4739_v28 = vrot.slane %v4723_v10, 9  ;;  %v3544_v9 = vunpack.c.l.b16 %v3169_v3 }
 0x15b   : > { %v2321_v50 = vpop.f32.mrf.mxu0 }
 0x15c   : > { %v1656_v13 = vpop.f32.mrf.mxu3  ;;  %4529 = vmatmul.msk.bf16.gmra.mxu2 %vm675_vm3, %v1256_v22  ;;  %v999_v46 = vpop.f32.mrf.mxu1  ;;  %v3184_v22 = vshll.u32 %v4901_v25, 16 }
 0x15d   : > { %v1717_v7 = vadd.f32 %v1656_v13, %v1419_v62  ;;  %v3181_v62 = vshrl.u32 %v4901_v25, 16  ;;  %v2477_v13 = vrot.slane %v5132_v18, 5  ;;  %v3192_v18 = vrot.slane %v3190_v41, 5 }
 0x15e   : > { %v3186_v25 = vrot.slane %v3184_v22, 5 }
 0x15f   : > { %v1361_v53 = vpop.f32.mrf.mxu2  ;;  %v5901_v36 = vadd.f32 %v2321_v50, %v1717_v7  ;;  %v3194_v50 = vshrl.u32 %v5899_v5, 16  ;;  %v1000_v7 = vadd.f32 %v999_v46, %v5661_v27  ;;  %v2476_v27 = vrot.slane %v2474_v54, 4 }
 0x160   : > { %v1420_v55 = vadd.f32 %v1361_v53, %v998_v30  ;;  %v3179_v30 = vsel %vm5234_vm2, %v3174_v23, %v3178_v31  ;;  %v3842_v53 = vrot.slane %v4900_v51, 5  ;;  %v5922_v31 = vld [vmem:[%s5222_s29 + $0x2c] sm:$0x1] }
 0x161   : > { %4649 = vmatmul.msk.bf16.gmra.mxu3 %vm675_vm3, %v5066_v8  ;;  %v3545_v29 = vunpack.c.l.b16 %v3179_v30  ;;  %v3196_v23 = vrot.slane %v3194_v50, 4 }
 0x162   : > { %v3843_v51 = vsel %vm5429_vm6, %v3841_v39, %v3842_v53 }
 0x163   : > { %v2324_v56 = vpop.f32.mrf.mxu0  ;;  %v3576_v50 = vpack.c.b16 %v3545_v29, %v3544_v9  ;;  %v5942_v29 = vld [vmem:[%s5222_s29 + $0x34] sm:$0xf] }
 0x164   : > { %v1659_v0 = vpop.f32.mrf.mxu3  ;;  %v1002_v14 = vpop.f32.mrf.mxu1 }
 0x165   : > { %v1718_v8 = vadd.f32 %v1659_v0, %v1420_v55  ;;  %v3183_v55 = vrot.slane %v3181_v62, 4  ;;  %v1003_v3 = vadd.f32 %v1002_v14, %v5531_v34 }
 0x166   : > { %4721 = vmatmul.msk.bf16.gmra.mxu0 %vm675_vm3, %v2219_v16  ;;  %v5073_v16 = vld [vmem:[%s5222_s29 + $0x18] sm:$0xff] }
 0x167   : > { %v1363_v24 = vpop.f32.mrf.mxu2  ;;  %4762 = vmatmul.msk.bf16.vlgmr.msra.gmra.mxu1 %vm675_vm3, %v5871_v6  ;;  %v5919_v46 = vadd.f32 %v2324_v56, %v1718_v8  ;;  %v3840_v6 = vsel %vm5429_vm6, %v4986_v21, %v3839_v35  ;;  %v2475_v56 = vsel %vm5429_vm6, %v4739_v28, %v2474_v54  ;;  %v2478_v8 = vsel %vm5429_vm6, %v2476_v27, %v2477_v13  ;;  %v4904_v27 = vld [vmem:[%s5222_s29 + $0x30] sm:$0xf] }
 0x168   : > { %v1421_v0 = vadd.f32 %v1363_v24, %v1000_v7  ;;  %v3187_v10 = vor.u32 %v3186_v25, %v3183_v55  ;;  %v3197_v7 = vor.u32 %v3196_v23, %v3192_v18  ;;  %v3200_v35 = vshll.u32 %v5922_v31, 16  ;;  %v4971_v25 = vld [vmem:[%s5222_s29 + $0x24] sm:$0xe] }
 0x169   : > { %v3953_v30 = vunpack.c.l.b16 %v3840_v6  ;;  %v3954_v21 = vunpack.c.l.b16 %v3843_v51  ;;  %v2583_v39 = vunpack.c.l.b16 %v2475_v56  ;;  %v2584_v53 = vunpack.c.l.b16 %v2478_v8  ;;  %v5133_v8 = vld [vmem:[%s5222_s29 + $0x28] sm:$0xf] }
 0x16a   : > { %v3198_v13 = vrot.slane %v3197_v7, 4  ;;  %v3202_v55 = vrot.slane %v3200_v35, 5  ;;  %v3849_v56 = vrot.slane %v5922_v31, 5  ;;  %v3205_v7 = vshrl.u32 %v4904_v27, 16  ;;  %v5134_v31 = vld [vmem:[%s5222_s29 + $0x2c] sm:$0x1] }
 0x16b   : > { %v2326_v57 = vpop.f32.mrf.mxu0  ;;  %v3985_v28 = vpack.c.b16 %v3954_v21, %v3953_v30  ;;  %v2614_v9 = vpack.c.b16 %v2584_v53, %v2583_v39  ;;  %v3218_v30 = vshrl.u32 %v5942_v29, 16  ;;  %v2484_v21 = vrot.slane %v5134_v31, 5  ;;  %v5074_v53 = vld [vmem:[%s5222_s29 + $0x24] sm:$0xff] }
 0x16c   : > { %v1661_v62 = vpop.f32.mrf.mxu3  ;;  %4882 = vmatmul.msk.bf16.vlgmr.msra.gmra.mxu2 %vm675_vm3, %v5073_v16  ;;  %v1004_v22 = vpop.f32.mrf.mxu1  ;;  %v3188_v16 = vrot.slane %v3187_v10, 4 }
 0x16d   : > { %v1719_v41 = vadd.f32 %v1661_v62, %v1421_v0  ;;  %v3846_v0 = vrot.slane %v5899_v5, 5  ;;  %v4987_v62 = vrot.slane %v4971_v25, 9  ;;  %v2481_v5 = vrot.slane %v5133_v8, 5 }
 0x16e   : > { %v3193_v51 = vsel %vm5234_vm2, %v3188_v16, %v3192_v18  ;;  %v1005_v35 = vadd.f32 %v1004_v22, %v5552_v1  ;;  %v3214_v18 = vshll.u32 %v5942_v29, 16  ;;  %v3220_v8 = vrot.slane %v3218_v30, 4 }
 0x16f   : > { %v1366_v24 = vpop.f32.mrf.mxu2  ;;  %v5939_v34 = vadd.f32 %v2326_v57, %v1719_v41  ;;  %v3203_v57 = vsel %vm5234_vm2, %v3198_v13, %v3202_v55  ;;  %v3848_v41 = vrot.slane %v3846_v0, 4  ;;  %v2483_v16 = vrot.slane %v2481_v5, 4 }
 0x170   : > { %v1422_v54 = vadd.f32 %v1366_v24, %v1003_v3  ;;  %v3208_v3 = vshll.u32 %v4904_v27, 16  ;;  %v3546_v55 = vunpack.c.l.b16 %v3193_v51  ;;  %v3547_v25 = vunpack.c.l.b16 %v3203_v57 }
 0x171   : > { %4954 = vmatmul.msk.bf16.vlgmr.msra.gmra.mxu3 %vm675_vm3, %v3576_v50  ;;  %v4724_v50 = vld [vmem:[%s5222_s29 + $0x24] sm:$0xe]  ;;  %v3847_v1 = vsel %vm5429_vm6, %v4987_v62, %v3846_v0  ;;  %v3850_v22 = vsel %vm5429_vm6, %v3848_v41, %v3849_v56  ;;  %v2485_v0 = vsel %vm5429_vm6, %v2483_v16, %v2484_v21 }
 0x172   : > { %v3210_v27 = vrot.slane %v3208_v3, 5  ;;  %v3577_v56 = vpack.c.b16 %v3547_v25, %v3546_v55  ;;  %v3956_v57 = vunpack.c.l.b16 %v3850_v22  ;;  %v3853_v22 = vrot.slane %v5942_v29, 5 }
 0x173   : > { %v2329_v14 = vpop.f32.mrf.mxu0 }
 0x174   : > { %v1664_v23 = vpop.f32.mrf.mxu3  ;;  %v1007_v6 = vpop.f32.mrf.mxu1 }
 0x175   : > { %v1720_v10 = vadd.f32 %v1664_v23, %v1422_v54  ;;  %v4740_v54 = vrot.slane %v4724_v50, 9  ;;  %v3216_v23 = vrot.slane %v3214_v18, 5  ;;  %v1008_v41 = vadd.f32 %v1007_v6, %v5569_v17  ;;  %v5977_v17 = vld [vmem:[%s5222_s29 + $0x40] sm:$0xf] }
 0x176   : > { %5010 = vmatmul.msk.bf16.vlgmr.msra.gmra.mxu0 %vm675_vm3, %v3985_v28  ;;  %v3207_v28 = vrot.slane %v3205_v7, 4 }
 0x177   : > { %v1368_v24 = vpop.f32.mrf.mxu2  ;;  %4763 = vmatmul.msk.bf16.gmra.mxu1 %vm675_vm3, %v2614_v9  ;;  %v5958_v13 = vadd.f32 %v2329_v14, %v1720_v10  ;;  %v5965_v9 = vld [vmem:[%s5222_s29 + $0x38] sm:$0x1]  ;;  %v2482_v51 = vsel %vm5429_vm6, %v4740_v54, %v2481_v5  ;;  %v3955_v10 = vunpack.c.l.b16 %v3847_v1  ;;  %v3221_v7 = vor.u32 %v3220_v8, %v3216_v23  ;;  %v4907_v5 = vld [vmem:[%s5222_s29 + $0x3c] sm:$0xf]  ;;  %v4972_v1 = vld [vmem:[%s5222_s29 + $0x30] sm:$0xe] }
 0x178   : > { %v1423_v39 = vadd.f32 %v1368_v24, %v1005_v35  ;;  %v3211_v50 = vor.u32 %v3210_v27, %v3207_v28  ;;  %v3224_v3 = vshll.u32 %v5965_v9, 16  ;;  %v2585_v30 = vunpack.c.l.b16 %v2482_v51  ;;  %v5135_v51 = vld [vmem:[%s5222_s29 + $0x34] sm:$0xf] }
 0x179   : > { %v2586_v24 = vunpack.c.l.b16 %v2485_v0  ;;  %v3986_v21 = vpack.c.b16 %v3956_v57, %v3955_v10  ;;  %v3222_v54 = vrot.slane %v3221_v7, 4  ;;  %v3229_v28 = vshrl.u32 %v4907_v5, 16 }
 0x17a   : > { %v3226_v16 = vrot.slane %v3224_v3, 5  ;;  %v3232_v27 = vshll.u32 %v4907_v5, 16  ;;  %v2488_v0 = vrot.slane %v5135_v51, 5  ;;  %v4988_v3 = vrot.slane %v4972_v1, 9 }
 0x17b   : > { %v2331_v31 = vpop.f32.mrf.mxu0  ;;  %v2615_v25 = vpack.c.b16 %v2586_v24, %v2585_v30  ;;  %v3855_v30 = vrot.slane %v3853_v22, 4  ;;  %v3856_v24 = vrot.slane %v5965_v9, 5 }
 0x17c   : > { %v1666_v35 = vpop.f32.mrf.mxu3  ;;  %4883 = vmatmul.msk.bf16.gmra.mxu2 %vm675_vm3, %v5074_v53  ;;  %v1009_v14 = vpop.f32.mrf.mxu1  ;;  %v3227_v7 = vsel %vm5234_vm2, %v3222_v54, %v3226_v16  ;;  %v3234_v5 = vrot.slane %v3232_v27, 5  ;;  %v6000_v16 = vld [vmem:[%s5222_s29 + $0x44] sm:$0x1] }
 0x17d   : > { %v1721_v62 = vadd.f32 %v1666_v35, %v1423_v39  ;;  %v3212_v39 = vrot.slane %v3211_v50, 4  ;;  %v3238_v50 = vshll.u32 %v5977_v17, 16  ;;  %v3857_v9 = vsel %vm5429_vm6, %v3855_v30, %v3856_v24 }
 0x17f   : > { %v1371_v18 = vpop.f32.mrf.mxu2  ;;  %v5979_v6 = vadd.f32 %v2331_v31, %v1721_v62  ;;  %v3242_v31 = vshrl.u32 %v5977_v17, 16  ;;  %v1010_v62 = vadd.f32 %v1009_v14, %v5590_v52  ;;  %v3217_v29 = vsel %vm5234_vm2, %v3212_v39, %v3216_v23 }
 0x180   : > { %v1424_v53 = vadd.f32 %v1371_v18, %v1008_v41  ;;  %v4725_v41 = vld [vmem:[%s5222_s29 + $0x30] sm:$0xe]  ;;  %v2490_v52 = vrot.slane %v2488_v0, 4  ;;  %v3548_v23 = vunpack.c.l.b16 %v3217_v29  ;;  %v3549_v39 = vunpack.c.l.b16 %v3227_v7 }
 0x181   : > { %4955 = vmatmul.msk.bf16.gmra.mxu3 %vm675_vm3, %v3577_v56  ;;  %v5136_v56 = vld [vmem:[%s5222_s29 + $0x38] sm:$0x1]  ;;  %v4741_v51 = vrot.slane %v4725_v41, 9  ;;  %v3244_v54 = vrot.slane %v3242_v31, 4 }
 0x182   : > { %v2491_v10 = vrot.slane %v5136_v56, 5  ;;  %v3240_v56 = vrot.slane %v3238_v50, 5  ;;  %v3578_v31 = vpack.c.b16 %v3549_v39, %v3548_v23  ;;  %v6020_v39 = vld [vmem:[%s5222_s29 + $0x4c] sm:$0xf] }
 0x183   : > { %v2334_v55 = vpop.f32.mrf.mxu0 }
 0x184   : > { %v1669_v8 = vpop.f32.mrf.mxu3  ;;  %v1012_v35 = vpop.f32.mrf.mxu1 }
 0x185   : > { %v1722_v57 = vadd.f32 %v1669_v8, %v1424_v53  ;;  %v3231_v53 = vrot.slane %v3229_v28, 4  ;;  %v1013_v29 = vadd.f32 %v1012_v35, %v5613_v20 }
 0x186   : > { %5011 = vmatmul.msk.bf16.gmra.mxu0 %vm675_vm3, %v3986_v21  ;;  %v5075_v21 = vld [vmem:[%s5222_s29 + $0x30] sm:$0xff] }
 0x187   : > { %v1373_v18 = vpop.f32.mrf.mxu2  ;;  %4764 = vmatmul.msk.bf16.gmra.mxu1 %vm675_vm3, %v2615_v25  ;;  %v5997_v14 = vadd.f32 %v2334_v55, %v1722_v57  ;;  %v3854_v25 = vsel %vm5429_vm6, %v4988_v3, %v3853_v22  ;;  %v2489_v55 = vsel %vm5429_vm6, %v4741_v51, %v2488_v0  ;;  %v2492_v57 = vsel %vm5429_vm6, %v2490_v52, %v2491_v10  ;;  %v4910_v52 = vld [vmem:[%s5222_s29 + $0x48] sm:$0xf] }
 0x188   : > { %v1425_v8 = vadd.f32 %v1373_v18, %v1010_v62  ;;  %v3235_v41 = vor.u32 %v3234_v5, %v3231_v53  ;;  %v3245_v62 = vor.u32 %v3244_v54, %v3240_v56  ;;  %v3248_v22 = vshll.u32 %v6000_v16, 16  ;;  %v4973_v5 = vld [vmem:[%s5222_s29 + $0x3c] sm:$0xe] }
 0x189   : > { %v3957_v7 = vunpack.c.l.b16 %v3854_v25  ;;  %v3958_v3 = vunpack.c.l.b16 %v3857_v9  ;;  %v2587_v30 = vunpack.c.l.b16 %v2489_v55  ;;  %v2588_v24 = vunpack.c.l.b16 %v2492_v57  ;;  %v5137_v57 = vld [vmem:[%s5222_s29 + $0x40] sm:$0xf] }
 0x18a   : > { %v3246_v10 = vrot.slane %v3245_v62, 4  ;;  %v3250_v53 = vrot.slane %v3248_v22, 5  ;;  %v3863_v55 = vrot.slane %v6000_v16, 5  ;;  %v3253_v62 = vshrl.u32 %v4910_v52, 16  ;;  %v5138_v16 = vld [vmem:[%s5222_s29 + $0x44] sm:$0x1] }
 0x18b   : > { %v2336_v1 = vpop.f32.mrf.mxu0  ;;  %v3987_v51 = vpack.c.b16 %v3958_v3, %v3957_v7  ;;  %v2616_v23 = vpack.c.b16 %v2588_v24, %v2587_v30  ;;  %v3266_v7 = vshrl.u32 %v6020_v39, 16  ;;  %v2498_v3 = vrot.slane %v5138_v16, 5  ;;  %v5076_v24 = vld [vmem:[%s5222_s29 + $0x3c] sm:$0xff] }
 0x18c   : > { %v1671_v28 = vpop.f32.mrf.mxu3  ;;  %4884 = vmatmul.msk.bf16.gmra.mxu2 %vm675_vm3, %v5075_v21  ;;  %v1014_v27 = vpop.f32.mrf.mxu1  ;;  %v3236_v21 = vrot.slane %v3235_v41, 4 }
 0x18d   : > { %v1723_v50 = vadd.f32 %v1671_v28, %v1425_v8  ;;  %v3860_v8 = vrot.slane %v5977_v17, 5  ;;  %v4989_v28 = vrot.slane %v4973_v5, 9  ;;  %v2495_v17 = vrot.slane %v5137_v57, 5 }
 0x18e   : > { %v3241_v9 = vsel %vm5234_vm2, %v3236_v21, %v3240_v56  ;;  %v1015_v22 = vadd.f32 %v1014_v27, %v5634_v58  ;;  %v3262_v56 = vshll.u32 %v6020_v39, 16  ;;  %v3268_v57 = vrot.slane %v3266_v7, 4 }
 0x18f   : > { %v1376_v18 = vpop.f32.mrf.mxu2  ;;  %v6017_v20 = vadd.f32 %v2336_v1, %v1723_v50  ;;  %v3251_v1 = vsel %vm5234_vm2, %v3246_v10, %v3250_v53  ;;  %v3862_v50 = vrot.slane %v3860_v8, 4  ;;  %v2497_v21 = vrot.slane %v2495_v17, 4 }
 0x190   : > { %v1426_v0 = vadd.f32 %v1376_v18, %v1013_v29  ;;  %v3256_v29 = vshll.u32 %v4910_v52, 16  ;;  %v3550_v53 = vunpack.c.l.b16 %v3241_v9  ;;  %v3551_v5 = vunpack.c.l.b16 %v3251_v1 }
 0x191   : > { %4956 = vmatmul.msk.bf16.gmra.mxu3 %vm675_vm3, %v3578_v31  ;;  %v4726_v31 = vld [vmem:[%s5222_s29 + $0x3c] sm:$0xe]  ;;  %v3861_v58 = vsel %vm5429_vm6, %v4989_v28, %v3860_v8  ;;  %v3864_v27 = vsel %vm5429_vm6, %v3862_v50, %v3863_v55  ;;  %v2499_v8 = vsel %vm5429_vm6, %v2497_v21, %v2498_v3 }
 0x192   : > { %v3258_v52 = vrot.slane %v3256_v29, 5  ;;  %v3579_v55 = vpack.c.b16 %v3551_v5, %v3550_v53  ;;  %v3960_v1 = vunpack.c.l.b16 %v3864_v27  ;;  %v3867_v27 = vrot.slane %v6020_v39, 5 }
 0x193   : > { %v2339_v35 = vpop.f32.mrf.mxu0 }
 0x194   : > { %v1674_v54 = vpop.f32.mrf.mxu3  ;;  %v1017_v25 = vpop.f32.mrf.mxu1 }
 0x195   : > { %v1724_v41 = vadd.f32 %v1674_v54, %v1426_v0  ;;  %v4742_v0 = vrot.slane %v4726_v31, 9  ;;  %v3264_v54 = vrot.slane %v3262_v56, 5  ;;  %v1018_v50 = vadd.f32 %v1017_v25, %v5664_v48  ;;  %v6055_v48 = vld [vmem:[%s5222_s29 + $0x58] sm:$0xf] }
 0x196   : > { %5012 = vmatmul.msk.bf16.gmra.mxu0 %vm675_vm3, %v3987_v51  ;;  %v3255_v51 = vrot.slane %v3253_v62, 4 }
 0x197   : > { %v1378_v18 = vpop.f32.mrf.mxu2  ;;  %4765 = vmatmul.msk.bf16.gmra.mxu1 %vm675_vm3, %v2616_v23  ;;  %v6036_v10 = vadd.f32 %v2339_v35, %v1724_v41  ;;  %v6043_v23 = vld [vmem:[%s5222_s29 + $0x50] sm:$0x1]  ;;  %v2496_v9 = vsel %vm5429_vm6, %v4742_v0, %v2495_v17  ;;  %v3959_v41 = vunpack.c.l.b16 %v3861_v58  ;;  %v3269_v62 = vor.u32 %v3268_v57, %v3264_v54  ;;  %v4913_v17 = vld [vmem:[%s5222_s29 + $0x54] sm:$0xf]  ;;  %v4974_v58 = vld [vmem:[%s5222_s29 + $0x48] sm:$0xe] }
 0x198   : > { %v1427_v30 = vadd.f32 %v1378_v18, %v1015_v22  ;;  %v3259_v31 = vor.u32 %v3258_v52, %v3255_v51  ;;  %v3272_v29 = vshll.u32 %v6043_v23, 16  ;;  %v2589_v7 = vunpack.c.l.b16 %v2496_v9  ;;  %v5139_v9 = vld [vmem:[%s5222_s29 + $0x4c] sm:$0xf] }
 0x199   : > { %v2590_v18 = vunpack.c.l.b16 %v2499_v8  ;;  %v3988_v3 = vpack.c.b16 %v3960_v1, %v3959_v41  ;;  %v3270_v0 = vrot.slane %v3269_v62, 4  ;;  %v3277_v51 = vshrl.u32 %v4913_v17, 16 }
 0x19a   : > { %v3274_v21 = vrot.slane %v3272_v29, 5  ;;  %v3280_v52 = vshll.u32 %v4913_v17, 16  ;;  %v2502_v8 = vrot.slane %v5139_v9, 5  ;;  %v4990_v29 = vrot.slane %v4974_v58, 9 }
 0x19b   : > { %v2341_v16 = vpop.f32.mrf.mxu0  ;;  %v2617_v5 = vpack.c.b16 %v2590_v18, %v2589_v7  ;;  %v3869_v7 = vrot.slane %v3867_v27, 4  ;;  %v3870_v18 = vrot.slane %v6043_v23, 5 }
 0x19c   : > { %v1676_v22 = vpop.f32.mrf.mxu3  ;;  %4885 = vmatmul.msk.bf16.gmra.mxu2 %vm675_vm3, %v5076_v24  ;;  %v1019_v35 = vpop.f32.mrf.mxu1  ;;  %v3275_v62 = vsel %vm5234_vm2, %v3270_v0, %v3274_v21  ;;  %v3282_v17 = vrot.slane %v3280_v52, 5  ;;  %v6078_v21 = vld [vmem:[%s5222_s29 + $0x5c] sm:$0x1] }
 0x19d   : > { %v1725_v28 = vadd.f32 %v1676_v22, %v1427_v30  ;;  %v3260_v30 = vrot.slane %v3259_v31, 4  ;;  %v3286_v31 = vshll.u32 %v6055_v48, 16  ;;  %v3871_v23 = vsel %vm5429_vm6, %v3869_v7, %v3870_v18 }
 0x19f   : > { %v1381_v56 = vpop.f32.mrf.mxu2  ;;  %v6057_v25 = vadd.f32 %v2341_v16, %v1725_v28  ;;  %v3290_v16 = vshrl.u32 %v6055_v48, 16  ;;  %v1020_v28 = vadd.f32 %v1019_v35, %v5679_v11  ;;  %v3265_v39 = vsel %vm5234_vm2, %v3260_v30, %v3264_v54 }
 0x1a0   : > { %v1428_v24 = vadd.f32 %v1381_v56, %v1018_v50  ;;  %v4727_v50 = vld [vmem:[%s5222_s29 + $0x48] sm:$0xe]  ;;  %v2504_v11 = vrot.slane %v2502_v8, 4  ;;  %v3552_v54 = vunpack.c.l.b16 %v3265_v39  ;;  %v3553_v30 = vunpack.c.l.b16 %v3275_v62 }
 0x1a1   : > { %4957 = vmatmul.msk.bf16.gmra.mxu3 %vm675_vm3, %v3579_v55  ;;  %v5140_v55 = vld [vmem:[%s5222_s29 + $0x50] sm:$0x1]  ;;  %v4743_v9 = vrot.slane %v4727_v50, 9  ;;  %v3292_v0 = vrot.slane %v3290_v16, 4 }
 0x1a2   : > { %v2505_v41 = vrot.slane %v5140_v55, 5  ;;  %v3288_v55 = vrot.slane %v3286_v31, 5  ;;  %v3580_v16 = vpack.c.b16 %v3553_v30, %v3552_v54  ;;  %v6098_v30 = vld [vmem:[%s5222_s29 + $0x64] sm:$0xf] }
 0x1a3   : > { %v2344_v53 = vpop.f32.mrf.mxu0 }
 0x1a4   : > { %v1679_v57 = vpop.f32.mrf.mxu3  ;;  %v1022_v22 = vpop.f32.mrf.mxu1 }
 0x1a5   : > { %v1726_v1 = vadd.f32 %v1679_v57, %v1428_v24  ;;  %v3279_v24 = vrot.slane %v3277_v51, 4  ;;  %v1023_v39 = vadd.f32 %v1022_v22, %v5543_v47 }
 0x1a6   : > { %5013 = vmatmul.msk.bf16.gmra.mxu0 %vm675_vm3, %v3988_v3  ;;  %v5077_v3 = vld [vmem:[%s5222_s29 + $0x48] sm:$0xff] }
 0x1a7   : > { %v1383_v56 = vpop.f32.mrf.mxu2  ;;  %4766 = vmatmul.msk.bf16.gmra.mxu1 %vm675_vm3, %v2617_v5  ;;  %v6075_v35 = vadd.f32 %v2344_v53, %v1726_v1  ;;  %v3868_v5 = vsel %vm5429_vm6, %v4990_v29, %v3867_v27  ;;  %v2503_v53 = vsel %vm5429_vm6, %v4743_v9, %v2502_v8  ;;  %v2506_v1 = vsel %vm5429_vm6, %v2504_v11, %v2505_v41  ;;  %v4916_v11 = vld [vmem:[%s5222_s29 + $0x60] sm:$0xf] }
 0x1a8   : > { %v1429_v57 = vadd.f32 %v1383_v56, %v1020_v28  ;;  %v3283_v50 = vor.u32 %v3282_v17, %v3279_v24  ;;  %v3293_v28 = vor.u32 %v3292_v0, %v3288_v55  ;;  %v3296_v27 = vshll.u32 %v6078_v21, 16  ;;  %v4975_v17 = vld [vmem:[%s5222_s29 + $0x54] sm:$0xe] }
 0x1a9   : > { %v3961_v62 = vunpack.c.l.b16 %v3868_v5  ;;  %v3962_v29 = vunpack.c.l.b16 %v3871_v23  ;;  %v2591_v7 = vunpack.c.l.b16 %v2503_v53  ;;  %v2592_v18 = vunpack.c.l.b16 %v2506_v1  ;;  %v5141_v1 = vld [vmem:[%s5222_s29 + $0x58] sm:$0xf] }
 0x1aa   : > { %v3294_v41 = vrot.slane %v3293_v28, 4  ;;  %v3298_v24 = vrot.slane %v3296_v27, 5  ;;  %v3877_v53 = vrot.slane %v6078_v21, 5  ;;  %v3301_v28 = vshrl.u32 %v4916_v11, 16  ;;  %v5142_v21 = vld [vmem:[%s5222_s29 + $0x5c] sm:$0x1] }
 0x1ab   : > { %v2346_v58 = vpop.f32.mrf.mxu0  ;;  %v3989_v9 = vpack.c.b16 %v3962_v29, %v3961_v62  ;;  %v2618_v54 = vpack.c.b16 %v2592_v18, %v2591_v7  ;;  %v3314_v62 = vshrl.u32 %v6098_v30, 16  ;;  %v2512_v29 = vrot.slane %v5142_v21, 5  ;;  %v5078_v18 = vld [vmem:[%s5222_s29 + $0x54] sm:$0xff] }
 0x1ac   : > { %v1681_v51 = vpop.f32.mrf.mxu3  ;;  %4886 = vmatmul.msk.bf16.gmra.mxu2 %vm675_vm3, %v5077_v3  ;;  %v1024_v52 = vpop.f32.mrf.mxu1  ;;  %v3284_v3 = vrot.slane %v3283_v50, 4 }
 0x1ad   : > { %v1727_v31 = vadd.f32 %v1681_v51, %v1429_v57  ;;  %v3874_v57 = vrot.slane %v6055_v48, 5  ;;  %v4991_v51 = vrot.slane %v4975_v17, 9  ;;  %v2509_v48 = vrot.slane %v5141_v1, 5 }
 0x1ae   : > { %v3289_v23 = vsel %vm5234_vm2, %v3284_v3, %v3288_v55  ;;  %v1025_v27 = vadd.f32 %v1024_v52, %v5562_v2  ;;  %v3310_v55 = vshll.u32 %v6098_v30, 16  ;;  %v3316_v1 = vrot.slane %v3314_v62, 4 }
 0x1af   : > { %v1386_v56 = vpop.f32.mrf.mxu2  ;;  %v6095_v47 = vadd.f32 %v2346_v58, %v1727_v31  ;;  %v3299_v58 = vsel %vm5234_vm2, %v3294_v41, %v3298_v24  ;;  %v3876_v31 = vrot.slane %v3874_v57, 4  ;;  %v2511_v3 = vrot.slane %v2509_v48, 4 }
 0x1b0   : > { %v1430_v8 = vadd.f32 %v1386_v56, %v1023_v39  ;;  %v3304_v39 = vshll.u32 %v4916_v11, 16  ;;  %v3554_v24 = vunpack.c.l.b16 %v3289_v23  ;;  %v3555_v17 = vunpack.c.l.b16 %v3299_v58 }
 0x1b1   : > { %4958 = vmatmul.msk.bf16.gmra.mxu3 %vm675_vm3, %v3580_v16  ;;  %v4728_v16 = vld [vmem:[%s5222_s29 + $0x54] sm:$0xe]  ;;  %v3875_v2 = vsel %vm5429_vm6, %v4991_v51, %v3874_v57  ;;  %v3878_v52 = vsel %vm5429_vm6, %v3876_v31, %v3877_v53  ;;  %v2513_v57 = vsel %vm5429_vm6, %v2511_v3, %v2512_v29 }
 0x1b2   : > { %v3306_v11 = vrot.slane %v3304_v39, 5  ;;  %v3581_v53 = vpack.c.b16 %v3555_v17, %v3554_v24  ;;  %v3964_v58 = vunpack.c.l.b16 %v3878_v52  ;;  %v3881_v52 = vrot.slane %v6098_v30, 5 }
 0x1b3   : > { %v2349_v22 = vpop.f32.mrf.mxu0 }
 0x1b4   : > { %v1684_v0 = vpop.f32.mrf.mxu3  ;;  %v1027_v5 = vpop.f32.mrf.mxu1 }
 0x1b5   : > { %v1728_v50 = vadd.f32 %v1684_v0, %v1430_v8  ;;  %v4744_v8 = vrot.slane %v4728_v16, 9  ;;  %v3312_v0 = vrot.slane %v3310_v55, 5  ;;  %v1028_v31 = vadd.f32 %v1027_v5, %v5583_v37  ;;  %v6133_v37 = vld [vmem:[%s5222_s29 + $0x70] sm:$0xf] }
 0x1b6   : > { %5014 = vmatmul.msk.bf16.gmra.mxu0 %vm675_vm3, %v3989_v9  ;;  %v3303_v9 = vrot.slane %v3301_v28, 4 }
 0x1b7   : > { %v1388_v56 = vpop.f32.mrf.mxu2  ;;  %4767 = vmatmul.msk.bf16.gmra.mxu1 %vm675_vm3, %v2618_v54  ;;  %v6114_v41 = vadd.f32 %v2349_v22, %v1728_v50  ;;  %v6121_v54 = vld [vmem:[%s5222_s29 + $0x68] sm:$0x1]  ;;  %v2510_v23 = vsel %vm5429_vm6, %v4744_v8, %v2509_v48  ;;  %v3963_v50 = vunpack.c.l.b16 %v3875_v2  ;;  %v3317_v28 = vor.u32 %v3316_v1, %v3312_v0  ;;  %v4919_v48 = vld [vmem:[%s5222_s29 + $0x6c] sm:$0xf]  ;;  %v4976_v2 = vld [vmem:[%s5222_s29 + $0x60] sm:$0xe] }
 0x1b8   : > { %v1431_v7 = vadd.f32 %v1388_v56, %v1025_v27  ;;  %v3307_v16 = vor.u32 %v3306_v11, %v3303_v9  ;;  %v3320_v39 = vshll.u32 %v6121_v54, 16  ;;  %v2593_v62 = vunpack.c.l.b16 %v2510_v23  ;;  %v5143_v23 = vld [vmem:[%s5222_s29 + $0x64] sm:$0xf] }
 0x1b9   : > { %v2594_v56 = vunpack.c.l.b16 %v2513_v57  ;;  %v3990_v29 = vpack.c.b16 %v3964_v58, %v3963_v50  ;;  %v3318_v8 = vrot.slane %v3317_v28, 4  ;;  %v3325_v9 = vshrl.u32 %v4919_v48, 16 }
 0x1ba   : > { %v3322_v3 = vrot.slane %v3320_v39, 5  ;;  %v3328_v11 = vshll.u32 %v4919_v48, 16  ;;  %v2516_v57 = vrot.slane %v5143_v23, 5  ;;  %v4992_v39 = vrot.slane %v4976_v2, 9 }
 0x1bb   : > { %v2351_v21 = vpop.f32.mrf.mxu0  ;;  %v2619_v17 = vpack.c.b16 %v2594_v56, %v2593_v62  ;;  %v3883_v62 = vrot.slane %v3881_v52, 4  ;;  %v3884_v56 = vrot.slane %v6121_v54, 5 }
 0x1bc   : > { %v1686_v27 = vpop.f32.mrf.mxu3  ;;  %4887 = vmatmul.msk.bf16.gmra.mxu2 %vm675_vm3, %v5078_v18  ;;  %v1029_v22 = vpop.f32.mrf.mxu1  ;;  %v3323_v28 = vsel %vm5234_vm2, %v3318_v8, %v3322_v3  ;;  %v3330_v48 = vrot.slane %v3328_v11, 5  ;;  %v6158_v3 = vld [vmem:[%s5222_s29 + $0x74] sm:$0x1] }
 0x1bd   : > { %v1729_v51 = vadd.f32 %v1686_v27, %v1431_v7  ;;  %v3308_v7 = vrot.slane %v3307_v16, 4  ;;  %v3334_v16 = vshll.u32 %v6133_v37, 16  ;;  %v3885_v54 = vsel %vm5429_vm6, %v3883_v62, %v3884_v56 }
 0x1bf   : > { %v1391_v55 = vpop.f32.mrf.mxu2  ;;  %v6135_v5 = vadd.f32 %v2351_v21, %v1729_v51  ;;  %v3338_v21 = vshrl.u32 %v6133_v37, 16  ;;  %v1030_v51 = vadd.f32 %v1029_v22, %v5602_v4  ;;  %v3313_v30 = vsel %vm5234_vm2, %v3308_v7, %v3312_v0 }
 0x1c0   : > { %v1432_v18 = vadd.f32 %v1391_v55, %v1028_v31  ;;  %v4729_v31 = vld [vmem:[%s5222_s29 + $0x60] sm:$0xe]  ;;  %v2518_v4 = vrot.slane %v2516_v57, 4  ;;  %v3556_v0 = vunpack.c.l.b16 %v3313_v30  ;;  %v3557_v7 = vunpack.c.l.b16 %v3323_v28 }
 0x1c1   : > { %4959 = vmatmul.msk.bf16.gmra.mxu3 %vm675_vm3, %v3581_v53  ;;  %v5144_v53 = vld [vmem:[%s5222_s29 + $0x68] sm:$0x1]  ;;  %v4745_v23 = vrot.slane %v4729_v31, 9  ;;  %v3340_v8 = vrot.slane %v3338_v21, 4 }
 0x1c2   : > { %v2519_v50 = vrot.slane %v5144_v53, 5  ;;  %v6155_v53 = vrot.slane %v3334_v16, 5  ;;  %v3582_v21 = vpack.c.b16 %v3557_v7, %v3556_v0  ;;  %v6177_v0 = vld [vmem:[%s5222_s29 + $0x7c] sm:$0xf] }
 0x1c3   : > { %v2354_v24 = vpop.f32.mrf.mxu0  ;;  %v2517_v11 = vsel %vm5429_vm6, %v4745_v23, %v2516_v57  ;;  %v4922_v57 = vld [vmem:[%s5222_s29 + $0x78] sm:$0xf] }
 0x1c4   : > { %v1689_v1 = vpop.f32.mrf.mxu3  ;;  %v1032_v27 = vpop.f32.mrf.mxu1  ;;  %v2595_v62 = vunpack.c.l.b16 %v2517_v11 }
 0x1c5   : > { %v1730_v58 = vadd.f32 %v1689_v1, %v1432_v18  ;;  %v3327_v18 = vrot.slane %v3325_v9, 4  ;;  %v1033_v30 = vadd.f32 %v1032_v27, %v5621_v42  ;;  %v3349_v42 = vshrl.u32 %v4922_v57, 16 }
 0x1c6   : > { %5015 = vmatmul.msk.bf16.gmra.mxu0 %vm675_vm3, %v3990_v29  ;;  %v5079_v29 = vld [vmem:[%s5222_s29 + $0x60] sm:$0xff]  ;;  %v3352_v27 = vshll.u32 %v4922_v57, 16  ;;  %v5080_v57 = vld [vmem:[%s5222_s29 + $0x6c] sm:$0xff] }
 0x1c7   : > { %v1393_v55 = vpop.f32.mrf.mxu2  ;;  %4768 = vmatmul.msk.bf16.gmra.mxu1 %vm675_vm3, %v2619_v17  ;;  %v6153_v22 = vadd.f32 %v2354_v24, %v1730_v58  ;;  %v3882_v17 = vsel %vm5429_vm6, %v4992_v39, %v3881_v52  ;;  %v2520_v58 = vsel %vm5429_vm6, %v2518_v4, %v2519_v50  ;;  %v3331_v31 = vor.u32 %v3330_v48, %v3327_v18  ;;  %v4977_v48 = vld [vmem:[%s5222_s29 + $0x6c] sm:$0xe] }
 0x1c8   : > { %v1433_v1 = vadd.f32 %v1393_v55, %v1030_v51  ;;  %v3341_v52 = vor.u32 %v3340_v8, %v6155_v53  ;;  %v3344_v51 = vshll.u32 %v6158_v3, 16  ;;  %v3965_v28 = vunpack.c.l.b16 %v3882_v17 }
 0x1c9   : > { %v3966_v39 = vunpack.c.l.b16 %v3885_v54  ;;  %v2596_v56 = vunpack.c.l.b16 %v2520_v58  ;;  %v3332_v23 = vrot.slane %v3331_v31, 4  ;;  %v4993_v58 = vrot.slane %v4977_v48, 9 }
 0x1ca   : > { %v3342_v50 = vrot.slane %v3341_v52, 4  ;;  %v3346_v18 = vrot.slane %v3344_v51, 5  ;;  %v3891_v31 = vrot.slane %v6158_v3, 5  ;;  %v3362_v3 = vshrl.u32 %v6177_v0, 16 }
 0x1cb   : > { %v2356_v2 = vpop.f32.mrf.mxu0  ;;  %v3991_v4 = vpack.c.b16 %v3966_v39, %v3965_v28  ;;  %v2620_v17 = vpack.c.b16 %v2596_v56, %v2595_v62  ;;  %v3337_v11 = vsel %vm5234_vm2, %v3332_v23, %v6155_v53  ;;  %v3351_v53 = vrot.slane %v3349_v42, 4  ;;  %v5146_v23 = vld [vmem:[%s5222_s29 + $0x74] sm:$0x1] }
 0x1cc   : > { %v1691_v9 = vpop.f32.mrf.mxu3  ;;  %4888 = vmatmul.msk.bf16.gmra.mxu2 %vm675_vm3, %v5079_v29  ;;  %v1034_v24 = vpop.f32.mrf.mxu1  ;;  %v3354_v39 = vrot.slane %v3352_v27, 5  ;;  %v3558_v48 = vunpack.c.l.b16 %v3337_v11 }
 0x1cd   : > { %v1731_v16 = vadd.f32 %v1691_v9, %v1433_v1  ;;  %v3888_v1 = vrot.slane %v6133_v37, 5  ;;  %v5145_v37 = vld [vmem:[%s5222_s29 + $0x70] sm:$0xf]  ;;  %v1035_v28 = vadd.f32 %v1034_v24, %v5653_v12 }
 0x1ce   : > { %v2523_v52 = vrot.slane %v5145_v37, 5  ;;  %v3355_v42 = vor.u32 %v3354_v39, %v3351_v53 }
 0x1cf   : > { %v1396_v55 = vpop.f32.mrf.mxu2  ;;  %v6179_v7 = vadd.f32 %v2356_v2, %v1731_v16  ;;  %v3347_v2 = vsel %vm5234_vm2, %v3342_v50, %v3346_v18  ;;  %v3890_v16 = vrot.slane %v3888_v1, 4  ;;  %v2526_v50 = vrot.slane %v5146_v23, 5 }
 0x1d0   : > { %v1434_v29 = vadd.f32 %v1396_v55, %v1033_v30  ;;  %v3358_v30 = vshll.u32 %v6177_v0, 16  ;;  %v3889_v12 = vsel %vm5429_vm6, %v4993_v58, %v3888_v1 }
 0x1d1   : > { %4960 = vmatmul.msk.bf16.gmra.mxu3 %vm675_vm3, %v3582_v21  ;;  %v4730_v21 = vld [vmem:[%s5222_s29 + $0x6c] sm:$0xe]  ;;  %v3892_v24 = vsel %vm5429_vm6, %v3890_v16, %v3891_v31  ;;  %v3967_v31 = vunpack.c.l.b16 %v3889_v12  ;;  %v3356_v16 = vrot.slane %v3355_v42, 4 }
 0x1d2   : > { %v4746_v62 = vrot.slane %v4730_v21, 9  ;;  %v3360_v27 = vrot.slane %v3358_v30, 5  ;;  %v4924_v21 = vld [vmem:[%s5222_s29 + $0x80] sm:$0x1] }
 0x1d3   : > { %v2359_v8 = vpop.f32.mrf.mxu0  ;;  %v3368_v53 = vshll.u32 %v4924_v21, 16 }
 0x1d4   : > { %v1694_v54 = vpop.f32.mrf.mxu3  ;;  %v1037_v9 = vpop.f32.mrf.mxu1 }
 0x1d5   : > { %v1732_v51 = vadd.f32 %v1694_v54, %v1434_v29  ;;  %v2525_v29 = vrot.slane %v2523_v52, 4 }
 0x1d6   : > { %5016 = vmatmul.msk.bf16.gmra.mxu0 %vm675_vm3, %v3991_v4  ;;  %v3559_v4 = vunpack.c.l.b16 %v3347_v2  ;;  %v1038_v2 = vadd.f32 %v1037_v9, %v5675_v63  ;;  %v3361_v63 = vsel %vm5234_vm2, %v3356_v16, %v3360_v27 }
 0x1d7   : > { %v1398_v55 = vpop.f32.mrf.mxu2  ;;  %4769 = vmatmul.msk.bf16.gmra.mxu1 %vm675_vm3, %v2620_v17  ;;  %v6196_v18 = vadd.f32 %v2359_v8, %v1732_v51  ;;  %v3364_v17 = vrot.slane %v3362_v3, 4  ;;  %v2524_v8 = vsel %vm5429_vm6, %v4746_v62, %v2523_v52  ;;  %v2527_v1 = vsel %vm5429_vm6, %v2525_v29, %v2526_v50  ;;  %v6216_v50 = vld [vmem:[%s5222_s29 + $0x88] sm:$0xf] }
 0x1d8   : > { %v1435_v56 = vadd.f32 %v1398_v55, %v1035_v28  ;;  %v3583_v58 = vpack.c.b16 %v3559_v4, %v3558_v48  ;;  %v3968_v51 = vunpack.c.l.b16 %v3892_v24  ;;  %v2597_v3 = vunpack.c.l.b16 %v2524_v8 }
 0x1d9   : > { %6637 = vst [vmem:[#allocation4_spill] sm:$0xff] %v6196_v18  ;;  %v3365_v30 = vor.u32 %v3364_v17, %v3360_v27  ;;  %v2598_v55 = vunpack.c.l.b16 %v2527_v1  ;;  %v4925_v18 = vld [vmem:[%s5222_s29 + $0x84] sm:$0xf]  ;;  %v3895_v62 = vrot.slane %v6177_v0, 5  ;;  %v3898_v8 = vrot.slane %v4924_v21, 5 }
 0x1da   : > { %v3992_v52 = vpack.c.b16 %v3968_v51, %v3967_v31  ;;  %v3373_v12 = vshrl.u32 %v4925_v18, 16  ;;  %v3376_v24 = vshll.u32 %v4925_v18, 16  ;;  %v4731_v1 = vld [vmem:[%s5222_s29 + $0x78] sm:$0xe]  ;;  %v3382_v51 = vshll.u32 %v6216_v50, 16 }
 0x1db   : > { %v2361_v54 = vpop.f32.mrf.mxu0  ;;  %v3366_v9 = vrot.slane %v3365_v30, 4  ;;  %v2621_v4 = vpack.c.b16 %v2598_v55, %v2597_v3  ;;  %v3897_v27 = vrot.slane %v3895_v62, 4  ;;  %v4747_v30 = vrot.slane %v4731_v1, 9  ;;  %v5081_v55 = vld [vmem:[%s5222_s29 + $0x78] sm:$0xff] }
 0x1dc   : > { %v1696_v37 = vpop.f32.mrf.mxu3  ;;  %4889 = vmatmul.msk.bf16.gmra.mxu2 %vm675_vm3, %v5080_v57  ;;  %v1039_v28 = vpop.f32.mrf.mxu1  ;;  %v4978_v57 = vld [vmem:[%s5222_s29 + $0x78] sm:$0xe] }
 0x1dd   : > { %v1733_v11 = vadd.f32 %v1696_v37, %v1435_v56  ;;  %v3370_v56 = vrot.slane %v3368_v53, 5  ;;  %v4994_v29 = vrot.slane %v4978_v57, 9  ;;  %v1040_v18 = vadd.f32 %v1039_v28, %v5692_v40 }
 0x1de   : > { %v3375_v53 = vrot.slane %v3373_v12, 4 }
 0x1df   : > { %v1401_v39 = vpop.f32.mrf.mxu2  ;;  %v6218_v42 = vadd.f32 %v2361_v54, %v1733_v11  ;;  %v3371_v54 = vsel %vm5234_vm2, %v3366_v9, %v3370_v56  ;;  %v3560_v11 = vunpack.c.l.b16 %v3361_v63  ;;  %v3896_v16 = vsel %vm5429_vm6, %v4994_v29, %v3895_v62 }
 0x1e0   : > { %v1436_v23 = vadd.f32 %v1401_v39, %v1038_v2  ;;  %v3386_v2 = vshrl.u32 %v6216_v50, 16  ;;  %v3378_v39 = vrot.slane %v3376_v24, 5  ;;  %v3561_v28 = vunpack.c.l.b16 %v3371_v54 }
 0x1e1   : > { %4961 = vmatmul.msk.bf16.gmra.mxu3 %vm675_vm3, %v3583_v58  ;;  %v5147_v58 = vld [vmem:[%s5222_s29 + $0x7c] sm:$0xf]  ;;  %v3899_v63 = vsel %vm5429_vm6, %v3897_v27, %v3898_v8  ;;  %v6237_v9 = vrot.slane %v3382_v51, 5  ;;  %v3969_v29 = vunpack.c.l.b16 %v3896_v16 }
 0x1e2   : > { %v2530_v0 = vrot.slane %v5147_v58, 5  ;;  %v3388_v56 = vrot.slane %v3386_v2, 4  ;;  %v3970_v24 = vunpack.c.l.b16 %v3899_v63  ;;  %v3379_v1 = vor.u32 %v3378_v39, %v3375_v53  ;;  %v4979_v2 = vld [vmem:[%s5222_s29 + $0x84] sm:$0xe]  ;;  %v6251_v63 = vld [vmem:[%s5222_s29 + $0x94] sm:$0xf] }
 0x1e3   : > { %v2364_v48 = vpop.f32.mrf.mxu0 }
 0x1e4   : > { %v1699_v17 = vpop.f32.mrf.mxu3  ;;  %v2698_v37 = vpop.f32.mrf.mxu1  ;;  %v2532_v57 = vrot.slane %v2530_v0, 4  ;;  %v3389_v27 = vor.u32 %v3388_v56, %v6237_v9 }
 0x1e5   : > { %v1734_v31 = vadd.f32 %v1699_v17, %v1436_v23  ;;  %v5148_v23 = vld [vmem:[%s5222_s29 + $0x80] sm:$0x1]  ;;  %v2778_v54 = vadd.f32 %v2698_v37, %v5709_v49 }
 0x1e6   : > { %5017 = vmatmul.msk.bf16.gmra.mxu0 %vm675_vm3, %v3992_v52  ;;  %v2533_v52 = vrot.slane %v5148_v23, 5  ;;  %v4928_v23 = vld [vmem:[%s5222_s29 + $0x90] sm:$0xf]  ;;  %v3390_v53 = vrot.slane %v3389_v27, 4 }
 0x1e7   : > { %v1403_v21 = vpop.f32.mrf.mxu2  ;;  %4770 = vmatmul.msk.bf16.gmra.mxu1 %vm675_vm3, %v2621_v4  ;;  %v6233_v40 = vadd.f32 %v2364_v48, %v1734_v31  ;;  %v4927_v4 = vld [vmem:[%s5222_s29 + $0x8c] sm:$0x1]  ;;  %v2531_v48 = vsel %vm5429_vm6, %v4747_v30, %v2530_v0  ;;  %v3584_v31 = vpack.c.b16 %v3561_v28, %v3560_v11  ;;  %v3993_v0 = vpack.c.b16 %v3970_v24, %v3969_v29 }
 0x1e8   : > { %v1437_v3 = vadd.f32 %v1403_v21, %v1040_v18  ;;  %v2534_v8 = vsel %vm5429_vm6, %v2532_v57, %v2533_v52  ;;  %v3392_v51 = vshll.u32 %v4927_v4, 16  ;;  %v3902_v18 = vrot.slane %v6216_v50, 5 }
 0x1e9   : > { %v2599_v16 = vunpack.c.l.b16 %v2531_v48  ;;  %v3380_v30 = vrot.slane %v3379_v1, 4  ;;  %v3905_v50 = vrot.slane %v4927_v4, 5  ;;  %v3397_v52 = vshrl.u32 %v4928_v23, 16  ;;  %v5149_v48 = vld [vmem:[%s5222_s29 + $0x88] sm:$0xf] }
 0x1ea   : > { %v3394_v39 = vrot.slane %v3392_v51, 5  ;;  %v3904_v57 = vrot.slane %v3902_v18, 4  ;;  %v3400_v56 = vshll.u32 %v4928_v23, 16  ;;  %v3406_v29 = vshll.u32 %v6251_v63, 16  ;;  %v6262_v4 = vld [vmem:[%s6629_s2] ss:$0 sm:$0xff] }
 0x1eb   : > { %v2366_v62 = vpop.f32.mrf.mxu0  ;;  %v3410_v1 = vshrl.u32 %v6251_v63, 16 }
 0x1ec   : > { %v1701_v12 = vpop.f32.mrf.mxu3  ;;  %4890 = vmatmul.msk.bf16.gmra.mxu2 %vm675_vm3, %v5081_v55  ;;  %v2700_v17 = vpop.f32.mrf.mxu1  ;;  %v2600_v55 = vunpack.c.l.b16 %v2534_v8  ;;  %v2537_v8 = vrot.slane %v5149_v48, 5  ;;  %v3395_v27 = vsel %vm5234_vm2, %v3390_v53, %v3394_v39  ;;  %v6277_v23 = vrot.slane %v3406_v29, 5  ;;  %v5150_v53 = vld [vmem:[%s5222_s29 + $0x8c] sm:$0x1] }
 0x1ed   : > { %v1735_v58 = vadd.f32 %v1701_v12, %v1437_v3  ;;  %v4995_v3 = vrot.slane %v4979_v2, 9  ;;  %v3906_v2 = vsel %vm5429_vm6, %v3904_v57, %v3905_v50  ;;  %v2540_v39 = vrot.slane %v5150_v53, 5  ;;  %v6303_v53 = vld [vmem:[%s5222_s29 + $0xa0] sm:$0xf] }
 0x1ee   : > { %v2622_v28 = vpack.c.b16 %v2600_v55, %v2599_v16  ;;  %v2779_v16 = vadd.f32 %v2700_v17, %v5722_v43  ;;  %v3402_v55 = vrot.slane %v3400_v56, 5  ;;  %v6284_v43 = vld [vmem:[%s5222_s29 + $0x98] sm:$0x1]  ;;  %v3972_v56 = vunpack.c.l.b16 %v3906_v2 }
 0x1ef   : > { %v2996_v21 = vpop.f32.mrf.mxu2  ;;  %v6254_v49 = vadd.f32 %v2366_v62, %v1735_v58  ;;  %v3385_v62 = vsel %vm5234_vm2, %v3380_v30, %v6237_v9  ;;  %v4732_v58 = vld [vmem:[%s5222_s29 + $0x84] sm:$0xe]  ;;  %v3903_v51 = vsel %vm5429_vm6, %v4995_v3, %v3902_v18  ;;  %v3412_v18 = vrot.slane %v3410_v1, 4 }
 0x1f0   : > { %v3076_v11 = vadd.f32 %v2996_v21, %v2778_v54  ;;  %v3399_v54 = vrot.slane %v3397_v52, 4  ;;  %v4748_v30 = vrot.slane %v4732_v58, 9  ;;  %v3562_v50 = vunpack.c.l.b16 %v3385_v62 }
 0x1f1   : > { %4962 = vmatmul.msk.bf16.gmra.mxu3 %vm675_vm3, %v3584_v31  ;;  %v3563_v52 = vunpack.c.l.b16 %v3395_v27  ;;  %v3413_v62 = vor.u32 %v3412_v18, %v6277_v23  ;;  %v3416_v2 = vshll.u32 %v6284_v43, 16 }
 0x1f2   : > { %v2538_v48 = vsel %vm5429_vm6, %v4748_v30, %v2537_v8  ;;  %v4931_v30 = vld [vmem:[%s5222_s29 + $0x9c] sm:$0xf] }
 0x1f3   : > { %v4070_v37 = vpop.f32.mrf.mxu0 }
 0x1f4   : > { %v3661_v12 = vpop.f32.mrf.mxu3  ;;  %v2703_v24 = vpop.f32.mrf.mxu1 }
 0x1f5   : > { %v3741_v31 = vadd.f32 %v3661_v12, %v3076_v11  ;;  %v2539_v11 = vrot.slane %v2537_v8, 4 }
 0x1f6   : > { %5018 = vmatmul.msk.bf16.gmra.mxu0 %vm675_vm3, %v3993_v0  ;;  %v5082_v0 = vld [vmem:[%s5222_s29 + $0x84] sm:$0xff] }
 0x1f7   : > { %v4150_v21 = vadd.f32 %v4070_v37, %v3741_v31  ;;  %v2998_v9 = vpop.f32.mrf.mxu2  ;;  %4771 = vmatmul.msk.bf16.gmra.mxu1 %vm675_vm3, %v2622_v28  ;;  %v3971_v28 = vunpack.c.l.b16 %v3903_v51  ;;  %v2541_v1 = vsel %vm5429_vm6, %v2539_v11, %v2540_v39  ;;  %v3403_v31 = vor.u32 %v3402_v55, %v3399_v54 }
 0x1f8   : > { %v3077_v57 = vadd.f32 %v2998_v9, %v2779_v16  ;;  %v3585_v51 = vpack.c.b16 %v3563_v52, %v3562_v50  ;;  %v2780_v16 = vadd.f32 %v2703_v24, %v5735_v19  ;;  %v2602_v8 = vunpack.c.l.b16 %v2541_v1 }
 0x1f9   : > { %v4186_v3 = vadd.f32 %v6262_v4, %v4150_v21  ;;  %v3994_v54 = vpack.c.b16 %v3972_v56, %v3971_v28  ;;  %v3404_v55 = vrot.slane %v3403_v31, 4  ;;  %v3414_v11 = vrot.slane %v3413_v62, 4 }
 0x1fa   : > { %v3909_v19 = vrot.slane %v6251_v63, 5  ;;  %v3421_v24 = vshrl.u32 %v4931_v30, 16  ;;  %v3424_v50 = vshll.u32 %v4931_v30, 16  ;;  %v3430_v52 = vshll.u32 %v6303_v53, 16  ;;  %v4733_v63 = vld [vmem:[%s5222_s29 + $0x90] sm:$0xe] }
 0x1fb   : > { %v4218_v17 = vmax.f32 %v4186_v3, 0.0  ;;  %v4072_v37 = vpop.f32.mrf.mxu0  ;;  %v3418_v3 = vrot.slane %v3416_v2, 5  ;;  %v3409_v1 = vsel %vm5234_vm2, %v3404_v55, %v6277_v23  ;;  %v3912_v62 = vrot.slane %v6284_v43, 5 }
 0x1fc   : > { %v3663_v29 = vpop.f32.mrf.mxu3  ;;  %4891 = vmatmul.msk.bf16.gmra.mxu2 %vm675_vm3, %v5082_v0  ;;  %v2705_v12 = vpop.f32.mrf.mxu1  ;;  %v2601_v0 = vunpack.c.l.b16 %v2538_v48  ;;  %v6320_v23 = vrot.slane %v3430_v52, 5 }
 0x1fd   : > { %v4250_v58 = vpack.c.bf16 %v4218_v17, %v4218_v17  ;;  %v3742_v27 = vadd.f32 %v3663_v29, %v3077_v57  ;;  %v4980_v57 = vld [vmem:[%s5222_s29 + $0x90] sm:$0xe]  ;;  %v3434_v17 = vshrl.u32 %v6303_v53, 16  ;;  %v2781_v30 = vadd.f32 %v2705_v12, %v5748_v15 }
 0x1fe   : > { %v2623_v56 = vpack.c.b16 %v2602_v8, %v2601_v0  ;;  %v4996_v31 = vrot.slane %v4980_v57, 9  ;;  %v3426_v0 = vrot.slane %v3424_v50, 5 }
 0x1ff   : > { %4283 = vst.msk [vmem:[%s6289_s8] sm:$0xf] %vm4282_vm7, %v4250_v58  ;;  %v4151_v21 = vadd.f32 %v4072_v37, %v3742_v27  ;;  %v3001_v9 = vpop.f32.mrf.mxu2  ;;  %v5151_v58 = vld [vmem:[%s5222_s29 + $0x94] sm:$0xf]  ;;  %v3436_v8 = vrot.slane %v3434_v17, 4 }
 0x200   : > { %v3078_v18 = vadd.f32 %v3001_v9, %v2780_v16  ;;  %v2544_v27 = vrot.slane %v5151_v58, 5  ;;  %v3911_v16 = vrot.slane %v3909_v19, 4  ;;  %v3423_v9 = vrot.slane %v3421_v24, 4 }
 0x201   : > { %v4187_v39 = vadd.f32 %v6262_v4, %v4151_v21  ;;  %4963 = vmatmul.msk.bf16.gmra.mxu3 %vm675_vm3, %v3585_v51  ;;  %v3419_v21 = vsel %vm5234_vm2, %v3414_v11, %v3418_v3  ;;  %v5083_v11 = vld [vmem:[%s5222_s29 + $0x90] sm:$0xff]  ;;  %v3564_v3 = vunpack.c.l.b16 %v3409_v1 }
 0x202   : > { %v2546_v57 = vrot.slane %v2544_v27, 4  ;;  %v3565_v17 = vunpack.c.l.b16 %v3419_v21  ;;  %v3913_v15 = vsel %vm5429_vm6, %v3911_v16, %v3912_v62  ;;  %v3427_v12 = vor.u32 %v3426_v0, %v3423_v9 }
 0x203   : > { %v4219_v37 = vmax.f32 %v4187_v39, 0.0  ;;  %v4075_v28 = vpop.f32.mrf.mxu0  ;;  %v4749_v39 = vrot.slane %v4733_v63, 9  ;;  %v3974_v16 = vunpack.c.l.b16 %v3913_v15 }
 0x204   : > { %v3666_v29 = vpop.f32.mrf.mxu3  ;;  %v2708_v48 = vpop.f32.mrf.mxu1  ;;  %v3586_v21 = vpack.c.b16 %v3565_v17, %v3564_v3  ;;  %v3428_v0 = vrot.slane %v3427_v12, 4 }
 0x205   : > { %v4251_v51 = vpack.c.bf16 %v4219_v37, %v4219_v37  ;;  %v3743_v2 = vadd.f32 %v3666_v29, %v3078_v18  ;;  %v6327_v18 = vld [vmem:[%s5222_s29 + $0xa4] sm:$0x1]  ;;  %v3910_v37 = vsel %vm5429_vm6, %v4996_v31, %v3909_v19  ;;  %v2545_v63 = vsel %vm5429_vm6, %v4749_v39, %v2544_v27 }
 0x206   : > { %5019 = vmatmul.msk.bf16.gmra.mxu0 %vm675_vm3, %v3994_v54  ;;  %v5152_v54 = vld [vmem:[%s5222_s29 + $0x98] sm:$0x1]  ;;  %v2603_v9 = vunpack.c.l.b16 %v2545_v63  ;;  %v3919_v17 = vrot.slane %v6327_v18, 5  ;;  %v5153_v63 = vld [vmem:[%s5222_s29 + $0xa0] sm:$0xf] }
 0x207   : > { %4284 = vst.msk [vmem:[%s6289_s8 + $0x4] sm:$0xf] %vm4282_vm7, %v4251_v51  ;;  %v4152_v43 = vadd.f32 %v4075_v28, %v3743_v2  ;;  %v3003_v55 = vpop.f32.mrf.mxu2  ;;  %4772 = vmatmul.msk.bf16.gmra.mxu1 %vm675_vm3, %v2623_v56  ;;  %v2547_v24 = vrot.slane %v5152_v54, 5  ;;  %v3437_v28 = vor.u32 %v3436_v8, %v6320_v23  ;;  %v3440_v56 = vshll.u32 %v6327_v18, 16  ;;  %v4934_v54 = vld [vmem:[%s5222_s29 + $0xa8] sm:$0xf] }
 0x208   : > { %v3079_v52 = vadd.f32 %v3003_v55, %v2781_v30  ;;  %v3973_v51 = vunpack.c.l.b16 %v3910_v37  ;;  %v2782_v30 = vadd.f32 %v2708_v48, %v5761_v60 }
 0x209   : > { %v4188_v50 = vadd.f32 %v6262_v4, %v4152_v43  ;;  %v2548_v31 = vsel %vm5429_vm6, %v2546_v57, %v2547_v24  ;;  %v3438_v8 = vrot.slane %v3437_v28, 4  ;;  %v3442_v43 = vrot.slane %v3440_v56, 5 }
 0x20a   : > { %v2604_v39 = vunpack.c.l.b16 %v2548_v31  ;;  %v3916_v57 = vrot.slane %v6303_v53, 5  ;;  %v3995_v3 = vpack.c.b16 %v3974_v16, %v3973_v51  ;;  %v6358_v53 = vld [vmem:[%s5222_s29 + $0xac] sm:$0xf]  ;;  %v3445_v56 = vshrl.u32 %v4934_v54, 16 }
 0x20b   : > { %v4220_v29 = vmax.f32 %v4188_v50, 0.0  ;;  %v4077_v1 = vpop.f32.mrf.mxu0  ;;  %v3443_v60 = vsel %vm5234_vm2, %v3438_v8, %v3442_v43  ;;  %v3458_v18 = vshrl.u32 %v6358_v53, 16 }
 0x20c   : > { %v3668_v58 = vpop.f32.mrf.mxu3  ;;  %4892 = vmatmul.msk.bf16.gmra.mxu2 %vm675_vm3, %v5083_v11  ;;  %v2710_v19 = vpop.f32.mrf.mxu1  ;;  %v4981_v11 = vld [vmem:[%s5222_s29 + $0x9c] sm:$0xe]  ;;  %v2624_v12 = vpack.c.b16 %v2604_v39, %v2603_v9  ;;  %v3918_v28 = vrot.slane %v3916_v57, 4  ;;  %v3567_v16 = vunpack.c.l.b16 %v3443_v60 }
 0x20d   : > { %v4252_v62 = vpack.c.bf16 %v4220_v29, %v4220_v29  ;;  %v3744_v2 = vadd.f32 %v3668_v58, %v3079_v52  ;;  %v3433_v52 = vsel %vm5234_vm2, %v3428_v0, %v6320_v23  ;;  %v4997_v48 = vrot.slane %v4981_v11, 9 }
 0x20e   : > { %v2551_v58 = vrot.slane %v5153_v63, 5  ;;  %v3448_v23 = vshll.u32 %v4934_v54, 16  ;;  %v2783_v8 = vadd.f32 %v2710_v19, %v5774_v59  ;;  %v5154_v54 = vld [vmem:[%s5222_s29 + $0xa4] sm:$0x1]  ;;  %v3460_v60 = vrot.slane %v3458_v18, 4 }
 0x20f   : > { %4285 = vst.msk [vmem:[%s6289_s8 + $0x8] sm:$0xf] %vm4282_vm7, %v4252_v62  ;;  %v4153_v27 = vadd.f32 %v4077_v1, %v3744_v2  ;;  %v3006_v55 = vpop.f32.mrf.mxu2  ;;  %v4734_v62 = vld [vmem:[%s5222_s29 + $0x9c] sm:$0xe]  ;;  %v3454_v2 = vshll.u32 %v6358_v53, 16  ;;  %v3917_v9 = vsel %vm5429_vm6, %v4997_v48, %v3916_v57 }
 0x210   : > { %v3080_v50 = vadd.f32 %v3006_v55, %v2782_v30  ;;  %v3447_v30 = vrot.slane %v3445_v56, 4  ;;  %v5084_v55 = vld [vmem:[%s5222_s29 + $0x9c] sm:$0xff]  ;;  %v4750_v39 = vrot.slane %v4734_v62, 9  ;;  %v2553_v11 = vrot.slane %v2551_v58, 4  ;;  %v6379_v59 = vld [vmem:[%s5222_s29 + $0xb0] sm:$0x1] }
 0x211   : > { %v4189_v24 = vadd.f32 %v6262_v4, %v4153_v27  ;;  %4964 = vmatmul.msk.bf16.gmra.mxu3 %vm675_vm3, %v3586_v21  ;;  %v3566_v21 = vunpack.c.l.b16 %v3433_v52  ;;  %v3920_v27 = vsel %vm5429_vm6, %v3918_v28, %v3919_v17  ;;  %v6376_v52 = vrot.slane %v3454_v2, 5 }
 0x212   : > { %v3975_v17 = vunpack.c.l.b16 %v3917_v9  ;;  %v2552_v56 = vsel %vm5429_vm6, %v4750_v39, %v2551_v58  ;;  %v3464_v62 = vshll.u32 %v6379_v59, 16  ;;  %v4937_v58 = vld [vmem:[%s5222_s29 + $0xb4] sm:$0xf] }
 0x213   : > { %v4221_v37 = vmax.f32 %v4189_v24, 0.0  ;;  %v4080_v15 = vpop.f32.mrf.mxu0  ;;  %v2554_v24 = vrot.slane %v5154_v54, 5  ;;  %v3469_v54 = vshrl.u32 %v4937_v58, 16 }
 0x214   : > { %v3671_v29 = vpop.f32.mrf.mxu3  ;;  %v2713_v1 = vpop.f32.mrf.mxu1  ;;  %v3466_v39 = vrot.slane %v3464_v62, 5 }
 0x215   : > { %v4253_v51 = vpack.c.bf16 %v4221_v37, %v4221_v37  ;;  %v3745_v31 = vadd.f32 %v3671_v29, %v3080_v50  ;;  %v3587_v37 = vpack.c.b16 %v3567_v16, %v3566_v21  ;;  %v2555_v29 = vsel %vm5429_vm6, %v2553_v11, %v2554_v24  ;;  %v4982_v11 = vld [vmem:[%s5222_s29 + $0xa8] sm:$0xe] }
 0x216   : > { %5020 = vmatmul.msk.bf16.gmra.mxu0 %vm675_vm3, %v3995_v3  ;;  %v3450_v3 = vrot.slane %v3448_v23, 5  ;;  %v2784_v18 = vadd.f32 %v2713_v1, %v5787_v44  ;;  %v2605_v16 = vunpack.c.l.b16 %v2552_v56  ;;  %v2606_v9 = vunpack.c.l.b16 %v2555_v29 }
 0x217   : > { %4286 = vst.msk [vmem:[%s6289_s8 + $0xc] sm:$0xf] %vm4282_vm7, %v4253_v51  ;;  %v4154_v0 = vadd.f32 %v4080_v15, %v3745_v31  ;;  %v3008_v43 = vpop.f32.mrf.mxu2  ;;  %4773 = vmatmul.msk.bf16.gmra.mxu1 %vm675_vm3, %v2624_v12  ;;  %v3976_v12 = vunpack.c.l.b16 %v3920_v27  ;;  %v3461_v31 = vor.u32 %v3460_v60, %v6376_v52  ;;  %v3472_v24 = vshll.u32 %v4937_v58, 16  ;;  %v5085_v58 = vld [vmem:[%s5222_s29 + $0xa8] sm:$0xff] }
 0x218   : > { %v3081_v50 = vadd.f32 %v3008_v43, %v2783_v8  ;;  %v3451_v63 = vor.u32 %v3450_v3, %v3447_v30  ;;  %v3923_v60 = vrot.slane %v6358_v53, 5  ;;  %v3471_v53 = vrot.slane %v3469_v54, 4 }
 0x219   : > { %v4190_v57 = vadd.f32 %v6262_v4, %v4154_v0  ;;  %v6393_v0 = vld [vmem:[%s5222_s29 + $0xb8] sm:$0xf]  ;;  %v3996_v8 = vpack.c.b16 %v3976_v12, %v3975_v17  ;;  %v5155_v17 = vld [vmem:[%s5222_s29 + $0xac] sm:$0xf] }
 0x21a   : > { %v3452_v43 = vrot.slane %v3451_v63, 4  ;;  %v3478_v44 = vshll.u32 %v6393_v0, 16  ;;  %v3482_v1 = vshrl.u32 %v6393_v0, 16 }
 0x21b   : > { %v4222_v19 = vmax.f32 %v4190_v57, 0.0  ;;  %v4082_v48 = vpop.f32.mrf.mxu0 }
 0x21c   : > { %v3673_v15 = vpop.f32.mrf.mxu3  ;;  %4893 = vmatmul.msk.bf16.gmra.mxu2 %vm675_vm3, %v5084_v55  ;;  %v2715_v28 = vpop.f32.mrf.mxu1  ;;  %v3462_v55 = vrot.slane %v3461_v31, 4  ;;  %v3457_v29 = vsel %vm5234_vm2, %v3452_v43, %v6376_v52  ;;  %v6409_v31 = vrot.slane %v3478_v44, 5  ;;  %v3484_v62 = vrot.slane %v3482_v1, 4 }
 0x21d   : > { %v4254_v23 = vpack.c.bf16 %v4222_v19, %v4222_v19  ;;  %v3746_v51 = vadd.f32 %v3673_v15, %v3081_v50  ;;  %v2625_v50 = vpack.c.b16 %v2606_v9, %v2605_v16  ;;  %v2558_v15 = vrot.slane %v5155_v17, 5  ;;  %v6417_v9 = vld [vmem:[%s5222_s29 + $0xbc] sm:$0x1] }
 0x21e   : > { %v3467_v63 = vsel %vm5234_vm2, %v3462_v55, %v3466_v39  ;;  %v3925_v52 = vrot.slane %v3923_v60, 4  ;;  %v3926_v16 = vrot.slane %v6379_v59, 5  ;;  %v3488_v59 = vshll.u32 %v6417_v9, 16 }
 0x21f   : > { %4287 = vst.msk [vmem:[%s6289_s8 + $0x10] sm:$0xf] %vm4282_vm7, %v4254_v23  ;;  %v4155_v2 = vadd.f32 %v4082_v48, %v3746_v51  ;;  %v3011_v21 = vpop.f32.mrf.mxu2  ;;  %v4735_v23 = vld [vmem:[%s5222_s29 + $0xa8] sm:$0xe]  ;;  %v3474_v51 = vrot.slane %v3472_v24, 5  ;;  %v2560_v43 = vrot.slane %v2558_v15, 4  ;;  %v3569_v54 = vunpack.c.l.b16 %v3467_v63 }
 0x220   : > { %v3082_v30 = vadd.f32 %v3011_v21, %v2784_v18  ;;  %v2785_v18 = vadd.f32 %v2715_v28, %v5800_v33  ;;  %v3485_v24 = vor.u32 %v3484_v62, %v6409_v31 }
 0x221   : > { %v4191_v27 = vadd.f32 %v6262_v4, %v4155_v2  ;;  %4965 = vmatmul.msk.bf16.gmra.mxu3 %vm675_vm3, %v3587_v37  ;;  %v4998_v37 = vrot.slane %v4982_v11, 9  ;;  %v3568_v11 = vunpack.c.l.b16 %v3457_v29  ;;  %v3475_v28 = vor.u32 %v3474_v51, %v3471_v53 }
 0x222   : > { %v3490_v53 = vrot.slane %v3488_v59, 5 }
 0x223   : > { %v4223_v3 = vmax.f32 %v4191_v27, 0.0  ;;  %v4085_v57 = vpop.f32.mrf.mxu0  ;;  %v5156_v27 = vld [vmem:[%s5222_s29 + $0xb0] sm:$0x1]  ;;  %v3924_v33 = vsel %vm5429_vm6, %v4998_v37, %v3923_v60  ;;  %v3476_v63 = vrot.slane %v3475_v28, 4  ;;  %v5157_v28 = vld [vmem:[%s5222_s29 + $0xb8] sm:$0xf] }
 0x224   : > { %v3676_v19 = vpop.f32.mrf.mxu3  ;;  %v2718_v48 = vpop.f32.mrf.mxu1 }
 0x225   : > { %v4255_v12 = vpack.c.bf16 %v4223_v3, %v4223_v3  ;;  %v3747_v56 = vadd.f32 %v3676_v19, %v3082_v30  ;;  %v2561_v30 = vrot.slane %v5156_v27, 5  ;;  %v3927_v3 = vsel %vm5429_vm6, %v3925_v52, %v3926_v16 }
 0x226   : > { %5021 = vmatmul.msk.bf16.gmra.mxu0 %vm675_vm3, %v3996_v8  ;;  %v4751_v8 = vrot.slane %v4735_v23, 9  ;;  %v3978_v29 = vunpack.c.l.b16 %v3927_v3  ;;  %v3486_v23 = vrot.slane %v3485_v24, 4  ;;  %v2786_v62 = vadd.f32 %v2718_v48, %v5813_v61  ;;  %v6445_v61 = vld [vmem:[%s5222_s29 + $0xc4] sm:$0xf] }
 0x227   : > { %4288 = vst.msk [vmem:[%s6289_s8 + $0x14] sm:$0xf] %vm4282_vm7, %v4255_v12  ;;  %v4156_v2 = vadd.f32 %v4085_v57, %v3747_v56  ;;  %v3013_v21 = vpop.f32.mrf.mxu2  ;;  %4774 = vmatmul.msk.bf16.gmra.mxu1 %vm675_vm3, %v2625_v50  ;;  %v2562_v60 = vsel %vm5429_vm6, %v2560_v43, %v2561_v30  ;;  %v3588_v12 = vpack.c.b16 %v3569_v54, %v3568_v11  ;;  %v3977_v56 = vunpack.c.l.b16 %v3924_v33 }
 0x228   : > { %v3083_v39 = vadd.f32 %v3013_v21, %v2785_v18  ;;  %v2559_v19 = vsel %vm5429_vm6, %v4751_v8, %v2558_v15  ;;  %v2608_v18 = vunpack.c.l.b16 %v2562_v60  ;;  %v4940_v21 = vld [vmem:[%s5222_s29 + $0xc0] sm:$0xf]  ;;  %v3481_v8 = vsel %vm5234_vm2, %v3476_v63, %v6409_v31 }
 0x229   : > { %v4192_v55 = vadd.f32 %v6262_v4, %v4156_v2  ;;  %v2607_v2 = vunpack.c.l.b16 %v2559_v19  ;;  %v3491_v43 = vsel %vm5234_vm2, %v3486_v23, %v3490_v53  ;;  %v3493_v11 = vshrl.u32 %v4940_v21, 16  ;;  %v5086_v53 = vld [vmem:[%s5222_s29 + $0xb4] sm:$0xff] }
 0x22a   : > { %v2565_v24 = vrot.slane %v5157_v28, 5  ;;  %v3496_v59 = vshll.u32 %v4940_v21, 16  ;;  %v3502_v3 = vshll.u32 %v6445_v61, 16  ;;  %v3570_v19 = vunpack.c.l.b16 %v3481_v8 }
 0x22b   : > { %v4224_v44 = vmax.f32 %v4192_v55, 0.0  ;;  %v4087_v1 = vpop.f32.mrf.mxu0  ;;  %v2626_v30 = vpack.c.b16 %v2608_v18, %v2607_v2  ;;  %v4983_v55 = vld [vmem:[%s5222_s29 + $0xb4] sm:$0xe]  ;;  %v3495_v23 = vrot.slane %v3493_v11, 4 }
 0x22c   : > { %v3678_v57 = vpop.f32.mrf.mxu3  ;;  %4894 = vmatmul.msk.bf16.gmra.mxu2 %vm675_vm3, %v5085_v58  ;;  %v2720_v50 = vpop.f32.mrf.mxu1  ;;  %v3997_v58 = vpack.c.b16 %v3978_v29, %v3977_v56  ;;  %v4999_v60 = vrot.slane %v4983_v55, 9  ;;  %v3498_v18 = vrot.slane %v3496_v59, 5 }
 0x22d   : > { %v4256_v37 = vpack.c.bf16 %v4224_v44, %v4224_v44  ;;  %v3748_v17 = vadd.f32 %v3678_v57, %v3083_v39  ;;  %v3930_v39 = vrot.slane %v6393_v0, 5  ;;  %v3506_v57 = vshrl.u32 %v6445_v61, 16 }
 0x22e   : > { %v3571_v0 = vunpack.c.l.b16 %v3491_v43  ;;  %v3499_v28 = vor.u32 %v3498_v18, %v3495_v23  ;;  %v4984_v23 = vld [vmem:[%s5222_s29 + $0xc0] sm:$0xe]  ;;  %v6487_v18 = vld [vmem:[%s5222_s29 + $0xd0] sm:$0xf] }
 0x22f   : > { %4289 = vst.msk [vmem:[%s6289_s8 + $0x18] sm:$0xf] %vm4282_vm7, %v4256_v37  ;;  %v4157_v51 = vadd.f32 %v4087_v1, %v3748_v17  ;;  %v3016_v15 = vpop.f32.mrf.mxu2  ;;  %v4736_v1 = vld [vmem:[%s5222_s29 + $0xb4] sm:$0xe]  ;;  %v3933_v37 = vrot.slane %v6417_v9, 5  ;;  %v3932_v63 = vrot.slane %v3930_v39, 4  ;;  %v3931_v43 = vsel %vm5429_vm6, %v4999_v60, %v3930_v39 }
 0x230   : > { %v3084_v16 = vadd.f32 %v3016_v15, %v2786_v62  ;;  %v2567_v62 = vrot.slane %v2565_v24, 4  ;;  %v5158_v15 = vld [vmem:[%s5222_s29 + $0xbc] sm:$0x1] }
 0x231   : > { %v4193_v52 = vadd.f32 %v6262_v4, %v4157_v51  ;;  %4966 = vmatmul.msk.bf16.gmra.mxu3 %vm675_vm3, %v3588_v12  ;;  %v6638_v12 = vld [vmem:[#allocation2_spill] sm:$0xff]  ;;  %v4752_v51 = vrot.slane %v4736_v1, 9  ;;  %v2568_v2 = vrot.slane %v5158_v15, 5  ;;  %v3979_v1 = vunpack.c.l.b16 %v3931_v43 }
 0x232   : > { %v2787_v56 = vadd.f32 %v2720_v50, %v6638_v12  ;;  %v3937_v15 = vrot.slane %v6445_v61, 5  ;;  %v4737_v61 = vld [vmem:[%s5222_s29 + $0xc0] sm:$0xe] }
 0x233   : > { %v4225_v48 = vmax.f32 %v4193_v52, 0.0  ;;  %v4090_v27 = vpop.f32.mrf.mxu0  ;;  %v6462_v52 = vrot.slane %v3502_v3, 5  ;;  %v2566_v11 = vsel %vm5429_vm6, %v4752_v51, %v2565_v24 }
 0x234   : > { %v3681_v54 = vpop.f32.mrf.mxu3  ;;  %v2723_v33 = vpop.f32.mrf.mxu1  ;;  %v2609_v60 = vunpack.c.l.b16 %v2566_v11 }
 0x235   : > { %v4257_v31 = vpack.c.bf16 %v4225_v48, %v4225_v48  ;;  %v3749_v44 = vadd.f32 %v3681_v54, %v3084_v16  ;;  %v3508_v16 = vrot.slane %v3506_v57, 4  ;;  %v3934_v48 = vsel %vm5429_vm6, %v3932_v63, %v3933_v37 }
 0x236   : > { %5022 = vmatmul.msk.bf16.gmra.mxu0 %vm675_vm3, %v3997_v58  ;;  %v6465_v58 = vld [vmem:[%s5222_s29 + $0xc8] sm:$0x1]  ;;  %v2569_v54 = vsel %vm5429_vm6, %v2567_v62, %v2568_v2  ;;  %v3980_v3 = vunpack.c.l.b16 %v3934_v48  ;;  %v4943_v2 = vld [vmem:[%s5222_s29 + $0xcc] sm:$0xf] }
 0x237   : > { %4290 = vst.msk [vmem:[%s6289_s8 + $0x1c] sm:$0xf] %vm4282_vm7, %v4257_v31  ;;  %v4158_v17 = vadd.f32 %v4090_v27, %v3749_v44  ;;  %v3018_v29 = vpop.f32.mrf.mxu2  ;;  %4775 = vmatmul.msk.bf16.gmra.mxu1 %vm675_vm3, %v2626_v30  ;;  %v3589_v30 = vpack.c.b16 %v3571_v0, %v3570_v19  ;;  %v3509_v44 = vor.u32 %v3508_v16, %v6462_v52  ;;  %v3512_v39 = vshll.u32 %v6465_v58, 16  ;;  %v6639_v19 = vld [vmem:[#allocation3_spill] sm:$0xff] }
 0x238   : > { %v3085_v9 = vadd.f32 %v3018_v29, %v2787_v56  ;;  %v2788_v0 = vadd.f32 %v2723_v33, %v6639_v19  ;;  %v2610_v37 = vunpack.c.l.b16 %v2569_v54  ;;  %v5000_v16 = vrot.slane %v4984_v23, 9 }
 0x239   : > { %v4194_v21 = vadd.f32 %v6262_v4, %v4158_v17  ;;  %v3500_v17 = vrot.slane %v3499_v28, 4  ;;  %v3510_v29 = vrot.slane %v3509_v44, 4  ;;  %v3514_v63 = vrot.slane %v3512_v39, 5 }
 0x23a   : > { %v2627_v33 = vpack.c.b16 %v2610_v37, %v2609_v60  ;;  %v3517_v11 = vshrl.u32 %v4943_v2, 16  ;;  %v3520_v54 = vshll.u32 %v4943_v2, 16  ;;  %v3526_v28 = vshll.u32 %v6487_v18, 16 }
 0x23b   : > { %v4226_v50 = vmax.f32 %v4194_v21, 0.0  ;;  %v4092_v8 = vpop.f32.mrf.mxu0  ;;  %v4753_v19 = vrot.slane %v4737_v61, 9 }
 0x23c   : > { %v3683_v27 = vpop.f32.mrf.mxu3  ;;  %4895 = vmatmul.msk.bf16.gmra.mxu2 %vm675_vm3, %v5086_v53  ;;  %v2725_v55 = vpop.f32.mrf.mxu1  ;;  %v3998_v53 = vpack.c.b16 %v3980_v3, %v3979_v1  ;;  %v3940_v1 = vrot.slane %v6465_v58, 5  ;;  %v5087_v3 = vld [vmem:[%s5222_s29 + $0xc0] sm:$0xff] }
 0x23d   : > { %v4258_v59 = vpack.c.bf16 %v4226_v50, %v4226_v50  ;;  %v3750_v31 = vadd.f32 %v3683_v27, %v3085_v9  ;;  %v5159_v50 = vld [vmem:[%s5222_s29 + $0xc4] sm:$0xf]  ;;  %v3505_v27 = vsel %vm5234_vm2, %v3500_v17, %v6462_v52  ;;  %v2789_v44 = vadd.f32 %v2725_v55, %v5874_v45 }
 0x23e   : > { %v3939_v52 = vrot.slane %v3937_v15, 4  ;;  %v3938_v45 = vsel %vm5429_vm6, %v5000_v16, %v3937_v15  ;;  %v3519_v55 = vrot.slane %v3517_v11, 4 }
 0x23f   : > { %4291 = vst.msk [vmem:[%s6289_s8 + $0x20] sm:$0xf] %vm4282_vm7, %v4258_v59  ;;  %v4159_v57 = vadd.f32 %v4092_v8, %v3750_v31  ;;  %v3021_v24 = vpop.f32.mrf.mxu2  ;;  %v2572_v8 = vrot.slane %v5159_v50, 5  ;;  %v3530_v59 = vshrl.u32 %v6487_v18, 16 }
 0x240   : > { %v3086_v56 = vadd.f32 %v3021_v24, %v2788_v0  ;;  %v5160_v24 = vld [vmem:[%s5222_s29 + $0xc8] sm:$0x1] }
 0x241   : > { %v4195_v12 = vadd.f32 %v6262_v4, %v4159_v57  ;;  %4967 = vmatmul.msk.bf16.gmra.mxu3 %vm675_vm3, %v3589_v30  ;;  %v3515_v30 = vsel %vm5234_vm2, %v3510_v29, %v3514_v63  ;;  %v3572_v57 = vunpack.c.l.b16 %v3505_v27  ;;  %v2574_v0 = vrot.slane %v2572_v8, 4 }
 0x242   : > { %v2575_v60 = vrot.slane %v5160_v24, 5  ;;  %v3528_v29 = vrot.slane %v3526_v28, 5  ;;  %v3532_v63 = vrot.slane %v3530_v59, 4  ;;  %v2573_v2 = vsel %vm5429_vm6, %v4753_v19, %v2572_v8  ;;  %v4985_v24 = vld [vmem:[%s5222_s29 + $0xcc] sm:$0xe] }
 0x243   : > { %v4227_v51 = vmax.f32 %v4195_v12, 0.0  ;;  %v4095_v62 = vpop.f32.mrf.mxu0  ;;  %v3573_v12 = vunpack.c.l.b16 %v3515_v30  ;;  %v2611_v59 = vunpack.c.l.b16 %v2573_v2 }
 0x244   : > { %v3686_v21 = vpop.f32.mrf.mxu3  ;;  %v2728_v9 = vpop.f32.mrf.mxu1  ;;  %v2576_v15 = vsel %vm5429_vm6, %v2574_v0, %v2575_v60  ;;  %v3533_v30 = vor.u32 %v3532_v63, %v3528_v29  ;;  %v3944_v60 = vrot.slane %v6487_v18, 5 }
 0x245   : > { %v4259_v43 = vpack.c.bf16 %v4227_v51, %v4227_v51  ;;  %v3751_v48 = vadd.f32 %v3686_v21, %v3086_v56  ;;  %v3522_v56 = vrot.slane %v3520_v54, 5  ;;  %v4945_v51 = vld [vmem:[%s5222_s29 + $0xd4] sm:$0x1]  ;;  %v3590_v50 = vpack.c.b16 %v3573_v12, %v3572_v57 }
 0x246   : > { %5023 = vmatmul.msk.bf16.gmra.mxu0 %vm675_vm3, %v3998_v53  ;;  %v3941_v53 = vsel %vm5429_vm6, %v3939_v52, %v3940_v1  ;;  %v3536_v61 = vshll.u32 %v4945_v51, 16  ;;  %v2790_v54 = vadd.f32 %v2728_v9, %v5885_v38  ;;  %v2612_v8 = vunpack.c.l.b16 %v2576_v15 }
 0x247   : > { %4292 = vst.msk [vmem:[%s6289_s8 + $0x24] sm:$0xf] %vm4282_vm7, %v4259_v43  ;;  %v4160_v31 = vadd.f32 %v4095_v62, %v3751_v48  ;;  %v3023_v39 = vpop.f32.mrf.mxu2  ;;  %4776 = vmatmul.msk.bf16.gmra.mxu1 %vm675_vm3, %v2627_v33  ;;  %v3981_v43 = vunpack.c.l.b16 %v3938_v45  ;;  %v3982_v48 = vunpack.c.l.b16 %v3941_v53  ;;  %v3523_v27 = vor.u32 %v3522_v56, %v3519_v55  ;;  %v5088_v53 = vld [vmem:[%s5222_s29 + $0xcc] sm:$0xff] }
 0x248   : > { %v3087_v17 = vadd.f32 %v3023_v39, %v2789_v44  ;;  %v3534_v1 = vrot.slane %v3533_v30, 4  ;;  %v2628_v0 = vpack.c.b16 %v2612_v8, %v2611_v59  ;;  %v5001_v55 = vrot.slane %v4985_v24, 9 }
 0x249   : > { %v4196_v37 = vadd.f32 %v6262_v4, %v4160_v31  ;;  %v3999_v39 = vpack.c.b16 %v3982_v48, %v3981_v43  ;;  %v3524_v52 = vrot.slane %v3523_v27, 4 }
 0x24b   : > { %v4228_v23 = vmax.f32 %v4196_v37, 0.0  ;;  %v4097_v58 = vpop.f32.mrf.mxu0  ;;  %v3529_v12 = vsel %vm5234_vm2, %v3524_v52, %v3528_v29 }
 0x24c   : > { %v3688_v62 = vpop.f32.mrf.mxu3  ;;  %4896 = vmatmul.msk.bf16.gmra.mxu2 %vm675_vm3, %v5087_v3  ;;  %v2730_v33 = vpop.f32.mrf.mxu1  ;;  %v3538_v3 = vrot.slane %v3536_v61, 5  ;;  %v3574_v29 = vunpack.c.l.b16 %v3529_v12 }
 0x24d   : > { %v4260_v21 = vpack.c.bf16 %v4228_v23, %v4228_v23  ;;  %v3752_v16 = vadd.f32 %v3688_v62, %v3087_v17  ;;  %v2791_v63 = vadd.f32 %v2730_v33, %v5901_v36  ;;  %v3946_v23 = vrot.slane %v3944_v60, 4 }
 0x24e   : > { %v3539_v45 = vsel %vm5234_vm2, %v3534_v1, %v3538_v3 }
 0x24f   : > { %4293 = vst.msk [vmem:[%s6289_s8 + $0x28] sm:$0xf] %vm4282_vm7, %v4260_v21  ;;  %v4161_v11 = vadd.f32 %v4097_v58, %v3752_v16  ;;  %v3026_v28 = vpop.f32.mrf.mxu2  ;;  %v3947_v58 = vrot.slane %v4945_v51, 5  ;;  %v3575_v15 = vunpack.c.l.b16 %v3539_v45  ;;  %v3945_v16 = vsel %vm5429_vm6, %v5001_v55, %v3944_v60 }
 0x250   : > { %v3088_v44 = vadd.f32 %v3026_v28, %v2790_v54  ;;  %v3983_v27 = vunpack.c.l.b16 %v3945_v16 }
 0x251   : > { %v4197_v31 = vadd.f32 %v6262_v4, %v4161_v11  ;;  %4968 = vmatmul.msk.bf16.gmra.mxu3 %vm675_vm3, %v3590_v50  ;;  %v3948_v36 = vsel %vm5429_vm6, %v3946_v23, %v3947_v58  ;;  %v3591_v48 = vpack.c.b16 %v3575_v15, %v3574_v29 }
 0x252   : > { %v3984_v30 = vunpack.c.l.b16 %v3948_v36 }
 0x253   : > { %v4229_v57 = vmax.f32 %v4197_v31, 0.0  ;;  %v4100_v19 = vpop.f32.mrf.mxu0 }
 0x254   : > { %v3691_v38 = vpop.f32.mrf.mxu3  ;;  %v2733_v9 = vpop.f32.mrf.mxu1  ;;  %v4000_v59 = vpack.c.b16 %v3984_v30, %v3983_v27 }
 0x255   : > { %v4261_v37 = vpack.c.bf16 %v4229_v57, %v4229_v57  ;;  %v3753_v17 = vadd.f32 %v3691_v38, %v3088_v44  ;;  %v2792_v11 = vadd.f32 %v2733_v9, %v5919_v46 }
 0x256   : > { %5024 = vmatmul.msk.bf16.gmra.mxu0 %vm675_vm3, %v3999_v39 }
 0x257   : > { %4294 = vst.msk [vmem:[%s6289_s8 + $0x2c] sm:$0xf] %vm4282_vm7, %v4261_v37  ;;  %v4162_v56 = vadd.f32 %v4100_v19, %v3753_v17  ;;  %v3028_v18 = vpop.f32.mrf.mxu2  ;;  %4777 = vmatmul.msk.bf16.gmra.mxu1 %vm675_vm3, %v2628_v0 }
 0x258   : > { %v3089_v2 = vadd.f32 %v3028_v18, %v2791_v63 }
 0x259   : > { %v4198_v62 = vadd.f32 %v6262_v4, %v4162_v56 }
 0x25b   : > { %v4230_v32 = vmax.f32 %v4198_v62, 0.0  ;;  %v4102_v21 = vpop.f32.mrf.mxu0 }
 0x25c   : > { %v3693_v33 = vpop.f32.mrf.mxu3  ;;  %4897 = vmatmul.msk.bf16.gmra.mxu2 %vm675_vm3, %v5088_v53  ;;  %v2735_v50 = vpop.f32.mrf.mxu1 }
 0x25d   : > { %v4262_v51 = vpack.c.bf16 %v4230_v32, %v4230_v32  ;;  %v3754_v43 = vadd.f32 %v3693_v33, %v3089_v2  ;;  %v2793_v46 = vadd.f32 %v2735_v50, %v5939_v34 }
 0x25f   : > { %4295 = vst.msk [vmem:[%s6289_s8 + $0x30] sm:$0xf] %vm4282_vm7, %v4262_v51  ;;  %v4163_v61 = vadd.f32 %v4102_v21, %v3754_v43  ;;  %v3031_v54 = vpop.f32.mrf.mxu2 }
 0x260   : > { %v3090_v26 = vadd.f32 %v3031_v54, %v2792_v11 }
 0x261   : > { %v4199_v28 = vadd.f32 %v6262_v4, %v4163_v61  ;;  %4969 = vmatmul.msk.bf16.gmra.mxu3 %vm675_vm3, %v3591_v48 }
 0x263   : > { %v4231_v8 = vmax.f32 %v4199_v28, 0.0  ;;  %v4105_v31 = vpop.f32.mrf.mxu0 }
 0x264   : > { %v3696_v44 = vpop.f32.mrf.mxu3  ;;  %v2738_v39 = vpop.f32.mrf.mxu1 }
 0x265   : > { %v4263_v52 = vpack.c.bf16 %v4231_v8, %v4231_v8  ;;  %v3755_v1 = vadd.f32 %v3696_v44, %v3090_v26  ;;  %v2794_v45 = vadd.f32 %v2738_v39, %v5958_v13 }
 0x266   : > { %5025 = vmatmul.msk.bf16.gmra.mxu0 %vm675_vm3, %v4000_v59 }
 0x267   : > { %4296 = vst.msk [vmem:[%s6289_s8 + $0x34] sm:$0xf] %vm4282_vm7, %v4263_v52  ;;  %v4164_v3 = vadd.f32 %v4105_v31, %v3755_v1  ;;  %v3033_v57 = vpop.f32.mrf.mxu2 }
 0x268   : > { %v3091_v0 = vadd.f32 %v3033_v57, %v2793_v46 }
 0x269   : > { %v4200_v19 = vadd.f32 %v6262_v4, %v4164_v3 }
 0x26b   : > { %v4232_v24 = vmax.f32 %v4200_v19, 0.0  ;;  %v4107_v60 = vpop.f32.mrf.mxu0 }
 0x26c   : > { %v3698_v38 = vpop.f32.mrf.mxu3  ;;  %v2740_v9 = vpop.f32.mrf.mxu1 }
 0x26d   : > { %v4264_v37 = vpack.c.bf16 %v4232_v24, %v4232_v24  ;;  %v3756_v17 = vadd.f32 %v3698_v38, %v3091_v0  ;;  %v2795_v29 = vadd.f32 %v2740_v9, %v5979_v6 }
 0x26f   : > { %4297 = vst.msk [vmem:[%s6289_s8 + $0x38] sm:$0xf] %vm4282_vm7, %v4264_v37  ;;  %v4165_v12 = vadd.f32 %v4107_v60, %v3756_v17  ;;  %v3036_v55 = vpop.f32.mrf.mxu2 }
 0x270   : > { %v3092_v34 = vadd.f32 %v3036_v55, %v2794_v45 }
 0x271   : > { %v4201_v56 = vadd.f32 %v6262_v4, %v4165_v12 }
 0x273   : > { %v4233_v63 = vmax.f32 %v4201_v56, 0.0  ;;  %v4110_v18 = vpop.f32.mrf.mxu0 }
 0x274   : > { %v3701_v23 = vpop.f32.mrf.mxu3  ;;  %v2743_v58 = vpop.f32.mrf.mxu1 }
 0x275   : > { %v4265_v53 = vpack.c.bf16 %v4233_v63, %v4233_v63  ;;  %v3757_v62 = vadd.f32 %v3701_v23, %v3092_v34  ;;  %v2796_v48 = vadd.f32 %v2743_v58, %v5997_v14  ;;  %v6568_v14 = vld [vmem:[%s6629_s2] ss:$0 sm:$0xff] }
 0x277   : > { %4298 = vst.msk [vmem:[%s6289_s8 + $0x3c] sm:$0xf] %vm4282_vm7, %v4265_v53  ;;  %v4166_v2 = vadd.f32 %v4110_v18, %v3757_v62  ;;  %v3038_v15 = vpop.f32.mrf.mxu2 }
 0x278   : > { %v3093_v13 = vadd.f32 %v3038_v15, %v2795_v29 }
 0x279   : > { %v4202_v32 = vadd.f32 %v6262_v4, %v4166_v2 }
 0x27b   : > { %v4234_v21 = vmax.f32 %v4202_v32, 0.0  ;;  %v4112_v16 = vpop.f32.mrf.mxu0 }
 0x27c   : > { %v3703_v36 = vpop.f32.mrf.mxu3  ;;  %v2745_v33 = vpop.f32.mrf.mxu1 }
 0x27d   : > { %v4266_v50 = vpack.c.bf16 %v4234_v21, %v4234_v21  ;;  %v3758_v51 = vadd.f32 %v3703_v36, %v3093_v13  ;;  %v2797_v31 = vadd.f32 %v2745_v33, %v6017_v20 }
 0x27f   : > { %4299 = vst.msk [vmem:[%s6289_s8 + $0x40] sm:$0xf] %vm4282_vm7, %v4266_v50  ;;  %v4167_v43 = vadd.f32 %v4112_v16, %v3758_v51  ;;  %v3041_v27 = vpop.f32.mrf.mxu2 }
 0x280   : > { %v3094_v6 = vadd.f32 %v3041_v27, %v2796_v48 }
 0x281   : > { %v4203_v30 = vadd.f32 %v6262_v4, %v4167_v43 }
 0x283   : > { %v4235_v61 = vmax.f32 %v4203_v30, 0.0  ;;  %v4115_v11 = vpop.f32.mrf.mxu0 }
 0x284   : > { %v3706_v54 = vpop.f32.mrf.mxu3  ;;  %v2748_v28 = vpop.f32.mrf.mxu1 }
 0x285   : > { %v4267_v26 = vpack.c.bf16 %v4235_v61, %v4235_v61  ;;  %v3759_v59 = vadd.f32 %v3706_v54, %v3094_v6  ;;  %v2798_v20 = vadd.f32 %v2748_v28, %v6036_v10 }
 0x287   : > { %4300 = vst.msk [vmem:[%s6289_s8 + $0x44] sm:$0xf] %vm4282_vm7, %v4267_v26  ;;  %v4168_v8 = vadd.f32 %v4115_v11, %v3759_v59  ;;  %v3043_v44 = vpop.f32.mrf.mxu2 }
 0x288   : > { %v3095_v39 = vadd.f32 %v3043_v44, %v2797_v31 }
 0x289   : > { %v4204_v4 = vadd.f32 %v6568_v14, %v4168_v8 }
 0x28b   : > { %v4236_v52 = vmax.f32 %v4204_v4, 0.0  ;;  %v4117_v1 = vpop.f32.mrf.mxu0 }
 0x28c   : > { %v3708_v3 = vpop.f32.mrf.mxu3  ;;  %v2750_v46 = vpop.f32.mrf.mxu1 }
 0x28d   : > { %v4268_v57 = vpack.c.bf16 %v4236_v52, %v4236_v52  ;;  %v3760_v19 = vadd.f32 %v3708_v3, %v3095_v39  ;;  %v2799_v34 = vadd.f32 %v2750_v46, %v6057_v25 }
 0x28f   : > { %4301 = vst.msk [vmem:[%s6289_s8 + $0x48] sm:$0xf] %vm4282_vm7, %v4268_v57  ;;  %v4169_v0 = vadd.f32 %v4117_v1, %v3760_v19  ;;  %v3046_v24 = vpop.f32.mrf.mxu2 }
 0x290   : > { %v3096_v38 = vadd.f32 %v3046_v24, %v2798_v20 }
 0x291   : > { %v4205_v60 = vadd.f32 %v6568_v14, %v4169_v0 }
 0x293   : > { %v4237_v9 = vmax.f32 %v4205_v60, 0.0  ;;  %v4120_v37 = vpop.f32.mrf.mxu0 }
 0x294   : > { %v3711_v17 = vpop.f32.mrf.mxu3  ;;  %v2753_v12 = vpop.f32.mrf.mxu1 }
 0x295   : > { %v4269_v45 = vpack.c.bf16 %v4237_v9, %v4237_v9  ;;  %v3761_v55 = vadd.f32 %v3711_v17, %v3096_v38  ;;  %v2800_v32 = vadd.f32 %v2753_v12, %v6075_v35 }
 0x297   : > { %4302 = vst.msk [vmem:[%s6289_s8 + $0x4c] sm:$0xf] %vm4282_vm7, %v4269_v45  ;;  %v4170_v56 = vadd.f32 %v4120_v37, %v3761_v55  ;;  %v3048_v63 = vpop.f32.mrf.mxu2 }
 0x298   : > { %v3097_v10 = vadd.f32 %v3048_v63, %v2799_v34 }
 0x299   : > { %v4206_v18 = vadd.f32 %v6568_v14, %v4170_v56 }
 0x29b   : > { %v4238_v23 = vmax.f32 %v4206_v18, 0.0  ;;  %v4122_v58 = vpop.f32.mrf.mxu0 }
 0x29c   : > { %v3713_v53 = vpop.f32.mrf.mxu3  ;;  %v2755_v62 = vpop.f32.mrf.mxu1 }
 0x29d   : > { %v4270_v2 = vpack.c.bf16 %v4238_v23, %v4238_v23  ;;  %v3762_v29 = vadd.f32 %v3713_v53, %v3097_v10  ;;  %v2801_v27 = vadd.f32 %v2755_v62, %v6095_v47 }
 0x29f   : > { %4303 = vst.msk [vmem:[%s6289_s8 + $0x50] sm:$0xf] %vm4282_vm7, %v4270_v2  ;;  %v4171_v15 = vadd.f32 %v4122_v58, %v3762_v29  ;;  %v3051_v13 = vpop.f32.mrf.mxu2 }
 0x2a0   : > { %v3098_v25 = vadd.f32 %v3051_v13, %v2800_v32 }
 0x2a1   : > { %v4207_v21 = vadd.f32 %v6568_v14, %v4171_v15 }
 0x2a3   : > { %v4239_v16 = vmax.f32 %v4207_v21, 0.0  ;;  %v4125_v36 = vpop.f32.mrf.mxu0 }
 0x2a4   : > { %v3716_v33 = vpop.f32.mrf.mxu3  ;;  %v2758_v50 = vpop.f32.mrf.mxu1 }
 0x2a5   : > { %v4271_v51 = vpack.c.bf16 %v4239_v16, %v4239_v16  ;;  %v3763_v43 = vadd.f32 %v3716_v33, %v3098_v25  ;;  %v2802_v31 = vadd.f32 %v2758_v50, %v6114_v41  ;;  %v6640_v33 = vld [vmem:[#allocation4_spill] sm:$0xff] }
 0x2a7   : > { %4304 = vst.msk [vmem:[%s6289_s8 + $0x54] sm:$0xf] %vm4282_vm7, %v4271_v51  ;;  %v4172_v48 = vadd.f32 %v4125_v36, %v3763_v43  ;;  %v3053_v30 = vpop.f32.mrf.mxu2 }
 0x2a8   : > { %v3099_v35 = vadd.f32 %v3053_v30, %v2801_v27 }
 0x2a9   : > { %v4208_v6 = vadd.f32 %v6568_v14, %v4172_v48 }
 0x2ab   : > { %v4240_v61 = vmax.f32 %v4208_v6, 0.0  ;;  %v4127_v11 = vpop.f32.mrf.mxu0 }
 0x2ac   : > { %v3718_v54 = vpop.f32.mrf.mxu3  ;;  %v2760_v28 = vpop.f32.mrf.mxu1 }
 0x2ad   : > { %v4272_v26 = vpack.c.bf16 %v4240_v61, %v4240_v61  ;;  %v3764_v59 = vadd.f32 %v3718_v54, %v3099_v35  ;;  %v2803_v0 = vadd.f32 %v2760_v28, %v6135_v5 }
 0x2af   : > { %4305 = vst.msk [vmem:[%s6289_s8 + $0x58] sm:$0xf] %vm4282_vm7, %v4272_v26  ;;  %v4173_v8 = vadd.f32 %v4127_v11, %v3764_v59  ;;  %v3056_v44 = vpop.f32.mrf.mxu2 }
 0x2b0   : > { %v3100_v47 = vadd.f32 %v3056_v44, %v2802_v31 }
 0x2b1   : > { %v4209_v4 = vadd.f32 %v6568_v14, %v4173_v8 }
 0x2b3   : > { %v4241_v39 = vmax.f32 %v4209_v4, 0.0  ;;  %v4130_v52 = vpop.f32.mrf.mxu0 }
 0x2b4   : > { %v3721_v1 = vpop.f32.mrf.mxu3  ;;  %v2763_v3 = vpop.f32.mrf.mxu1 }
 0x2b5   : > { %v4273_v46 = vpack.c.bf16 %v4241_v39, %v4241_v39  ;;  %v3765_v57 = vadd.f32 %v3721_v1, %v3100_v47  ;;  %v2804_v55 = vadd.f32 %v2763_v3, %v6153_v22 }
 0x2b7   : > { %4306 = vst.msk [vmem:[%s6289_s8 + $0x5c] sm:$0xf] %vm4282_vm7, %v4273_v46  ;;  %v4174_v19 = vadd.f32 %v4130_v52, %v3765_v57  ;;  %v3058_v20 = vpop.f32.mrf.mxu2 }
 0x2b8   : > { %v3101_v41 = vadd.f32 %v3058_v20, %v2803_v0 }
 0x2b9   : > { %v4210_v24 = vadd.f32 %v6568_v14, %v4174_v19 }
 0x2bb   : > { %v4242_v60 = vmax.f32 %v4210_v24, 0.0  ;;  %v4132_v38 = vpop.f32.mrf.mxu0 }
 0x2bc   : > { %v3723_v9 = vpop.f32.mrf.mxu3  ;;  %v2765_v37 = vpop.f32.mrf.mxu1 }
 0x2bd   : > { %v4274_v17 = vpack.c.bf16 %v4242_v60, %v4242_v60  ;;  %v3766_v12 = vadd.f32 %v3723_v9, %v3101_v41  ;;  %v2805_v2 = vadd.f32 %v2765_v37, %v6179_v7 }
 0x2bf   : > { %4307 = vst.msk [vmem:[%s6289_s8 + $0x60] sm:$0xf] %vm4282_vm7, %v4274_v17  ;;  %v4175_v45 = vadd.f32 %v4132_v38, %v3766_v12  ;;  %v3061_v56 = vpop.f32.mrf.mxu2 }
 0x2c0   : > { %v3102_v5 = vadd.f32 %v3061_v56, %v2804_v55 }
 0x2c1   : > { %v4211_v34 = vadd.f32 %v6568_v14, %v4175_v45 }
 0x2c3   : > { %v4243_v63 = vmax.f32 %v4211_v34, 0.0  ;;  %v4135_v18 = vpop.f32.mrf.mxu0 }
 0x2c4   : > { %v3726_v10 = vpop.f32.mrf.mxu3  ;;  %v2768_v53 = vpop.f32.mrf.mxu1 }
 0x2c5   : > { %v4275_v23 = vpack.c.bf16 %v4243_v63, %v4243_v63  ;;  %v3767_v58 = vadd.f32 %v3726_v10, %v3102_v5  ;;  %v2806_v50 = vadd.f32 %v2768_v53, %v6640_v33 }
 0x2c7   : > { %4308 = vst.msk [vmem:[%s6289_s8 + $0x64] sm:$0xf] %vm4282_vm7, %v4275_v23  ;;  %v4176_v62 = vadd.f32 %v4135_v18, %v3767_v58  ;;  %v3063_v29 = vpop.f32.mrf.mxu2 }
 0x2c8   : > { %v3103_v22 = vadd.f32 %v3063_v29, %v2805_v2 }
 0x2c9   : > { %v4212_v15 = vadd.f32 %v6568_v14, %v4176_v62 }
 0x2cb   : > { %v4244_v32 = vmax.f32 %v4212_v15, 0.0  ;;  %v4137_v13 = vpop.f32.mrf.mxu0 }
 0x2cc   : > { %v3728_v21 = vpop.f32.mrf.mxu3  ;;  %v2770_v43 = vpop.f32.mrf.mxu1 }
 0x2cd   : > { %v4276_v25 = vpack.c.bf16 %v4244_v32, %v4244_v32  ;;  %v3768_v16 = vadd.f32 %v3728_v21, %v3103_v22  ;;  %v2807_v54 = vadd.f32 %v2770_v43, %v6218_v42 }
 0x2cf   : > { %4309 = vst.msk [vmem:[%s6289_s8 + $0x68] sm:$0xf] %vm4282_vm7, %v4276_v25  ;;  %v4177_v36 = vadd.f32 %v4137_v13, %v3768_v16  ;;  %v3066_v51 = vpop.f32.mrf.mxu2 }
 0x2d0   : > { %v3104_v7 = vadd.f32 %v3066_v51, %v2806_v50 }
 0x2d1   : > { %v4213_v48 = vadd.f32 %v6568_v14, %v4177_v36 }
 0x2d3   : > { %v4245_v27 = vmax.f32 %v4213_v48, 0.0  ;;  %v4140_v30 = vpop.f32.mrf.mxu0 }
 0x2d4   : > { %v3731_v6 = vpop.f32.mrf.mxu3  ;;  %v2773_v8 = vpop.f32.mrf.mxu1 }
 0x2d5   : > { %v4277_v35 = vpack.c.bf16 %v4245_v27, %v4245_v27  ;;  %v3769_v61 = vadd.f32 %v3731_v6, %v3104_v7  ;;  %v2808_v1 = vadd.f32 %v2773_v8, %v6233_v40 }
 0x2d7   : > { %4310 = vst.msk [vmem:[%s6289_s8 + $0x6c] sm:$0xf] %vm4282_vm7, %v4277_v35  ;;  %v4178_v11 = vadd.f32 %v4140_v30, %v3769_v61  ;;  %v3068_v28 = vpop.f32.mrf.mxu2 }
 0x2d8   : > { %v3105_v59 = vadd.f32 %v3068_v28, %v2807_v54 }
 0x2d9   : > { %v4214_v26 = vadd.f32 %v6568_v14, %v4178_v11 }
 0x2db   : > { %v4246_v31 = vmax.f32 %v4214_v26, 0.0  ;;  %v4142_v44 = vpop.f32.mrf.mxu0 }
 0x2dc   : > { %v3733_v4 = vpop.f32.mrf.mxu3  ;;  %v2775_v19 = vpop.f32.mrf.mxu1 }
 0x2dd   : > { %v4278_v47 = vpack.c.bf16 %v4246_v31, %v4246_v31  ;;  %v3770_v39 = vadd.f32 %v3733_v4, %v3105_v59  ;;  %v2809_v38 = vadd.f32 %v2775_v19, %v6254_v49 }
 0x2df   : > { %4311 = vst.msk [vmem:[%s6289_s8 + $0x70] sm:$0xf] %vm4282_vm7, %v4278_v47  ;;  %v4179_v52 = vadd.f32 %v4142_v44, %v3770_v39  ;;  %v3071_v3 = vpop.f32.mrf.mxu2 }
 0x2e0   : > { %v3106_v42 = vadd.f32 %v3071_v3, %v2808_v1 }
 0x2e1   : > { %v4215_v46 = vadd.f32 %v6568_v14, %v4179_v52 }
 0x2e3   : > { %v4247_v57 = vmax.f32 %v4215_v46, 0.0  ;;  %v4145_v0 = vpop.f32.mrf.mxu0 }
 0x2e4   : > { %v3736_v20 = vpop.f32.mrf.mxu3 }
 0x2e5   : > { %v4279_v24 = vpack.c.bf16 %v4247_v57, %v4247_v57  ;;  %v3771_v41 = vadd.f32 %v3736_v20, %v3106_v42 }
 0x2e7   : > { %4312 = vst.msk [vmem:[%s6289_s8 + $0x74] sm:$0xf] %vm4282_vm7, %v4279_v24  ;;  %v4180_v60 = vadd.f32 %v4145_v0, %v3771_v41  ;;  %v3073_v9 = vpop.f32.mrf.mxu2 }
 0x2e8   : > { %v3107_v37 = vadd.f32 %v3073_v9, %v2809_v38 }
 0x2e9   : > { %v4216_v40 = vadd.f32 %v6568_v14, %v4180_v60 }
 0x2eb   : > { %v4248_v17 = vmax.f32 %v4216_v40, 0.0  ;;  %v4147_v56 = vpop.f32.mrf.mxu0 }
 0x2ec   : > { %v3738_v12 = vpop.f32.mrf.mxu3 }
 0x2ed   : > { %v4280_v45 = vpack.c.bf16 %v4248_v17, %v4248_v17  ;;  %v3772_v55 = vadd.f32 %v3738_v12, %v3107_v37 }
 0x2ef   : > { %4313 = vst.msk [vmem:[%s6289_s8 + $0x78] sm:$0xf] %vm4282_vm7, %v4280_v45  ;;  %v4181_v34 = vadd.f32 %v4147_v56, %v3772_v55 }
 0x2f1   : > { %v4217_v5 = vadd.f32 %v6568_v14, %v4181_v34 }
 0x2f3   : > { %v4249_v63 = vmax.f32 %v4217_v5, 0.0 }
 0x2f5   : > { %v4281_v18 = vpack.c.bf16 %v4249_v63, %v4249_v63 }
 0x2f7   : > { %4314 = vst.msk [vmem:[%s6289_s8 + $0x7c] sm:$0xf] %vm4282_vm7, %v4281_v18 }
 0x2f8 PF: > { %s13_s12 = sadd.s32 1, %s5168_s12  }
 0x2f9   : > { %p10_p4 = scmp.ge.s32.totalorder %s13_s12, 4  }
 0x2fb   :  { %12 = sbr.rel (!%p10_p4) target bundleno = 1 (0x1), region = 64 }

</bundles_post_ra>
